<compile_context>
chip_gen: v7x
topology: tpu7x:2x2x1
jax: 0.10.0
libtpu: 0.0.40
codegen_flags: <defaults>
</compile_context>

<pallas_src>
import functools

import jax
import jax.numpy as jnp
from jax.experimental import pallas as pl
from jax.experimental.pallas import tpu as pltpu


def _round_up(x, m):
    return ((x + m - 1) // m) * m


def _gnn_kernel(a_ref, xl_ref, xr_ref, w1_ref, b1_ref, w2_ref, b2_ref, gid_ref,
                out_ref, acc_ref, *, g_pad, tk, xl_resident):
    k = pl.program_id(1)

    @pl.when(k == 0)
    def _():
        acc_ref[...] = jnp.zeros_like(acc_ref)

    # A (TM, TK) bf16 @ xl (TK, 128) bf16 -> f32 accumulate (lane-dense MXU).
    if xl_resident:
        start = pl.multiple_of(k * tk, tk)
        xl = xl_ref[pl.ds(start, tk), :]
    else:
        xl = xl_ref[...]
    acc_ref[...] += jnp.dot(a_ref[...], xl, preferred_element_type=jnp.float32)

    @pl.when(k == pl.num_programs(1) - 1)
    def _():
        # SAGEConv: lin_l(mean_aggr) + lin_r(x)  (projections + bias pre-applied).
        h = acc_ref[...] + xr_ref[...]                                # (TM, 128) f32
        # FC head: ReLU -> Linear(128,512) -> ReLU -> Linear(512,Hp) -> Sigmoid.
        # Matmul operands in bf16 (full MXU rate), accumulate/elementwise in f32.
        h = jnp.maximum(h, 0.0)
        h = jnp.dot(h.astype(jnp.bfloat16), w1_ref[...],
                    preferred_element_type=jnp.float32) + b1_ref[...]
        h = jnp.maximum(h, 0.0)
        h = jnp.dot(h.astype(jnp.bfloat16), w2_ref[...],
                    preferred_element_type=jnp.float32) + b2_ref[...]
        h = jax.nn.sigmoid(h)                                         # (TM, Hp) f32

        # global_max_pool over this row tile: per-graph masked running max.
        # gid is a (TM, 1) int32 graph-id column (sublane-oriented, so the
        # broadcast against h is a pure lane broadcast, no transpose needed).
        gid = gid_ref[...]                                            # (TM, 1) i32
        rows = []
        for g in range(g_pad):                                        # g_pad small
            hg = jnp.where(gid == g, h, -jnp.inf)                     # (TM, Hp)
            rows.append(jnp.max(hg, axis=0, keepdims=True))           # (1, Hp)
        out_ref[0] = jnp.concatenate(rows, axis=0)                    # (Gp, Hp)


def gnn_forward(x, edge_index, batch, params, num_graphs):
    """x: (N, D) f32; edge_index: (2, E) i32 (row0=src, row1=dst); batch: (N,) i32."""
    n = x.shape[0]
    hidden_dim = params["w2"].shape[1]

    blk = min(1024, _round_up(n, 128))         # base tile, multiple of 128
    n_pad = _round_up(n, blk)
    tk = blk
    tm = blk
    if n_pad // tm < 2 and tm >= 256:
        tm = tm // 2                           # ensure grid[0] >= 2 (v7x megacore)
    g_pad = _round_up(max(num_graphs, 1), 8)
    h_pad = _round_up(hidden_dim, 128)
    grid = (n_pad // tm, n_pad // tk)

    # Keep xl fully VMEM-resident when small enough (<= 4 MiB per buffer); else
    # stream the (tk, 128) tile per k step.
    xl_resident = n_pad * 128 * 2 <= 4 * 1024 * 1024

    # --- glue: dense row-normalized adjacency for mean aggregation (j -> i) ---
    # TODO(synk): for large sparse graphs replace this O(N^2) dense adjacency
    # with CSR neighbor lists + PrefetchScalarGridSpec (scalar-prefetch gather).
    src, dst = edge_index[0], edge_index[1]
    adj = jnp.zeros((n, n), jnp.float32).at[dst, src].add(1.0)
    deg = adj.sum(axis=1, keepdims=True)
    a_norm = adj / jnp.maximum(deg, 1.0)                       # normalize in f32
    a_norm = jnp.pad(a_norm, ((0, n_pad - n), (0, n_pad - n))).astype(jnp.bfloat16)

    # --- glue: pre-projected node features (reassociated SAGEConv) ---
    xl = jnp.pad(x @ params["wl"], ((0, n_pad - n), (0, 0))).astype(jnp.bfloat16)
    # lin_l bias folded into xr; kept f32 for accuracy (streamed once per row tile).
    xr = jnp.pad(x @ params["wr"] + params["bl"],
                 ((0, n_pad - n), (0, 0))).astype(jnp.float32)

    # --- glue: per-node graph id column (padding nodes get -1, match nothing) ---
    gid = jnp.pad(batch.astype(jnp.int32), (0, n_pad - n),
                  constant_values=-1)[:, None]                 # (Np, 1) int32

    # --- MLP weights: bf16 MXU operands; pad last layer so the store is 128-wide ---
    w1 = params["w1"].astype(jnp.bfloat16)
    w2p = jnp.pad(params["w2"], ((0, 0), (0, h_pad - hidden_dim))).astype(jnp.bfloat16)
    b2p = jnp.pad(params["b2"], ((0, 0), (0, h_pad - hidden_dim)))

    xl_bytes = xl.size * 2 if xl_resident else grid[0] * xl.size * 2
    cost = pl.CostEstimate(
        flops=2 * n_pad * n_pad * 128 + 2 * n_pad * (128 * 512 + 512 * h_pad),
        transcendentals=n_pad * h_pad,
        bytes_accessed=(a_norm.size * 2 + xl_bytes + xr.size * 4 + gid.size * 4
                        + w1.size * 2 + w2p.size * 2 + 512 * 4 + h_pad * 4
                        + grid[0] * g_pad * h_pad * 4),
    )

    if xl_resident:
        xl_spec = pl.BlockSpec((n_pad, 128), lambda i, k: (0, 0))
    else:
        xl_spec = pl.BlockSpec((tk, 128), lambda i, k: (k, 0))

    kernel = functools.partial(_gnn_kernel, g_pad=g_pad, tk=tk,
                               xl_resident=xl_resident)

    partial = pl.pallas_call(
        kernel,
        out_shape=jax.ShapeDtypeStruct((grid[0], g_pad, h_pad), jnp.float32),
        grid_spec=pltpu.PrefetchScalarGridSpec(
            num_scalar_prefetch=0,
            grid=grid,
            in_specs=[
                pl.BlockSpec((tm, tk), lambda i, k: (i, k)),        # A (bf16)
                xl_spec,                                            # xl (bf16)
                pl.BlockSpec((tm, 128), lambda i, k: (i, 0)),       # xr + bl (f32)
                pl.BlockSpec((128, 512), lambda i, k: (0, 0)),      # w1 (bf16)
                pl.BlockSpec((1, 512), lambda i, k: (0, 0)),        # b1 (f32)
                pl.BlockSpec((512, h_pad), lambda i, k: (0, 0)),    # w2 (bf16, padded)
                pl.BlockSpec((1, h_pad), lambda i, k: (0, 0)),      # b2 (f32, padded)
                pl.BlockSpec((tm, 1), lambda i, k: (i, 0)),         # graph ids (i32)
            ],
            out_specs=pl.BlockSpec((1, g_pad, h_pad), lambda i, k: (i, 0, 0)),
            scratch_shapes=[pltpu.VMEM((tm, 128), jnp.float32)],
        ),
        compiler_params=pltpu.CompilerParams(
            dimension_semantics=("parallel", "arbitrary"),
            vmem_limit_bytes=32 * 1024 * 1024,   # fits v5e/v6e/v7x scoped budgets
        ),
        cost_estimate=cost,
    )(a_norm, xl, xr, w1, params["b1"], w2p, b2p, gid)

    # Combine per-row-tile partial maxima; slice away graph / lane padding.
    return jnp.max(partial, axis=0)[:num_graphs, :hidden_dim]


def init_params(key, input_dim, hidden_dim):
    ks = jax.random.split(key, 5)

    def lin(k, fan_in, fan_out):
        bound = 1.0 / jnp.sqrt(fan_in)
        return jax.random.uniform(k, (fan_in, fan_out), jnp.float32, -bound, bound)

    return {
        # SAGEConv(input_dim, 128): lin_l (bias) on aggregated, lin_r (no bias) on root
        "wl": lin(ks[0], input_dim, 128),
        "bl": jnp.zeros((1, 128), jnp.float32),
        "wr": lin(ks[1], input_dim, 128),
        # FC: Linear(128, 512), Linear(512, hidden_dim)
        "w1": lin(ks[2], 128, 512),
        "b1": jnp.zeros((1, 512), jnp.float32),
        "w2": lin(ks[3], 512, hidden_dim),
        "b2": jnp.zeros((1, hidden_dim), jnp.float32),
    }


def _reference(x, edge_index, batch, params, num_graphs):
    """Pure-JAX reference of the PyTorch forward (f32 throughout)."""
    n = x.shape[0]
    src, dst = edge_index[0], edge_index[1]
    adj = jnp.zeros((n, n), jnp.float32).at[dst, src].add(1.0)
    deg = adj.sum(axis=1, keepdims=True)
    a = adj / jnp.maximum(deg, 1.0)
    h = a @ (x @ params["wl"]) + params["bl"] + x @ params["wr"]
    h = jnp.maximum(h, 0.0)
    h = jnp.maximum(h @ params["w1"] + params["b1"], 0.0)
    h = jax.nn.sigmoid(h @ params["w2"] + params["b2"])
    mask = batch[None, :] == jnp.arange(num_graphs, dtype=batch.dtype)[:, None]
    return jnp.max(jnp.where(mask[:, :, None], h[None], -jnp.inf), axis=1)


if __name__ == "__main__":
    key = jax.random.PRNGKey(0)
    k_x, k_p = jax.random.split(key)

    num_nodes = 16          # 2 graphs x 8 nodes
    input_dim = 8
    hidden_dim = 32
    num_graphs = 2

    x = jax.random.normal(k_x, (num_nodes, input_dim), jnp.float32)

    # Bidirectional ring edges within each graph of 8 nodes.
    edges = []
    for g in range(num_graphs):
        off = g * 8
        for i in range(8):
            a, b = off + i, off + (i + 1) % 8
            edges.append((a, b))
            edges.append((b, a))
    edge_index = jnp.array(edges, jnp.int32).T          # (2, E)
    batch = jnp.array([0] * 8 + [1] * 8, jnp.int32)     # (N,)

    params = init_params(k_p, input_dim, hidden_dim)

    out = gnn_forward(x, edge_index, batch, params, num_graphs)
    jax.block_until_ready(out)
    assert out.shape == (num_graphs, hidden_dim)

    ref = _reference(x, edge_index, batch, params, num_graphs)
    assert jnp.allclose(out, ref, atol=5e-2), float(jnp.max(jnp.abs(out - ref)))

    print("KERNEL_OK")
</pallas_src>

<mosaic_0001>
module attributes {stable_mosaic.version = 11 : i64} {
  func.func @_gnn_kernel(%arg0: i32, %arg1: i32, %arg2: memref<128x128xbf16, #tpu.memory_space<vmem>>, %arg3: memref<128x128xbf16, #tpu.memory_space<vmem>>, %arg4: memref<128x128xf32, #tpu.memory_space<vmem>>, %arg5: memref<128x512xbf16, #tpu.memory_space<vmem>>, %arg6: memref<1x512xf32, #tpu.memory_space<vmem>>, %arg7: memref<512x128xbf16, #tpu.memory_space<vmem>>, %arg8: memref<1x128xf32, #tpu.memory_space<vmem>>, %arg9: memref<128x1xi32, #tpu.memory_space<vmem>>, %arg10: memref<1x8x128xf32, #tpu.memory_space<vmem>>, %arg11: memref<128x128xf32, #tpu.memory_space<vmem>>) attributes {dimension_semantics = [#tpu.dimension_semantics<parallel>, #tpu.dimension_semantics<arbitrary>], iteration_bounds = array<i64: 1, 1>, scalar_prefetch = 0 : i64, scratch_operands = 1 : i64, tpu.core_type = #tpu.core_type<tc>, window_params = [{transform_indices = @transform_0, window_bounds = array<i64: 128, 128>}, {pipeline_mode = #tpu.pipeline_mode<synchronous>, transform_indices = @transform_1, window_bounds = array<i64: 128, 128>}, {transform_indices = @transform_2, window_bounds = array<i64: 128, 128>}, {pipeline_mode = #tpu.pipeline_mode<synchronous>, transform_indices = @transform_3, window_bounds = array<i64: 128, 512>}, {pipeline_mode = #tpu.pipeline_mode<synchronous>, transform_indices = @transform_4, window_bounds = array<i64: 1, 512>}, {pipeline_mode = #tpu.pipeline_mode<synchronous>, transform_indices = @transform_5, window_bounds = array<i64: 512, 128>}, {pipeline_mode = #tpu.pipeline_mode<synchronous>, transform_indices = @transform_6, window_bounds = array<i64: 1, 128>}, {transform_indices = @transform_7, window_bounds = array<i64: 128, 1>}, {transform_indices = @transform_8, window_bounds = array<i64: 1, 8, 128>}]} {
    %c0_i32 = arith.constant 0 : i32
    %0 = arith.cmpi eq, %arg1, %c0_i32 : i32
    %1 = arith.extui %0 : i1 to i32
    %c0_i32_0 = arith.constant 0 : i32
    %2 = arith.cmpi ne, %1, %c0_i32_0 : i32
    scf.if %2 {
      %cst_9 = arith.constant 0.000000e+00 : f32
      %15 = vector.broadcast %cst_9 : f32 to vector<128x128xf32>
      %c0_10 = arith.constant 0 : index
      %c0_11 = arith.constant 0 : index
      %16 = vector.load %arg11[%c0_10, %c0_11] : memref<128x128xf32, #tpu.memory_space<vmem>>, vector<128x128xf32>
      tpu.vector_store %arg11[%c0_10, %c0_11], %15 {strides = array<i32>} : memref<128x128xf32, #tpu.memory_space<vmem>>, vector<128x128xf32>,
    } else {
    }
    %c128_i32 = arith.constant 128 : i32
    %3 = arith.muli %arg1, %c128_i32 : i32
    %4 = tpu.assume_multiple %3, 128 : i32
    %5 = arith.index_cast %4 : i32 to index
    %c0 = arith.constant 0 : index
    %6 = vector.load %arg3[%5, %c0] : memref<128x128xbf16, #tpu.memory_space<vmem>>, vector<128x128xbf16>
    %c0_1 = arith.constant 0 : index
    %c0_2 = arith.constant 0 : index
    %7 = vector.load %arg11[%c0_1, %c0_2] : memref<128x128xf32, #tpu.memory_space<vmem>>, vector<128x128xf32>
    %c0_3 = arith.constant 0 : index
    %c0_4 = arith.constant 0 : index
    %8 = vector.load %arg2[%c0_3, %c0_4] : memref<128x128xbf16, #tpu.memory_space<vmem>>, vector<128x128xbf16>
    %cst = arith.constant dense<0.000000e+00> : vector<128x128xf32>
    %9 = tpu.matmul %8, %6, %cst {dimension_numbers = #tpu.dot_dimension_numbers<[1], [0], [0], [1], [0, 0, 1, 1], [], []>} : vector<128x128xbf16>, vector<128x128xbf16>, vector<128x128xf32> -> vector<128x128xf32>
    %10 = arith.addf %7, %9 : vector<128x128xf32>
    %c0_5 = arith.constant 0 : index
    %c0_6 = arith.constant 0 : index
    %11 = vector.load %arg11[%c0_5, %c0_6] : memref<128x128xf32, #tpu.memory_space<vmem>>, vector<128x128xf32>
    tpu.vector_store %arg11[%c0_5, %c0_6], %10 {strides = array<i32>} : memref<128x128xf32, #tpu.memory_space<vmem>>, vector<128x128xf32>,
    %c0_i32_7 = arith.constant 0 : i32
    %12 = arith.cmpi eq, %arg1, %c0_i32_7 : i32
    %13 = arith.extui %12 : i1 to i32
    %c0_i32_8 = arith.constant 0 : i32
    %14 = arith.cmpi ne, %13, %c0_i32_8 : i32
    scf.if %14 {
      %c0_9 = arith.constant 0 : index
      %c0_10 = arith.constant 0 : index
      %15 = vector.load %arg11[%c0_9, %c0_10] : memref<128x128xf32, #tpu.memory_space<vmem>>, vector<128x128xf32>
      %c0_11 = arith.constant 0 : index
      %c0_12 = arith.constant 0 : index
      %16 = vector.load %arg4[%c0_11, %c0_12] : memref<128x128xf32, #tpu.memory_space<vmem>>, vector<128x128xf32>
      %17 = arith.addf %15, %16 : vector<128x128xf32>
      %cst_13 = arith.constant 0.000000e+00 : f32
      %18 = vector.broadcast %cst_13 : f32 to vector<128x128xf32>
      %19 = arith.maximumf %17, %18 : vector<128x128xf32>
      %20 = arith.truncf %19 : vector<128x128xf32> to vector<128x128xbf16>
      %c0_14 = arith.constant 0 : index
      %c0_15 = arith.constant 0 : index
      %21 = vector.load %arg5[%c0_14, %c0_15] : memref<128x512xbf16, #tpu.memory_space<vmem>>, vector<128x512xbf16>
      %cst_16 = arith.constant dense<0.000000e+00> : vector<128x512xf32>
      %22 = tpu.matmul %20, %21, %cst_16 {dimension_numbers = #tpu.dot_dimension_numbers<[1], [0], [0], [1], [0, 0, 1, 1], [], []>} : vector<128x128xbf16>, vector<128x512xbf16>, vector<128x512xf32> -> vector<128x512xf32>
      %c0_17 = arith.constant 0 : index
      %c0_18 = arith.constant 0 : index
      %23 = vector.load %arg6[%c0_17, %c0_18] : memref<1x512xf32, #tpu.memory_space<vmem>>, vector<1x512xf32>
      %24 = vector.broadcast %23 : vector<1x512xf32> to vector<128x512xf32>
      %25 = arith.addf %22, %24 : vector<128x512xf32>
      %cst_19 = arith.constant 0.000000e+00 : f32
      %26 = vector.broadcast %cst_19 : f32 to vector<128x512xf32>
      %27 = arith.maximumf %25, %26 : vector<128x512xf32>
      %28 = arith.truncf %27 : vector<128x512xf32> to vector<128x512xbf16>
      %c0_20 = arith.constant 0 : index
      %c0_21 = arith.constant 0 : index
      %29 = vector.load %arg7[%c0_20, %c0_21] : memref<512x128xbf16, #tpu.memory_space<vmem>>, vector<512x128xbf16>
      %cst_22 = arith.constant dense<0.000000e+00> : vector<128x128xf32>
      %30 = tpu.matmul %28, %29, %cst_22 {dimension_numbers = #tpu.dot_dimension_numbers<[1], [0], [0], [1], [0, 0, 1, 1], [], []>} : vector<128x512xbf16>, vector<512x128xbf16>, vector<128x128xf32> -> vector<128x128xf32>
      %c0_23 = arith.constant 0 : index
      %c0_24 = arith.constant 0 : index
      %31 = vector.load %arg8[%c0_23, %c0_24] : memref<1x128xf32, #tpu.memory_space<vmem>>, vector<1x128xf32>
      %32 = vector.broadcast %31 : vector<1x128xf32> to vector<128x128xf32>
      %33 = arith.addf %30, %32 : vector<128x128xf32>
      %34 = arith.negf %33 : vector<128x128xf32>
      %35 = math.exp %34 : vector<128x128xf32>
      %cst_25 = arith.constant 1.000000e+00 : f32
      %36 = vector.broadcast %cst_25 : f32 to vector<128x128xf32>
      %37 = arith.addf %36, %35 : vector<128x128xf32>
      %38 = arith.divf %36, %37 : vector<128x128xf32>
      %c0_26 = arith.constant 0 : index
      %c0_27 = arith.constant 0 : index
      %39 = vector.load %arg9[%c0_26, %c0_27] : memref<128x1xi32, #tpu.memory_space<vmem>>, vector<128x1xi32>
      %c0_i32_28 = arith.constant 0 : i32
      %40 = vector.broadcast %c0_i32_28 : i32 to vector<128x1xi32>
      %41 = arith.cmpi eq, %39, %40 : vector<128x1xi32>
      %cst_29 = arith.constant 0xFF800000 : f32
      %42 = vector.shape_cast %41 : vector<128x1xi1> to vector<128x1xi1>
      %43 = vector.broadcast %42 : vector<128x1xi1> to vector<128x128xi1>
      %44 = vector.broadcast %cst_29 : f32 to vector<128x128xf32>
      %45 = arith.select %43, %38, %44 : vector<128x128xi1>, vector<128x128xf32>
      %cst_30 = arith.constant dense<0xFF800000> : vector<128xf32>
      %46 = vector.multi_reduction <maximumf>, %45, %cst_30 [0] : vector<128x128xf32> to vector<128xf32>
      %47 = vector.shape_cast %46 : vector<128xf32> to vector<1x128xf32>
      %c1_i32 = arith.constant 1 : i32
      %48 = vector.broadcast %c1_i32 : i32 to vector<128x1xi32>
      %49 = arith.cmpi eq, %39, %48 : vector<128x1xi32>
      %cst_31 = arith.constant 0xFF800000 : f32
      %50 = vector.shape_cast %49 : vector<128x1xi1> to vector<128x1xi1>
      %51 = vector.broadcast %50 : vector<128x1xi1> to vector<128x128xi1>
      %52 = vector.broadcast %cst_31 : f32 to vector<128x128xf32>
      %53 = arith.select %51, %38, %52 : vector<128x128xi1>, vector<128x128xf32>
      %cst_32 = arith.constant dense<0xFF800000> : vector<128xf32>
      %54 = vector.multi_reduction <maximumf>, %53, %cst_32 [0] : vector<128x128xf32> to vector<128xf32>
      %55 = vector.shape_cast %54 : vector<128xf32> to vector<1x128xf32>
      %c2_i32 = arith.constant 2 : i32
      %56 = vector.broadcast %c2_i32 : i32 to vector<128x1xi32>
      %57 = arith.cmpi eq, %39, %56 : vector<128x1xi32>
      %cst_33 = arith.constant 0xFF800000 : f32
      %58 = vector.shape_cast %57 : vector<128x1xi1> to vector<128x1xi1>
      %59 = vector.broadcast %58 : vector<128x1xi1> to vector<128x128xi1>
      %60 = vector.broadcast %cst_33 : f32 to vector<128x128xf32>
      %61 = arith.select %59, %38, %60 : vector<128x128xi1>, vector<128x128xf32>
      %cst_34 = arith.constant dense<0xFF800000> : vector<128xf32>
      %62 = vector.multi_reduction <maximumf>, %61, %cst_34 [0] : vector<128x128xf32> to vector<128xf32>
      %63 = vector.shape_cast %62 : vector<128xf32> to vector<1x128xf32>
      %c3_i32 = arith.constant 3 : i32
      %64 = vector.broadcast %c3_i32 : i32 to vector<128x1xi32>
      %65 = arith.cmpi eq, %39, %64 : vector<128x1xi32>
      %cst_35 = arith.constant 0xFF800000 : f32
      %66 = vector.shape_cast %65 : vector<128x1xi1> to vector<128x1xi1>
      %67 = vector.broadcast %66 : vector<128x1xi1> to vector<128x128xi1>
      %68 = vector.broadcast %cst_35 : f32 to vector<128x128xf32>
      %69 = arith.select %67, %38, %68 : vector<128x128xi1>, vector<128x128xf32>
      %cst_36 = arith.constant dense<0xFF800000> : vector<128xf32>
      %70 = vector.multi_reduction <maximumf>, %69, %cst_36 [0] : vector<128x128xf32> to vector<128xf32>
      %71 = vector.shape_cast %70 : vector<128xf32> to vector<1x128xf32>
      %c4_i32 = arith.constant 4 : i32
      %72 = vector.broadcast %c4_i32 : i32 to vector<128x1xi32>
      %73 = arith.cmpi eq, %39, %72 : vector<128x1xi32>
      %cst_37 = arith.constant 0xFF800000 : f32
      %74 = vector.shape_cast %73 : vector<128x1xi1> to vector<128x1xi1>
      %75 = vector.broadcast %74 : vector<128x1xi1> to vector<128x128xi1>
      %76 = vector.broadcast %cst_37 : f32 to vector<128x128xf32>
      %77 = arith.select %75, %38, %76 : vector<128x128xi1>, vector<128x128xf32>
      %cst_38 = arith.constant dense<0xFF800000> : vector<128xf32>
      %78 = vector.multi_reduction <maximumf>, %77, %cst_38 [0] : vector<128x128xf32> to vector<128xf32>
      %79 = vector.shape_cast %78 : vector<128xf32> to vector<1x128xf32>
      %c5_i32 = arith.constant 5 : i32
      %80 = vector.broadcast %c5_i32 : i32 to vector<128x1xi32>
      %81 = arith.cmpi eq, %39, %80 : vector<128x1xi32>
      %cst_39 = arith.constant 0xFF800000 : f32
      %82 = vector.shape_cast %81 : vector<128x1xi1> to vector<128x1xi1>
      %83 = vector.broadcast %82 : vector<128x1xi1> to vector<128x128xi1>
      %84 = vector.broadcast %cst_39 : f32 to vector<128x128xf32>
      %85 = arith.select %83, %38, %84 : vector<128x128xi1>, vector<128x128xf32>
      %cst_40 = arith.constant dense<0xFF800000> : vector<128xf32>
      %86 = vector.multi_reduction <maximumf>, %85, %cst_40 [0] : vector<128x128xf32> to vector<128xf32>
      %87 = vector.shape_cast %86 : vector<128xf32> to vector<1x128xf32>
      %c6_i32 = arith.constant 6 : i32
      %88 = vector.broadcast %c6_i32 : i32 to vector<128x1xi32>
      %89 = arith.cmpi eq, %39, %88 : vector<128x1xi32>
      %cst_41 = arith.constant 0xFF800000 : f32
      %90 = vector.shape_cast %89 : vector<128x1xi1> to vector<128x1xi1>
      %91 = vector.broadcast %90 : vector<128x1xi1> to vector<128x128xi1>
      %92 = vector.broadcast %cst_41 : f32 to vector<128x128xf32>
      %93 = arith.select %91, %38, %92 : vector<128x128xi1>, vector<128x128xf32>
      %cst_42 = arith.constant dense<0xFF800000> : vector<128xf32>
      %94 = vector.multi_reduction <maximumf>, %93, %cst_42 [0] : vector<128x128xf32> to vector<128xf32>
      %95 = vector.shape_cast %94 : vector<128xf32> to vector<1x128xf32>
      %c7_i32 = arith.constant 7 : i32
      %96 = vector.broadcast %c7_i32 : i32 to vector<128x1xi32>
      %97 = arith.cmpi eq, %39, %96 : vector<128x1xi32>
      %cst_43 = arith.constant 0xFF800000 : f32
      %98 = vector.shape_cast %97 : vector<128x1xi1> to vector<128x1xi1>
      %99 = vector.broadcast %98 : vector<128x1xi1> to vector<128x128xi1>
      %100 = vector.broadcast %cst_43 : f32 to vector<128x128xf32>
      %101 = arith.select %99, %38, %100 : vector<128x128xi1>, vector<128x128xf32>
      %cst_44 = arith.constant dense<0xFF800000> : vector<128xf32>
      %102 = vector.multi_reduction <maximumf>, %101, %cst_44 [0] : vector<128x128xf32> to vector<128xf32>
      %103 = vector.shape_cast %102 : vector<128xf32> to vector<1x128xf32>
      %104 = tpu.concatenate %47, %55, %63, %71, %79, %87, %95, %103 in 0 : vector<1x128xf32>, vector<1x128xf32>, vector<1x128xf32>, vector<1x128xf32>, vector<1x128xf32>, vector<1x128xf32>, vector<1x128xf32>, vector<1x128xf32> -> vector<8x128xf32>
      %c0_45 = arith.constant 0 : index
      %c0_46 = arith.constant 0 : index
      %c0_47 = arith.constant 0 : index
      %105 = vector.load %arg10[%c0_45, %c0_46, %c0_47] : memref<1x8x128xf32, #tpu.memory_space<vmem>>, vector<1x8x128xf32>
      %106 = vector.shape_cast %105 : vector<1x8x128xf32> to vector<8x128xf32>
      %107 = vector.shape_cast %104 : vector<8x128xf32> to vector<1x8x128xf32>
      tpu.vector_store %arg10[%c0_45, %c0_46, %c0_47], %107 {strides = array<i32>} : memref<1x8x128xf32, #tpu.memory_space<vmem>>, vector<1x8x128xf32>,
    } else {
    }
    return
  }
  func.func @transform_0(%arg0: i32, %arg1: i32) -> (i32, i32) {
    %c0_i32 = arith.constant 0 : i32
    return %arg0, %arg1 : i32, i32
  }
  func.func @transform_1(%arg0: i32, %arg1: i32) -> (i32, i32) {
    %c0_i32 = arith.constant 0 : i32
    %c0_i32_0 = arith.constant 0 : i32
    %c0_i32_1 = arith.constant 0 : i32
    return %c0_i32, %c0_i32_0 : i32, i32
  }
  func.func @transform_2(%arg0: i32, %arg1: i32) -> (i32, i32) {
    %c0_i32 = arith.constant 0 : i32
    %c0_i32_0 = arith.constant 0 : i32
    return %arg0, %c0_i32 : i32, i32
  }
  func.func @transform_3(%arg0: i32, %arg1: i32) -> (i32, i32) {
    %c0_i32 = arith.constant 0 : i32
    %c0_i32_0 = arith.constant 0 : i32
    %c0_i32_1 = arith.constant 0 : i32
    return %c0_i32, %c0_i32_0 : i32, i32
  }
  func.func @transform_4(%arg0: i32, %arg1: i32) -> (i32, i32) {
    %c0_i32 = arith.constant 0 : i32
    %c0_i32_0 = arith.constant 0 : i32
    %c0_i32_1 = arith.constant 0 : i32
    return %c0_i32, %c0_i32_0 : i32, i32
  }
  func.func @transform_5(%arg0: i32, %arg1: i32) -> (i32, i32) {
    %c0_i32 = arith.constant 0 : i32
    %c0_i32_0 = arith.constant 0 : i32
    %c0_i32_1 = arith.constant 0 : i32
    return %c0_i32, %c0_i32_0 : i32, i32
  }
  func.func @transform_6(%arg0: i32, %arg1: i32) -> (i32, i32) {
    %c0_i32 = arith.constant 0 : i32
    %c0_i32_0 = arith.constant 0 : i32
    %c0_i32_1 = arith.constant 0 : i32
    return %c0_i32, %c0_i32_0 : i32, i32
  }
  func.func @transform_7(%arg0: i32, %arg1: i32) -> (i32, i32) {
    %c0_i32 = arith.constant 0 : i32
    %c0_i32_0 = arith.constant 0 : i32
    return %arg0, %c0_i32 : i32, i32
  }
  func.func @transform_8(%arg0: i32, %arg1: i32) -> (i32, i32, i32) {
    %c0_i32 = arith.constant 0 : i32
    %c0_i32_0 = arith.constant 0 : i32
    %c0_i32_1 = arith.constant 0 : i32
    return %arg0, %c0_i32, %c0_i32_0 : i32, i32, i32
  }
}

</mosaic_0001>

<bundles_post_ra>
// kernel: tpu_custom_call.1
= control target key start
LH: loop header
LB: loop body
LE: loop exit
PB: predicated region body
PF: predicated region fallthrough
CT: control target
= control target key end

     0   :  { %13 = vsyncpa [#allocation4], 0  ;;  %s5133_s0 = inlined_call_operand.hbm [shape: bf16[128,128], index: 0, kind: input, shape index: {}]   ;;  %s5134_s1 = inlined_call_operand.hbm [shape: bf16[128,128], index: 1, kind: input, shape index: {}]   ;;  %s5135_s2 = inlined_call_operand.vmem [shape: f32[128,128], index: 2, kind: input, shape index: {}]   ;;  %s5136_s3 = inlined_call_operand.hbm [shape: bf16[128,512], index: 3, kind: input, shape index: {}]   ;;  %s5137_s4 = inlined_call_operand.vmem [shape: f32[1,512], index: 4, kind: input, shape index: {}]   ;;  %s5138_s5 = inlined_call_operand.hbm [shape: bf16[512,128], index: 5, kind: input, shape index: {}]   ;;  %s5139_s6 = inlined_call_operand.vmem [shape: f32[1,128], index: 6, kind: input, shape index: {}]   ;;  %s5140_s7 = inlined_call_operand.vmem [shape: s32[128,1], index: 7, kind: input, shape index: {}]   ;;  %s5141_s8 = inlined_call_operand.hbm [shape: f32[1,8,128], index: 8, kind: output, shape index: {}]  }
   0x1   :  { %14 = vsyncpa [#allocation7], 0 }
   0x2   :  { %15 = vsyncpa [#allocation10], 0 }
   0x3   :  { %16 = vsyncpa [#allocation5], 0  ;;  %s3257_s27 = smov [#allocation6]   ;;  %s3258_s29 = smov [#allocation3]  }
   0x4   :  { %s34_s28 = sshll.u32 %s3257_s27, 4  ;;  %s22_s30 = sshll.u32 %s3258_s29, 4  ;;  %s35_s28 = int_to_ptr.vmem [resolvable:$true] %s34_s28  ;;  %s3312_s30 = int_to_ptr.vmem [resolvable:$true] %s22_s30 }
   0x5   :  { %s3139_s11 = scalar_lea.hbm %s5134_s1, 1024 }
   0x6   :  { %p3140_p0 = scmp.ne.s32.totalorder %s5134_s1, %s3139_s11  ;;  %p3143_p1 = scmp.lt.u32.totalorder %s3139_s11, %s5134_s1 }
   0x8   :  { %p3145_p2 = pnand %p3143_p1, %p3140_p0 }
   0xa   :  { %3148 = shalt.err (!%p3145_p2)
}
   0xb   :  { %s3149_s16 = scalar_lea.vmem %s35_s28, 1024  ;;  %p3154_p4 = scmp.lt.s32.totalorder %s35_s28, %s35_s28 }
   0xc   :  { %p3150_p3 = scmp.ne.s32.totalorder %s35_s28, %s3149_s16  ;;  %p3155_p5 = scmp.lt.s32.totalorder %s3149_s16, %s3149_s16 }
   0xe   :  { %p3156_p6 = por %p3155_p5, %p3154_p4 }
  0x10   :  { %p3157_p7 = pnand %p3156_p6, %p3150_p3 }
  0x12   :  { %3160 = shalt.err (!%p3157_p7)
}
  0x13   :  { %s3259_s17 = smov 64   ;;  %s3260_s18 = smov 4  }
  0x14   :  { %40 = dma.hbm_to_vmem [thread:$0]  %s5134_s1, 1024, %s35_s28, [#allocation7], %s3259_s17, %s3259_s17, %s3260_s18  }
  0x15   :  { %s3161_s23 = scalar_lea.hbm %s5133_s0, 1024 }
  0x16   :  { %p3162_p8 = scmp.ne.s32.totalorder %s5133_s0, %s3161_s23  ;;  %p3165_p9 = scmp.lt.u32.totalorder %s3161_s23, %s5133_s0 }
  0x18   :  { %p3167_p10 = pnand %p3165_p9, %p3162_p8 }
  0x1a   :  { %3170 = shalt.err (!%p3167_p10)
}
  0x1b   :  { %s3171_s29 = scalar_lea.vmem %s3312_s30, 1024  ;;  %p3176_p12 = scmp.lt.s32.totalorder %s3312_s30, %s3312_s30 }
  0x1c   :  { %p3172_p11 = scmp.ne.s32.totalorder %s3312_s30, %s3171_s29  ;;  %p3177_p13 = scmp.lt.s32.totalorder %s3171_s29, %s3171_s29 }
  0x1e   :  { %p3178_p0 = por %p3177_p13, %p3176_p12 }
  0x20   :  { %p3179_p1 = pnand %p3178_p0, %p3172_p11 }
  0x22   :  { %3182 = shalt.err (!%p3179_p1)
}
  0x23   :  { %28 = dma.hbm_to_vmem [thread:$0]  %s5133_s0, 1024, %s3312_s30, [#allocation4], %s3259_s17, %s3259_s17, %s3260_s18  }
  0x24   :  { %s3261_s9 = smov [#allocation8]   ;;  %s3183_s13 = scalar_lea.hbm %s5136_s3, 4096 }
  0x25   :  { %s48_s10 = sshll.u32 %s3261_s9, 4  ;;  %p3184_p2 = scmp.ne.s32.totalorder %s5136_s3, %s3183_s13  ;;  %s49_s10 = int_to_ptr.vmem [resolvable:$true] %s48_s10 }
  0x26   :  { %p3187_p3 = scmp.lt.u32.totalorder %s3183_s13, %s5136_s3 }
  0x28   :  { %p3189_p4 = pnand %p3187_p3, %p3184_p2 }
  0x2a   :  { %3192 = shalt.err (!%p3189_p4)
}
  0x2b   :  { %s3193_s20 = scalar_lea.vmem %s49_s10, 4096  ;;  %p3198_p6 = scmp.lt.s32.totalorder %s49_s10, %s49_s10 }
  0x2c   :  { %p3194_p5 = scmp.ne.s32.totalorder %s49_s10, %s3193_s20  ;;  %p3199_p7 = scmp.lt.s32.totalorder %s3193_s20, %s3193_s20 }
  0x2e   :  { %p3200_p8 = por %p3199_p7, %p3198_p6 }
  0x30   :  { %p3201_p9 = pnand %p3200_p8, %p3194_p5 }
  0x32   :  { %3204 = shalt.err (!%p3201_p9)
}
  0x33   :  { %s3262_s0 = smov 256   ;;  %s3263_s30 = smov 16  }
  0x34   :  { %54 = dma.hbm_to_vmem [thread:$0]  %s5136_s3, 4096, %s49_s10, [#allocation7], %s3262_s0, %s3262_s0, %s3263_s30  }
  0x35   :  { %s3264_s23 = smov [#allocation9]   ;;  %s3205_s27 = scalar_lea.hbm %s5138_s5, 4096 }
  0x36   :  { %s62_s24 = sshll.u32 %s3264_s23, 4  ;;  %p3206_p10 = scmp.ne.s32.totalorder %s5138_s5, %s3205_s27  ;;  %s63_s24 = int_to_ptr.vmem [resolvable:$true] %s62_s24 }
  0x37   :  { %p3209_p11 = scmp.lt.u32.totalorder %s3205_s27, %s5138_s5 }
  0x39   :  { %p3211_p12 = pnand %p3209_p11, %p3206_p10 }
  0x3b   :  { %3214 = shalt.err (!%p3211_p12)
}
  0x3c   :  { %s3215_s11 = scalar_lea.vmem %s63_s24, 4096  ;;  %p3220_p0 = scmp.lt.s32.totalorder %s63_s24, %s63_s24 }
  0x3d   :  { %p3216_p13 = scmp.ne.s32.totalorder %s63_s24, %s3215_s11  ;;  %p3221_p1 = scmp.lt.s32.totalorder %s3215_s11, %s3215_s11 }
  0x3f   :  { %p3222_p2 = por %p3221_p1, %p3220_p0 }
  0x41   :  { %p3223_p3 = pnand %p3222_p2, %p3216_p13 }
  0x43   :  { %3226 = shalt.err (!%p3223_p3)
}
  0x44   :  { %68 = dma.hbm_to_vmem [thread:$0]  %s5138_s5, 4096, %s63_s24, [#allocation10], %s3259_s17, %s3259_s17, %s3260_s18  }
  0x45   :  { %3249 = dma.done.wait [#allocation4], 1024  }
  0x46   :  { %3250 = vsyncadd [#allocation4], 4294966272 }
  0x47   :  { %3251 = dma.done.wait [#allocation7], 5120  }
  0x48   :  { %3252 = vsyncadd [#allocation7], 4294962176 }
  0x49   :  { %3253 = dma.done.wait [#allocation10], 4096  }
  0x4a   :  { %3254 = vsyncadd [#allocation10], 4294963200  ;;  %v3265_v0 = vmov 0   ;;  %v2963_v1 = vld [vmem:[#allocation6] sm:$0xff]   ;;  %v2964_v2 = vld [vmem:[#allocation6 + $0x8] sm:$0xff]  }
  0x4b   :  { %2962 = vset.pattern.permute.xlu1 %v3265_v0  ;;  %2961 = vset.pattern.permute.xlu0 %v3265_v0  ;;  %v2965_v3 = vld [vmem:[#allocation6 + $0x10] sm:$0xff]   ;;  %v2966_v4 = vld [vmem:[#allocation6 + $0x18] sm:$0xff]   ;;  %v2971_v5 = vld [vmem:[#allocation3] sm:$0xff]  }
  0x4c   :  { %705 = vmatprep.mubr.bf16.mxu1 %v3265_v0  ;;  %2903 = vmatprep.subr.bf16.mxu0 %v2963_v1  ;;  %v2967_v6 = vld [vmem:[#allocation6 + $0x20] sm:$0xff]   ;;  %v2968_v7 = vld [vmem:[#allocation6 + $0x28] sm:$0xff]   ;;  %v3382_v8 = vld [vmem:[%s5140_s7 + $0x10] sm:$0xff] }
  0x4d   :  { %2904 = vmatpush3.bf16.msra.mxu0 %v2963_v1  ;;  %2919 = vmatprep.mubr.bf16.mxu0 %v2971_v5  ;;  %v3387_v9 = vld [vmem:[%s5140_s7] sm:$0xff]  ;;  %v3392_v10 = vld [vmem:[%s5140_s7 + $0x18] sm:$0xff]  ;;  %vm1566_vm0 = vcmp.eq.s32.totalorder %v3382_v8, 0  ;;  %v3400_v11 = vld [vmem:[%s5140_s7 + $0x8] sm:$0xff] }
  0x4e   :  { %2905 = vmatprep.subr.bf16.mxu0 %v2964_v2  ;;  %vm1564_vm1 = vcmp.eq.s32.totalorder %v3387_v9, 0  ;;  %vm1567_vm2 = vcmp.eq.s32.totalorder %v3392_v10, 0  ;;  %v1582_v12 = vsel %vm1566_vm0, 1, %v3265_v0  ;;  %vm1565_vm3 = vcmp.eq.s32.totalorder %v3400_v11, 0  ;;  %v3408_v14 = vld [vmem:[%s5140_s7 + $0x28] sm:$0xff]  ;;  %v3413_v15 = vld [vmem:[%s5140_s7 + $0x20] sm:$0xff] }
  0x4f   :  { %v1580_v13 = vsel %vm1564_vm1, 1, %v3265_v0  ;;  %1603 = vperm.xlu1 %2962, %v1582_v12   ;;  %v2969_v16 = vld [vmem:[#allocation6 + $0x30] sm:$0xff]   ;;  %v1583_v17 = vsel %vm1567_vm2, 1, %v3265_v0  ;;  %v1581_v18 = vsel %vm1565_vm3, 1, %v3265_v0  ;;  %vm1569_vm4 = vcmp.eq.s32.totalorder %v3408_v14, 0  ;;  %v3422_v19 = vld [vmem:[%s5140_s7 + $0x38] sm:$0xff] }
  0x50   :  { %1597 = vperm.xlu0 %2961, %v1580_v13   ;;  %vm1568_vm5 = vcmp.eq.s32.totalorder %v3413_v15, 0  ;;  %v3427_v20 = vld [vmem:[%s5140_s7 + $0x30] sm:$0xff]  ;;  %v2970_v21 = vld [vmem:[#allocation6 + $0x38] sm:$0xff]   ;;  %v1585_v22 = vsel %vm1569_vm4, 1, %v3265_v0  ;;  %vm1571_vm6 = vcmp.eq.s32.totalorder %v3422_v19, 0  ;;  %v3436_v25 = vld [vmem:[%s5140_s7 + $0x48] sm:$0xff] }
  0x51   :  { %2906 = vmatpush3.bf16.msra.mxu0 %v2964_v2  ;;  %v2979_v23 = vld [vmem:[#allocation8 + $0x4] ss:$16 sps:$4 sm:$0xff]   ;;  %v1584_v24 = vsel %vm1568_vm5, 1, %v3265_v0  ;;  %vm1570_vm7 = vcmp.eq.s32.totalorder %v3427_v20, 0  ;;  %v3446_v27 = vld [vmem:[%s5140_s7 + $0x58] sm:$0xff]  ;;  %v2972_v28 = vld [vmem:[#allocation3 + $0x8] sm:$0xff]  }
  0x52   :  { %2907 = vmatprep.subr.bf16.mxu0 %v2965_v3  ;;  %673 = vmatprep.subr.bf16.mxu1 %v2979_v23  ;;  %v3441_v26 = vld [vmem:[%s5140_s7 + $0x40] sm:$0xff]  ;;  %v1587_v29 = vsel %vm1571_vm6, 1, %v3265_v0  ;;  %v2983_v30 = vld [vmem:[#allocation8 + $0xc] ss:$16 sps:$4 sm:$0xff]   ;;  %v1586_v32 = vsel %vm1570_vm7, 1, %v3265_v0  ;;  %vm1573_vm8 = vcmp.eq.s32.totalorder %v3436_v25, 0 }
  0x53   :  { %1606 = vperm.xlu1 %2962, %v1583_v17   ;;  %v2984_v31 = vld [vmem:[#allocation8] ss:$16 sps:$4 sm:$0xff]   ;;  %vm1572_vm9 = vcmp.eq.s32.totalorder %v3441_v26, 0  ;;  %vm1575_vm10 = vcmp.eq.s32.totalorder %v3446_v27, 0  ;;  %v3461_v35 = vld [vmem:[%s5140_s7 + $0x68] sm:$0xff]  ;;  %v1589_v38 = vsel %vm1573_vm8, 1, %v3265_v0 }
  0x54   :  { %1600 = vperm.xlu0 %2961, %v1581_v18   ;;  %v3454_v33 = vld [vmem:[%s5140_s7 + $0x50] sm:$0xff]  ;;  %674 = vmatpush1.bf16.msra.mxu1 %v2984_v31  ;;  %v3466_v37 = vld [vmem:[%s5140_s7 + $0x60] sm:$0xff]  ;;  %v3473_v39 = vld [vmem:[%s5140_s7 + $0x78] sm:$0xff]  ;;  %v1588_v42 = vsel %vm1572_vm9, 1, %v3265_v0  ;;  %v1591_v43 = vsel %vm1575_vm10, 1, %v3265_v0  ;;  %vm1577_vm12 = vcmp.eq.s32.totalorder %v3461_v35, 0 }
  0x55   :  { %2908 = vmatpush3.bf16.msra.mxu0 %v2965_v3  ;;  %v2973_v34 = vld [vmem:[#allocation3 + $0x10] sm:$0xff]   ;;  %vm1574_vm11 = vcmp.eq.s32.totalorder %v3454_v33, 0  ;;  %v2981_v41 = vld [vmem:[#allocation8 + $0x8] ss:$16 sps:$4 sm:$0xff]   ;;  %v2989_v44 = vld [vmem:[#allocation8 + $0x2c] ss:$16 sps:$4 sm:$0xff]  }
  0x56   :  { %2909 = vmatprep.subr.bf16.mxu0 %v2966_v4  ;;  %v2985_v36 = vld [vmem:[#allocation8 + $0x24] ss:$16 sps:$4 sm:$0xff]   ;;  %v2990_v45 = vld [vmem:[#allocation8 + $0x20] ss:$16 sps:$4 sm:$0xff]   ;;  %vm1576_vm13 = vcmp.eq.s32.totalorder %v3466_v37, 0  ;;  %v1590_v47 = vsel %vm1574_vm11, 1, %v3265_v0 }
  0x57   :  { %1612 = vperm.xlu1 %2962, %v1585_v22   ;;  %v3478_v40 = vld [vmem:[%s5140_s7 + $0x70] sm:$0xff]  ;;  %675 = vmatprep.subr.bf16.mxu1 %v2985_v36  ;;  %vm1579_vm14 = vcmp.eq.s32.totalorder %v3473_v39, 0  ;;  %vm1698_vm0 = vcmp.eq.s32.totalorder %v3400_v11, 1  ;;  %v2974_v48 = vld [vmem:[#allocation3 + $0x18] sm:$0xff]   ;;  %vm1697_vm1 = vcmp.eq.s32.totalorder %v3387_v9, 1  ;;  %vm1700_vm2 = vcmp.eq.s32.totalorder %v3392_v10, 1 }
  0x58   :  { %1609 = vperm.xlu0 %2961, %v1584_v24   ;;  %v2991_v46 = vld [vmem:[#allocation8 + $0x44] ss:$16 sps:$4 sm:$0xff]   ;;  %vm1578_vm15 = vcmp.eq.s32.totalorder %v3478_v40, 0  ;;  %v2987_v49 = vld [vmem:[#allocation8 + $0x28] ss:$16 sps:$4 sm:$0xff]   ;;  %v1593_v51 = vsel %vm1577_vm12, 1, %v3265_v0  ;;  %676 = vmatpush1.bf16.msra.mxu1 %v2990_v45 }
  0x59   :  { %2910 = vmatpush3.bf16.msra.mxu0 %v2966_v4  ;;  %v2995_v50 = vld [vmem:[#allocation8 + $0x4c] ss:$16 sps:$4 sm:$0xff]   ;;  %v1592_v52 = vsel %vm1576_vm13, 1, %v3265_v0  ;;  %v2996_v53 = vld [vmem:[#allocation8 + $0x40] ss:$16 sps:$4 sm:$0xff]   ;;  %v1595_v54 = vsel %vm1579_vm14, 1, %v3265_v0  ;;  %677 = vmatprep.subr.bf16.mxu1 %v2991_v46 }
  0x5a   :  { %2911 = vmatprep.subr.bf16.mxu0 %v2967_v6  ;;  %v1594_v55 = vsel %vm1578_vm15, 1, %v3265_v0  ;;  %v2997_v56 = vld [vmem:[#allocation8 + $0x64] ss:$16 sps:$4 sm:$0xff]   ;;  %v1714_v58 = vsel %vm1698_vm0, 1, %v3265_v0  ;;  %v1713_v59 = vsel %vm1697_vm1, 1, %v3265_v0  ;;  %v1716_v60 = vsel %vm1700_vm2, 1, %v3265_v0 }
  0x5b   :  { %1618 = vperm.xlu1 %2962, %v1587_v29   ;;  %v2975_v57 = vld [vmem:[#allocation3 + $0x20] sm:$0xff]   ;;  %vm1699_vm3 = vcmp.eq.s32.totalorder %v3382_v8, 1  ;;  %vm1702_vm4 = vcmp.eq.s32.totalorder %v3408_v14, 1  ;;  %vm1701_vm5 = vcmp.eq.s32.totalorder %v3413_v15, 1  ;;  %v2993_v61 = vld [vmem:[#allocation8 + $0x48] ss:$16 sps:$4 sm:$0xff]  }
  0x5c   :  { %1615 = vperm.xlu0 %2961, %v1586_v32   ;;  %vm1704_vm6 = vcmp.eq.s32.totalorder %v3422_v19, 1  ;;  %678 = vmatpush1.bf16.msra.mxu1 %v2996_v53  ;;  %v3001_v62 = vld [vmem:[#allocation8 + $0x6c] ss:$16 sps:$4 sm:$0xff]   ;;  %v3002_v63 = vld [vmem:[#allocation8 + $0x60] ss:$16 sps:$4 sm:$0xff]   ;;  %vm1703_vm7 = vcmp.eq.s32.totalorder %v3427_v20, 1 }
  0x5d   :  { %2912 = vmatpush3.bf16.msra.mxu0 %v2967_v6  ;;  %vm1706_vm8 = vcmp.eq.s32.totalorder %v3436_v25, 1  ;;  %679 = vmatprep.subr.bf16.mxu1 %v2997_v56  ;;  %v3003_v1 = vld [vmem:[#allocation8 + $0x84] ss:$16 sps:$4 sm:$0xff]   ;;  %vm1705_vm9 = vcmp.eq.s32.totalorder %v3441_v26, 1  ;;  %vm1708_vm10 = vcmp.eq.s32.totalorder %v3446_v27, 1  ;;  %v2976_v3 = vld [vmem:[#allocation3 + $0x28] sm:$0xff]  }
  0x5e   :  { %2913 = vmatprep.subr.bf16.mxu0 %v2968_v7  ;;  %v2999_v2 = vld [vmem:[#allocation8 + $0x68] ss:$16 sps:$4 sm:$0xff]   ;;  %v3007_v4 = vld [vmem:[#allocation8 + $0x8c] ss:$16 sps:$4 sm:$0xff]   ;;  %v3008_v5 = vld [vmem:[#allocation8 + $0x80] ss:$16 sps:$4 sm:$0xff]  }
  0x5f   :  { %1624 = vperm.xlu1 %2962, %v1589_v38   ;;  %v3009_v6 = vld [vmem:[#allocation8 + $0xa4] ss:$16 sps:$4 sm:$0xff]   ;;  %v1715_v12 = vsel %vm1699_vm3, 1, %v3265_v0  ;;  %v1718_v13 = vsel %vm1702_vm4, 1, %v3265_v0  ;;  %v1720_v17 = vsel %vm1704_vm6, 1, %v3265_v0  ;;  %v1719_v18 = vsel %vm1703_vm7, 1, %v3265_v0 }
  0x60   :  { %1621 = vperm.xlu0 %2961, %v1588_v42   ;;  %680 = vmatpush1.bf16.msra.mxu1 %v3002_v63  ;;  %v3005_v22 = vld [vmem:[#allocation8 + $0x88] ss:$16 sps:$4 sm:$0xff]   ;;  %v1721_v23 = vsel %vm1705_vm9, 1, %v3265_v0  ;;  %v1724_v24 = vsel %vm1708_vm10, 1, %v3265_v0  ;;  %v3014_v29 = vld [vmem:[#allocation8 + $0xa0] ss:$16 sps:$4 sm:$0xff]  }
  0x61   :  { %2914 = vmatpush3.bf16.msra.mxu0 %v2968_v7  ;;  %v2977_v7 = vld [vmem:[#allocation3 + $0x30] sm:$0xff]   ;;  %681 = vmatprep.subr.bf16.mxu1 %v3003_v1  ;;  %v2978_v31 = vld [vmem:[#allocation3 + $0x38] sm:$0xff]   ;;  %vm1707_vm11 = vcmp.eq.s32.totalorder %v3454_v33, 1  ;;  %vm1710_vm12 = vcmp.eq.s32.totalorder %v3461_v35, 1  ;;  %vm1709_vm13 = vcmp.eq.s32.totalorder %v3466_v37, 1  ;;  %vm1712_vm14 = vcmp.eq.s32.totalorder %v3473_v39, 1 }
  0x62   :  { %2915 = vmatprep.subr.bf16.mxu0 %v2969_v16  ;;  %v1723_v32 = vsel %vm1707_vm11, 1, %v3265_v0  ;;  %v1725_v36 = vsel %vm1709_vm13, 1, %v3265_v0  ;;  %vm1711_vm15 = vcmp.eq.s32.totalorder %v3478_v40, 1  ;;  %v1728_v38 = vsel %vm1712_vm14, 1, %v3265_v0  ;;  %v3017_v53 = vld [vmem:[#allocation8 + $0xc8] ss:$16 sps:$4 sm:$0xff]  }
  0x63   :  { %1630 = vperm.xlu1 %2962, %v1591_v43   ;;  %vm1831_vm0 = vcmp.eq.s32.totalorder %v3400_v11, 2  ;;  %vm1830_vm1 = vcmp.eq.s32.totalorder %v3387_v9, 2  ;;  %vm1833_vm2 = vcmp.eq.s32.totalorder %v3392_v10, 2  ;;  %vm1832_vm3 = vcmp.eq.s32.totalorder %v3382_v8, 2  ;;  %v3021_v56 = vld [vmem:[#allocation8 + $0xe4] ss:$16 sps:$4 sm:$0xff]  }
  0x64   :  { %1627 = vperm.xlu0 %2961, %v1590_v47   ;;  %682 = vmatpush1.bf16.msra.mxu1 %v3008_v5  ;;  %v1847_v42 = vsel %vm1831_vm0, 1, %v3265_v0  ;;  %v1846_v43 = vsel %vm1830_vm1, 1, %v3265_v0  ;;  %v1848_v45 = vsel %vm1832_vm3, 1, %v3265_v0  ;;  %vm1835_vm4 = vcmp.eq.s32.totalorder %v3408_v14, 2 }
  0x65   :  { %2916 = vmatpush3.bf16.msra.mxu0 %v2969_v16  ;;  %v1717_v16 = vsel %vm1701_vm5, 1, %v3265_v0  ;;  %683 = vmatprep.subr.bf16.mxu1 %v3009_v6  ;;  %vm1834_vm5 = vcmp.eq.s32.totalorder %v3413_v15, 2  ;;  %v1851_v46 = vsel %vm1835_vm4, 1, %v3265_v0  ;;  %vm1837_vm6 = vcmp.eq.s32.totalorder %v3422_v19, 2 }
  0x66   :  { %2917 = vmatprep.subr.bf16.mxu0 %v2970_v21  ;;  %v1850_v47 = vsel %vm1834_vm5, 1, %v3265_v0  ;;  %vm1836_vm7 = vcmp.eq.s32.totalorder %v3427_v20, 2  ;;  %vm1838_vm9 = vcmp.eq.s32.totalorder %v3441_v26, 2  ;;  %vm1841_vm10 = vcmp.eq.s32.totalorder %v3446_v27, 2 }
  0x67   :  { %1636 = vperm.xlu1 %2962, %v1593_v51   ;;  %vm1840_vm11 = vcmp.eq.s32.totalorder %v3454_v33, 2  ;;  %vm1842_vm13 = vcmp.eq.s32.totalorder %v3466_v37, 2  ;;  %vm1845_vm14 = vcmp.eq.s32.totalorder %v3473_v39, 2  ;;  %vm1964_vm0 = vcmp.eq.s32.totalorder %v3400_v11, 3 }
  0x68   :  { %1633 = vperm.xlu0 %2961, %v1592_v52   ;;  %684 = vmatpush1.bf16.msra.mxu1 %v3014_v29  ;;  %v1854_v52 = vsel %vm1838_vm9, 1, %v3265_v0  ;;  %v1858_v63 = vsel %vm1842_vm13, 1, %v3265_v0  ;;  %v1861_v1 = vsel %vm1845_vm14, 1, %v3265_v0  ;;  %vm1963_vm1 = vcmp.eq.s32.totalorder %v3387_v9, 3 }
  0x69   :  { %2918 = vmatpush3.bf16.msra.mxu0 %v2970_v21  ;;  %v1722_v21 = vsel %vm1706_vm8, 1, %v3265_v0  ;;  %vm1839_vm8 = vcmp.eq.s32.totalorder %v3436_v25, 2  ;;  %vm1965_vm3 = vcmp.eq.s32.totalorder %v3382_v8, 3  ;;  %vm1968_vm4 = vcmp.eq.s32.totalorder %v3408_v14, 3 }
  0x6a   :  { %786 = vmatprep.subr.bf16.mxu0 %v2983_v30  ;;  %v3011_v30 = vld [vmem:[#allocation8 + $0xa8] ss:$16 sps:$4 sm:$0xff]   ;;  %v1855_v51 = vsel %vm1839_vm8, 1, %v3265_v0  ;;  %v1981_v6 = vsel %vm1965_vm3, 1, %v3265_v0  ;;  %vm1967_vm5 = vcmp.eq.s32.totalorder %v3413_v15, 3  ;;  %vm1972_vm8 = vcmp.eq.s32.totalorder %v3436_v25, 3 }
  0x6b   :  { %1642 = vperm.xlu1 %2962, %v1595_v54   ;;  %v3019_v54 = vld [vmem:[#allocation8 + $0xcc] ss:$16 sps:$4 sm:$0xff]   ;;  %vm1971_vm9 = vcmp.eq.s32.totalorder %v3441_v26, 3  ;;  %vm1975_vm13 = vcmp.eq.s32.totalorder %v3466_v37, 3  ;;  %vm1978_vm14 = vcmp.eq.s32.totalorder %v3473_v39, 3  ;;  %vm2098_vm3 = vcmp.eq.s32.totalorder %v3382_v8, 4 }
  0x6c   :  { %2920 = vmatmul.mubr.bf16.vlgmr.msra.gmra.mrb[0].mxu0 %v2972_v28  ;;  %v3013_v28 = vld [vmem:[#allocation8 + $0xac] ss:$16 sps:$4 sm:$0xff]   ;;  %1639 = vperm.xlu0 %2961, %v1594_v55   ;;  %v3020_v55 = vld [vmem:[#allocation8 + $0xc0] ss:$16 sps:$4 sm:$0xff]  }
  0x6d   :  { %2923 = vmatprep.mubr.bf16.mxu0 %v2973_v34  ;;  %787 = vmatpush1.bf16.msra.mxu0 %v2981_v41  ;;  %v1726_v34 = vsel %vm1710_vm12, 1, %v3265_v0  ;;  %v1727_v41 = vsel %vm1711_vm15, 1, %v3265_v0  ;;  %vm1843_vm12 = vcmp.eq.s32.totalorder %v3461_v35, 2  ;;  %vm1844_vm15 = vcmp.eq.s32.totalorder %v3478_v40, 2 }
  0x6e   :  { %788 = vmatprep.subr.bf16.mxu0 %v2989_v44  ;;  %v1849_v44 = vsel %vm1833_vm2, 1, %v3265_v0  ;;  %vm1966_vm2 = vcmp.eq.s32.totalorder %v3392_v10, 3 }
  0x6f   :  { %1733 = vperm.xlu1 %2962, %v1714_v58   ;;  %v1857_v58 = vsel %vm1841_vm10, 1, %v3265_v0  ;;  %v1982_v5 = vsel %vm1966_vm2, 1, %v3265_v0  ;;  %vm1974_vm10 = vcmp.eq.s32.totalorder %v3446_v27, 3  ;;  %vm2099_vm2 = vcmp.eq.s32.totalorder %v3392_v10, 4 }
  0x70   :  { %1730 = vperm.xlu0 %2961, %v1713_v59   ;;  %v1856_v59 = vsel %vm1840_vm11, 1, %v3265_v0  ;;  %vm1973_vm11 = vcmp.eq.s32.totalorder %v3454_v33, 3 }
  0x71   :  { %789 = vmatpush1.bf16.msra.mxu0 %v2987_v49  ;;  %v1852_v49 = vsel %vm1836_vm7, 1, %v3265_v0  ;;  %vm1969_vm7 = vcmp.eq.s32.totalorder %v3427_v20, 3 }
  0x72   :  { %790 = vmatprep.subr.bf16.mxu0 %v2995_v50  ;;  %v3015_v50 = vld [vmem:[#allocation8 + $0xc4] ss:$16 sps:$4 sm:$0xff]  }
  0x73   :  { %1739 = vperm.xlu1 %2962, %v1716_v60   ;;  %685 = vmatprep.subr.bf16.mxu1 %v3015_v50  ;;  %v3023_v60 = vld [vmem:[#allocation8 + $0xe8] ss:$16 sps:$4 sm:$0xff]   ;;  %v3644_v50 = vld [vmem:[#allocation9 + $0xc0] sm:$0xff]  }
  0x74   :  { %2924 = vmatmul.mubr.bf16.gmra.mrb[4].mxu0 %v2974_v48  ;;  %1736 = vperm.xlu0 %2961, %v1715_v12   ;;  %v1853_v48 = vsel %vm1837_vm6, 1, %v3265_v0  ;;  %v1983_v12 = vsel %vm1967_vm5, 1, %v3265_v0  ;;  %vm1970_vm6 = vcmp.eq.s32.totalorder %v3422_v19, 3  ;;  %vm2100_vm5 = vcmp.eq.s32.totalorder %v3413_v15, 4 }
  0x75   :  { %2927 = vmatprep.mubr.bf16.mxu0 %v2975_v57  ;;  %791 = vmatpush1.bf16.msra.mxu0 %v2993_v61  ;;  %v3025_v57 = vld [vmem:[#allocation8 + $0xec] ss:$16 sps:$4 sm:$0xff]   ;;  %v3026_v61 = vld [vmem:[#allocation8 + $0xe0] ss:$16 sps:$4 sm:$0xff]  }
  0x76   :  { %792 = vmatprep.subr.bf16.mxu0 %v3001_v62  ;;  %686 = vmatpush1.bf16.msra.mxu1 %v3020_v55  ;;  %v1859_v62 = vsel %vm1843_vm12, 1, %v3265_v0  ;;  %vm1976_vm12 = vcmp.eq.s32.totalorder %v3461_v35, 3 }
  0x77   :  { %1745 = vperm.xlu1 %2962, %v1718_v13   ;;  %687 = vmatprep.subr.bf16.mxu1 %v3021_v56  ;;  %v1986_v13 = vsel %vm1970_vm6, 1, %v3265_v0  ;;  %vm2103_vm6 = vcmp.eq.s32.totalorder %v3422_v19, 4 }
  0x78   :  { %1742 = vperm.xlu0 %2961, %v1717_v16   ;;  %v1985_v16 = vsel %vm1969_vm7, 1, %v3265_v0  ;;  %vm2102_vm7 = vcmp.eq.s32.totalorder %v3427_v20, 4 }
  0x79   :  { %793 = vmatpush1.bf16.msra.mxu0 %v2999_v2  ;;  %v1860_v2 = vsel %vm1844_vm15, 1, %v3265_v0  ;;  %vm1977_vm15 = vcmp.eq.s32.totalorder %v3478_v40, 3 }
  0x7a   :  { %794 = vmatprep.subr.bf16.mxu0 %v3007_v4  ;;  %688 = vmatpush1.bf16.msra.mxu1 %v3026_v61  ;;  %v1979_v4 = vsel %vm1963_vm1, 1, %v3265_v0  ;;  %v1993_v29 = vsel %vm1977_vm15, 1, %v3265_v0  ;;  %vm2096_vm1 = vcmp.eq.s32.totalorder %v3387_v9, 4  ;;  %vm2110_vm15 = vcmp.eq.s32.totalorder %v3478_v40, 4 }
  0x7b   :  { %1751 = vperm.xlu1 %2962, %v1720_v17   ;;  %v1988_v17 = vsel %vm1972_vm8, 1, %v3265_v0  ;;  %vm2105_vm8 = vcmp.eq.s32.totalorder %v3436_v25, 4 }
  0x7c   :  { %2928 = vmatmul.mubr.bf16.gmra.mrb[8].mxu0 %v2976_v3  ;;  %1748 = vperm.xlu0 %2961, %v1719_v18   ;;  %v1980_v3 = vsel %vm1964_vm0, 1, %v3265_v0  ;;  %v1987_v18 = vsel %vm1971_vm9, 1, %v3265_v0  ;;  %vm2097_vm0 = vcmp.eq.s32.totalorder %v3400_v11, 4  ;;  %vm2104_vm9 = vcmp.eq.s32.totalorder %v3441_v26, 4 }
  0x7d   :  { %2931 = vmatprep.mubr.bf16.mxu0 %v2977_v7  ;;  %795 = vmatpush1.bf16.msra.mxu0 %v3005_v22  ;;  %v1984_v7 = vsel %vm1968_vm4, 1, %v3265_v0  ;;  %v1989_v22 = vsel %vm1973_vm11, 1, %v3265_v0  ;;  %vm2101_vm4 = vcmp.eq.s32.totalorder %v3408_v14, 4  ;;  %vm2106_vm11 = vcmp.eq.s32.totalorder %v3454_v33, 4 }
  0x7e   :  { %796 = vmatprep.subr.bf16.mxu0 %v3013_v28  ;;  %v1994_v28 = vsel %vm1978_vm14, 1, %v3265_v0  ;;  %vm2111_vm14 = vcmp.eq.s32.totalorder %v3473_v39, 4 }
  0x7f   :  { %1757 = vperm.xlu1 %2962, %v1722_v21   ;;  %v1990_v21 = vsel %vm1974_vm10, 1, %v3265_v0  ;;  %vm2107_vm10 = vcmp.eq.s32.totalorder %v3446_v27, 4 }
  0x80   :  { %1754 = vperm.xlu0 %2961, %v1721_v23   ;;  %v1992_v23 = vsel %vm1976_vm12, 1, %v3265_v0  ;;  %vm2109_vm12 = vcmp.eq.s32.totalorder %v3461_v35, 4 }
  0x81   :  { %797 = vmatpush1.bf16.msra.mxu0 %v3011_v30  ;;  %v2113_v30 = vsel %vm2097_vm0, 1, %v3265_v0  ;;  %vm2230_vm0 = vcmp.eq.s32.totalorder %v3400_v11, 5 }
  0x82   :  { %798 = vmatprep.subr.bf16.mxu0 %v3019_v54 }
  0x83   :  { %1763 = vperm.xlu1 %2962, %v1724_v24   ;;  %v1991_v24 = vsel %vm1975_vm13, 1, %v3265_v0  ;;  %vm2108_vm13 = vcmp.eq.s32.totalorder %v3466_v37, 4 }
  0x84   :  { %2932 = vmatmul.mubr.bf16.gmra.mrb[12].mxu0 %v2978_v31  ;;  %1760 = vperm.xlu0 %2961, %v1723_v32   ;;  %v2112_v31 = vsel %vm2096_vm1, 1, %v3265_v0  ;;  %v2115_v32 = vsel %vm2099_vm2, 1, %v3265_v0  ;;  %vm2229_vm1 = vcmp.eq.s32.totalorder %v3387_v9, 5  ;;  %vm2232_vm2 = vcmp.eq.s32.totalorder %v3392_v10, 5 }
  0x85   :  { %818 = vmatprep.mubr.bf16.mxu0 %v3265_v0  ;;  %799 = vmatpush1.bf16.msra.mxu0 %v3017_v53  ;;  %v2246_v53 = vsel %vm2230_vm0, 1, %v3265_v0  ;;  %v2245_v54 = vsel %vm2229_vm1, 1, %v3265_v0  ;;  %v2248_v55 = vsel %vm2232_vm2, 1, %v3265_v0  ;;  %vm2363_vm0 = vcmp.eq.s32.totalorder %v3400_v11, 6 }
  0x86   :  { %800 = vmatprep.subr.bf16.mxu0 %v3025_v57  ;;  %vm2362_vm1 = vcmp.eq.s32.totalorder %v3387_v9, 6  ;;  %vm2365_vm2 = vcmp.eq.s32.totalorder %v3392_v10, 6 }
  0x87   :  { %1769 = vperm.xlu1 %2962, %v1726_v34   ;;  %v2114_v34 = vsel %vm2098_vm3, 1, %v3265_v0  ;;  %vm2231_vm3 = vcmp.eq.s32.totalorder %v3382_v8, 5  ;;  %v2381_v9 = vsel %vm2365_vm2, 1, %v3265_v0 }
  0x88   :  { %1766 = vperm.xlu0 %2961, %v1725_v36   ;;  %v2117_v36 = vsel %vm2101_vm4, 1, %v3265_v0  ;;  %v2247_v56 = vsel %vm2231_vm3, 1, %v3265_v0  ;;  %vm2234_vm4 = vcmp.eq.s32.totalorder %v3408_v14, 5  ;;  %vm2364_vm3 = vcmp.eq.s32.totalorder %v3382_v8, 6 }
  0x89   :  { %801 = vmatpush1.bf16.msra.mxu0 %v3023_v60  ;;  %v2250_v57 = vsel %vm2234_vm4, 1, %v3265_v0  ;;  %v2380_v11 = vsel %vm2364_vm3, 1, %v3265_v0  ;;  %vm2367_vm4 = vcmp.eq.s32.totalorder %v3408_v14, 6 }
  0x8a   :  { %2839 = vmatprep.subr.bf16.mxu0 %v3644_v50  ;;  %v2383_v10 = vsel %vm2367_vm4, 1, %v3265_v0 }
  0x8b   :  { %1775 = vperm.xlu1 %2962, %v1728_v38   ;;  %v2116_v38 = vsel %vm2100_vm5, 1, %v3265_v0  ;;  %vm2233_vm5 = vcmp.eq.s32.totalorder %v3413_v15, 5 }
  0x8c   :  { %1772 = vperm.xlu0 %2961, %v1727_v41   ;;  %v2119_v41 = vsel %vm2103_vm6, 1, %v3265_v0  ;;  %vm2236_vm6 = vcmp.eq.s32.totalorder %v3422_v19, 5 }
  0x8d   :  { %v2252_v60 = vsel %vm2236_vm6, 1, %v3265_v0  ;;  %vm2369_vm6 = vcmp.eq.s32.totalorder %v3422_v19, 6  ;;  %v405_v19 = vld [vmem:[%s5135_s2 + $0x10] sm:$0xff] }
  0x8e   :  { %v2385_v14 = vsel %vm2369_vm6, 1, %v3265_v0 }
  0x8f   :  { %1866 = vperm.xlu1 %2962, %v1847_v42   ;;  %v2118_v42 = vsel %vm2102_vm7, 1, %v3265_v0  ;;  %vm2235_vm7 = vcmp.eq.s32.totalorder %v3427_v20, 5 }
  0x90   :  { %1863 = vperm.xlu0 %2961, %v1846_v43   ;;  %v2121_v43 = vsel %vm2105_vm8, 1, %v3265_v0  ;;  %v2251_v61 = vsel %vm2235_vm7, 1, %v3265_v0  ;;  %vm2238_vm8 = vcmp.eq.s32.totalorder %v3436_v25, 5  ;;  %vm2368_vm7 = vcmp.eq.s32.totalorder %v3427_v20, 6  ;;  %v403_v20 = vld [vmem:[%s5135_s2] sm:$0xff] }
  0x93   :  { %1872 = vperm.xlu1 %2962, %v1849_v44   ;;  %v2120_v44 = vsel %vm2104_vm9, 1, %v3265_v0  ;;  %vm2237_vm9 = vcmp.eq.s32.totalorder %v3441_v26, 5 }
  0x94   :  { %1869 = vperm.xlu0 %2961, %v1848_v45   ;;  %v3027_v45 = vld [vmem:[#allocation9 + $0x40] sm:$0xff]  }
  0x95   :  { %2775 = vmatprep.subr.bf16.mxu1 %v3027_v45 }
  0x97   :  { %1878 = vperm.xlu1 %2962, %v1851_v46   ;;  %v2123_v46 = vsel %vm2107_vm10, 1, %v3265_v0  ;;  %vm2240_vm10 = vcmp.eq.s32.totalorder %v3446_v27, 5 }
  0x98   :  { %1875 = vperm.xlu0 %2961, %v1850_v47   ;;  %v2122_v47 = vsel %vm2106_vm11, 1, %v3265_v0  ;;  %vm2239_vm11 = vcmp.eq.s32.totalorder %v3454_v33, 5 }
  0x9b   :  { %1884 = vperm.xlu1 %2962, %v1853_v48   ;;  %v2125_v48 = vsel %vm2109_vm12, 1, %v3265_v0  ;;  %vm2242_vm12 = vcmp.eq.s32.totalorder %v3461_v35, 5 }
  0x9c   :  { %1881 = vperm.xlu0 %2961, %v1852_v49   ;;  %v2124_v49 = vsel %vm2108_vm13, 1, %v3265_v0  ;;  %vm2241_vm13 = vcmp.eq.s32.totalorder %v3466_v37, 5  ;;  %v2258_v27 = vsel %vm2242_vm12, 1, %v3265_v0 }
  0x9d   :  { %v2257_v33 = vsel %vm2241_vm13, 1, %v3265_v0 }
  0x9f   :  { %1890 = vperm.xlu1 %2962, %v1855_v51   ;;  %v2127_v51 = vsel %vm2111_vm14, 1, %v3265_v0  ;;  %vm2244_vm14 = vcmp.eq.s32.totalorder %v3473_v39, 5  ;;  %v2379_v39 = vsel %vm2363_vm0, 1, %v3265_v0 }
  0xa0   :  { %1887 = vperm.xlu0 %2961, %v1854_v52   ;;  %v2126_v52 = vsel %vm2110_vm15, 1, %v3265_v0  ;;  %vm2243_vm15 = vcmp.eq.s32.totalorder %v3478_v40, 5  ;;  %v2260_v35 = vsel %vm2244_vm14, 1, %v3265_v0  ;;  %v2378_v40 = vsel %vm2362_vm1, 1, %v3265_v0 }
  0xa1   :  { %v2259_v37 = vsel %vm2243_vm15, 1, %v3265_v0 }
  0xa3   :  { %1896 = vperm.xlu1 %2962, %v1857_v58   ;;  %v2249_v58 = vsel %vm2233_vm5, 1, %v3265_v0  ;;  %vm2366_vm5 = vcmp.eq.s32.totalorder %v3413_v15, 6  ;;  %v2384_v15 = vsel %vm2368_vm7, 1, %v3265_v0 }
  0xa4   :  { %1893 = vperm.xlu0 %2961, %v1856_v59   ;;  %v2382_v8 = vsel %vm2366_vm5, 1, %v3265_v0 }
  0xa7   :  { %1902 = vperm.xlu1 %2962, %v1859_v62  }
  0xa8   :  { %1899 = vperm.xlu0 %2961, %v1858_v63   ;;  %v2254_v63 = vsel %vm2238_vm8, 1, %v3265_v0  ;;  %vm2371_vm8 = vcmp.eq.s32.totalorder %v3436_v25, 6  ;;  %v406_v25 = vld [vmem:[%s5135_s2 + $0x18] sm:$0xff] }
  0xab   :  { %1908 = vperm.xlu1 %2962, %v1861_v1   ;;  %v2253_v1 = vsel %vm2237_vm9, 1, %v3265_v0  ;;  %vm2370_vm9 = vcmp.eq.s32.totalorder %v3441_v26, 6 }
  0xac   :  { %1905 = vperm.xlu0 %2961, %v1860_v2  }
  0xaf   :  { %1999 = vperm.xlu1 %2962, %v1980_v3  }
  0xb0   :  { %1996 = vperm.xlu0 %2961, %v1979_v4   ;;  %v2256_v4 = vsel %vm2240_vm10, 1, %v3265_v0 }
  0xb3   :  { %2005 = vperm.xlu1 %2962, %v1982_v5   ;;  %v2255_v5 = vsel %vm2239_vm11, 1, %v3265_v0 }
  0xb4   :  { %2002 = vperm.xlu0 %2961, %v1981_v6  }
  0xb7   :  { %2011 = vperm.xlu1 %2962, %v1984_v7  }
  0xb8   :  { %2008 = vperm.xlu0 %2961, %v1983_v12  }
  0xbb   :  { %2017 = vperm.xlu1 %2962, %v1986_v13  }
  0xbc   :  { %2014 = vperm.xlu0 %2961, %v1985_v16  }
  0xbf   :  { %2023 = vperm.xlu1 %2962, %v1988_v17  }
  0xc0   :  { %2020 = vperm.xlu0 %2961, %v1987_v18  }
  0xc3   :  { %2029 = vperm.xlu1 %2962, %v1990_v21  }
  0xc4   :  { %2026 = vperm.xlu0 %2961, %v1989_v22  }
  0xc7   :  { %2035 = vperm.xlu1 %2962, %v1992_v23   ;;  %v2387_v23 = vsel %vm2371_vm8, 1, %v3265_v0 }
  0xc8   :  { %2032 = vperm.xlu0 %2961, %v1991_v24   ;;  %v2386_v24 = vsel %vm2370_vm9, 1, %v3265_v0 }
  0xcb   :  { %2041 = vperm.xlu1 %2962, %v1994_v28  }
  0xcc   :  { %2038 = vperm.xlu0 %2961, %v1993_v29   ;;  %v3123_v29 = vld [vmem:[%s5140_s7 + $0x8] sm:$0xff] }
  0xcd   :  { %vm2496_vm10 = vcmp.eq.s32.totalorder %v3123_v29, 7 }
  0xce   :  { %v3665_v59 = vpop.permute.xlu1 %1603 }
  0xcf   :  { %2132 = vperm.xlu1 %2962, %v2113_v30   ;;  %v3669_v62 = vpop.permute.xlu0 %1597  ;;  %v3124_v30 = vld [vmem:[%s5140_s7] sm:$0xff] }
  0xd0   :  { %2129 = vperm.xlu0 %2961, %v2112_v31   ;;  %vm2495_vm11 = vcmp.eq.s32.totalorder %v3124_v30, 7  ;;  %v3030_v30 = vld [vmem:[#allocation9 + $0x8] sm:$0xff]  }
  0xd2   :  { %v3677_v2 = vpop.permute.xlu1 %1606 }
  0xd3   :  { %2138 = vperm.xlu1 %2962, %v2115_v32   ;;  %v3679_v3 = vpop.permute.xlu0 %1600 }
  0xd4   :  { %2135 = vperm.xlu0 %2961, %v2114_v34   ;;  %v404_v34 = vld [vmem:[%s5135_s2 + $0x8] sm:$0xff] }
  0xd6   :  { %v3685_v6 = vpop.permute.xlu1 %1612 }
  0xd7   :  { %2144 = vperm.xlu1 %2962, %v2117_v36   ;;  %v3689_v7 = vpop.permute.xlu0 %1609 }
  0xd8   :  { %2141 = vperm.xlu0 %2961, %v2116_v38  }
  0xda   :  { %v3697_v12 = vpop.permute.xlu1 %1618 }
  0xdb   :  { %2150 = vperm.xlu1 %2962, %v2119_v41   ;;  %5237 = vst [vmem:[#allocation16_spill] sm:$0xff] %v3697_v12  ;;  %v3699_v13 = vpop.permute.xlu0 %1615 }
  0xdc   :  { %2147 = vperm.xlu0 %2961, %v2118_v42  }
  0xde   :  { %v3705_v16 = vpop.permute.xlu1 %1624 }
  0xdf   :  { %2156 = vperm.xlu1 %2962, %v2121_v43   ;;  %5238 = vst [vmem:[#allocation17_spill] sm:$0xff] %v3705_v16  ;;  %v3709_v17 = vpop.permute.xlu0 %1621  ;;  %v2512_v43 = vsel %vm2496_vm10, 1, %v3265_v0 }
  0xe0   :  { %2153 = vperm.xlu0 %2961, %v2120_v44   ;;  %5239 = vst [vmem:[#allocation18_spill] sm:$0xff] %v3709_v17  ;;  %v2511_v44 = vsel %vm2495_vm11, 1, %v3265_v0 }
  0xe2   :  { %v3717_v18 = vpop.permute.xlu1 %1630 }
  0xe3   :  { %2162 = vperm.xlu1 %2962, %v2123_v46   ;;  %5240 = vst [vmem:[#allocation19_spill] sm:$0xff] %v3717_v18  ;;  %v3719_v21 = vpop.permute.xlu0 %1627 }
  0xe4   :  { %2159 = vperm.xlu0 %2961, %v2122_v47   ;;  %5241 = vst [vmem:[#allocation20_spill] sm:$0xff] %v3719_v21 }
  0xe6   :  { %v3731_v22 = vpop.permute.xlu1 %1636 }
  0xe7   :  { %2168 = vperm.xlu1 %2962, %v2125_v48   ;;  %5242 = vst [vmem:[#allocation21_spill] sm:$0xff] %v3731_v22  ;;  %v3738_v26 = vpop.permute.xlu0 %1633 }
  0xe8   :  { %2165 = vperm.xlu0 %2961, %v2124_v49   ;;  %5243 = vst [vmem:[#allocation22_spill] sm:$0xff] %v3738_v26 }
  0xea   :  { %v3751_v48 = vpop.permute.xlu1 %1642 }
  0xeb   :  { %2174 = vperm.xlu1 %2962, %v2127_v51   ;;  %5244 = vst [vmem:[#allocation23_spill] sm:$0xff] %v3751_v48 }
  0xec   :  { %2171 = vperm.xlu0 %2961, %v2126_v52   ;;  %v409_v52 = vld [vmem:[%s5135_s2 + $0x30] sm:$0xff] }
  0xef   :  { %2265 = vperm.xlu1 %2962, %v2246_v53   ;;  %v3756_v53 = vpop.permute.xlu0 %1639 }
  0xf0   :  { %2262 = vperm.xlu0 %2961, %v2245_v54   ;;  %5245 = vst [vmem:[#allocation24_spill] sm:$0xff] %v3756_v53  ;;  %v3125_v54 = vld [vmem:[%s5140_s7 + $0x18] sm:$0xff] }
  0xf1   :  { %vm2498_vm12 = vcmp.eq.s32.totalorder %v3125_v54, 7 }
  0xf3   :  { %2271 = vperm.xlu1 %2962, %v2248_v55   ;;  %v3126_v55 = vld [vmem:[%s5140_s7 + $0x10] sm:$0xff] }
  0xf4   :  { %2268 = vperm.xlu0 %2961, %v2247_v56   ;;  %vm2497_vm13 = vcmp.eq.s32.totalorder %v3126_v55, 7  ;;  %v3031_v55 = vld [vmem:[#allocation9 + $0x50] sm:$0xff]  }
  0xf7   :  { %2277 = vperm.xlu1 %2962, %v2250_v57   ;;  %v407_v57 = vld [vmem:[%s5135_s2 + $0x20] sm:$0xff] }
  0xf8   :  { %2274 = vperm.xlu0 %2961, %v2249_v58  }
  0xfb   :  { %2283 = vperm.xlu1 %2962, %v2252_v60  }
  0xfc   :  { %2280 = vperm.xlu0 %2961, %v2251_v61   ;;  %v410_v61 = vld [vmem:[%s5135_s2 + $0x38] sm:$0xff] }
  0xff   :  { %2289 = vperm.xlu1 %2962, %v2254_v63  }
 0x100   :  { %2286 = vperm.xlu0 %2961, %v2253_v1  }
 0x103   :  { %2295 = vperm.xlu1 %2962, %v2256_v4   ;;  %v408_v4 = vld [vmem:[%s5135_s2 + $0x28] sm:$0xff] }
 0x104   :  { %2292 = vperm.xlu0 %2961, %v2255_v5   ;;  %v2514_v5 = vsel %vm2498_vm12, 1, %v3265_v0 }
 0x107   :  { %2301 = vperm.xlu1 %2962, %v2258_v27   ;;  %v2513_v27 = vsel %vm2497_vm13, 1, %v3265_v0 }
 0x108   :  { %2298 = vperm.xlu0 %2961, %v2257_v33   ;;  %v3028_v33 = vld [vmem:[#allocation9] sm:$0xff]  }
 0x10b   :  { %2307 = vperm.xlu1 %2962, %v2260_v35   ;;  %v3777_v35 = vld [vmem:[#allocation9 + $0x80] sm:$0xff]  }
 0x10c   :  { %2304 = vperm.xlu0 %2961, %v2259_v37  }
 0x10f   :  { %2398 = vperm.xlu1 %2962, %v2379_v39  }
 0x110   :  { %2395 = vperm.xlu0 %2961, %v2378_v40   ;;  %v3127_v40 = vld [vmem:[%s5140_s7 + $0x28] sm:$0xff] }
 0x111   :  { %vm2500_vm14 = vcmp.eq.s32.totalorder %v3127_v40, 7 }
 0x113   :  { %2404 = vperm.xlu1 %2962, %v2381_v9   ;;  %v3128_v9 = vld [vmem:[%s5140_s7 + $0x20] sm:$0xff] }
 0x114   :  { %2401 = vperm.xlu0 %2961, %v2380_v11   ;;  %vm2499_vm15 = vcmp.eq.s32.totalorder %v3128_v9, 7  ;;  %v3029_v11 = vld [vmem:[#allocation9 + $0x48] sm:$0xff]  }
 0x115   :  { %v2515_v29 = vsel %vm2499_vm15, 1, %v3265_v0 }
 0x117   :  { %2410 = vperm.xlu1 %2962, %v2383_v10   ;;  %v3785_v10 = vld [vmem:[#allocation9 + $0xc8] sm:$0xff]  }
 0x118   :  { %2407 = vperm.xlu0 %2961, %v2382_v8  }
 0x11b   :  { %2416 = vperm.xlu1 %2962, %v2385_v14  }
 0x11c   :  { %2413 = vperm.xlu0 %2961, %v2384_v15  }
 0x11f   :  { %2422 = vperm.xlu1 %2962, %v2387_v23  }
 0x120   :  { %2419 = vperm.xlu0 %2961, %v2386_v24   ;;  %v3791_v24 = vpop.permute.xlu0 %1730 }
 0x123   :  { %2531 = vperm.xlu1 %2962, %v2512_v43  }
 0x124   :  { %2528 = vperm.xlu0 %2961, %v2511_v44  }
 0x127   :  { %2537 = vperm.xlu1 %2962, %v2514_v5  }
 0x128   :  { %2534 = vperm.xlu0 %2961, %v2513_v27  }
 0x12c   :  { %2540 = vperm.xlu0 %2961, %v2515_v29   ;;  %v415_v29 = vld [vmem:[%s5135_s2 + $0x60] sm:$0xff] }
 0x13f   :  { %v2921_v28 = vpop.f32.mrb[0].mxu0 }
 0x140   :  { %v421_v31 = vadd.f32 %v2921_v28, %v405_v19  ;;  %v289_v32 = vpop.f32.mrb[1].mxu0  ;;  %v3789_v19 = vpop.permute.xlu1 %1733 }
 0x141   :  { %v419_v36 = vadd.f32 %v403_v20, %v289_v32  ;;  %v2922_v38 = vpop.f32.mrb[2].mxu0 }
 0x142   :  { %v422_v41 = vadd.f32 %v2922_v38, %v406_v25  ;;  %v292_v42 = vpop.f32.mrb[3].mxu0  ;;  %v437_v46 = vmax.f32 %v421_v31, 0.0  ;;  %v2516_v25 = vsel %vm2500_vm14, 1, %v3265_v0  ;;  %v3798_v31 = vld [vmem:[#allocation9 + $0x88] sm:$0xff]   ;;  %v3130_v38 = vld [vmem:[%s5140_s7 + $0x30] sm:$0xff] }
 0x143   :  { %v420_v45 = vadd.f32 %v404_v34, %v292_v42  ;;  %v435_v49 = vmax.f32 %v419_v36, 0.0  ;;  %v413_v34 = vld [vmem:[%s5135_s2 + $0x50] sm:$0xff]  ;;  %v3129_v36 = vld [vmem:[%s5140_s7 + $0x38] sm:$0xff]  ;;  %vm2501_vm1 = vcmp.eq.s32.totalorder %v3130_v38, 7  ;;  %v411_v42 = vld [vmem:[%s5135_s2 + $0x40] sm:$0xff]  ;;  %2543 = vperm.xlu1 %2962, %v2516_v25  }
 0x144   :  { %v438_v47 = vmax.f32 %v422_v41, 0.0  ;;  %vm2502_vm0 = vcmp.eq.s32.totalorder %v3129_v36, 7  ;;  %v2517_v54 = vsel %vm2501_vm1, 1, %v3265_v0  ;;  %v418_v36 = vld [vmem:[%s5135_s2 + $0x78] sm:$0xff]  ;;  %vm1777_vm1 = vcmp.eq.s32.totalorder %v3791_v24, 1 }
 0x145   :  { %v436_v51 = vmax.f32 %v420_v45, 0.0  ;;  %v414_v45 = vld [vmem:[%s5135_s2 + $0x58] sm:$0xff]  ;;  %2546 = vperm.xlu0 %2961, %v2517_v54  }
 0x146   :  { %v3764_v56 = vpack.c.bf16 %v438_v47, %v437_v46 }
 0x147   :  { %v451_v58 = vpack.c.bf16 %v436_v51, %v435_v49  ;;  %v2925_v60 = vpop.f32.mrb[4].mxu0  ;;  %v412_v49 = vld [vmem:[%s5135_s2 + $0x48] sm:$0xff]  ;;  %v3823_v51 = vpop.permute.xlu1 %1739 }
 0x148   :  { %v425_v63 = vadd.f32 %v2925_v60, %v409_v52  ;;  %v305_v1 = vpop.f32.mrb[5].mxu0  ;;  %v2518_v52 = vsel %vm2502_vm0, 1, %v3265_v0  ;;  %vm1644_vm0 = vcmp.eq.s32.totalorder %v3669_v62, 1 }
 0x149   :  { %706 = vmatmul.mubr.bf16.vlgmr.msra.gmra.mrb[0].mxu1 %v451_v58  ;;  %819 = vmatmul.mubr.bf16.vlgmr.msra.gmra.mrb[16].mxu0 %v451_v58  ;;  %v423_v37 = vadd.f32 %v407_v57, %v305_v1  ;;  %v2926_v39 = vpop.f32.mrb[6].mxu0  ;;  %v3829_v57 = vld [vmem:[#allocation9 + $0xd0] sm:$0xff]  }
 0x14a   :  { %v441_v8 = vmax.f32 %v425_v63, 0.0  ;;  %v426_v14 = vadd.f32 %v2926_v39, %v410_v61  ;;  %v308_v15 = vpop.f32.mrb[7].mxu0  ;;  %715 = vmatprep.mubr.bf16.mxu1 %v3265_v0  ;;  %828 = vmatprep.mubr.bf16.mxu0 %v3265_v0  ;;  %v3833_v61 = vpop.permute.xlu0 %1736  ;;  %v3838_v63 = vld [vmem:[%s5140_s7 + $0x58] sm:$0xff]  ;;  %v3844_v1 = vld [vmem:[%s5140_s7 + $0x50] sm:$0xff] }
 0x14b   :  { %v439_v20 = vmax.f32 %v423_v37, 0.0  ;;  %v424_v23 = vadd.f32 %v408_v4, %v308_v15  ;;  %2776 = vmatpush3.bf16.msra.mxu1 %v3028_v33  ;;  %2840 = vmatpush3.bf16.msra.mxu0 %v3777_v35  ;;  %vm2373_vm2 = vcmp.eq.s32.totalorder %v3838_v63, 6  ;;  %vm2372_vm3 = vcmp.eq.s32.totalorder %v3844_v1, 6  ;;  %v3032_v4 = vld [vmem:[#allocation9 + $0x10] sm:$0xff]   ;;  %v3033_v37 = vld [vmem:[#allocation9 + $0x58] sm:$0xff]  }
 0x14c   :  { %v442_v28 = vmax.f32 %v426_v14, 0.0  ;;  %2777 = vmatprep.subr.bf16.mxu1 %v3029_v11  ;;  %2841 = vmatprep.subr.bf16.mxu0 %v3785_v10  ;;  %v3851_v39 = vld [vmem:[#allocation9 + $0xd8] sm:$0xff]   ;;  %v2388_v14 = vsel %vm2372_vm3, 1, %v3265_v0  ;;  %vm2506_vm6 = vcmp.eq.s32.totalorder %v3838_v63, 7  ;;  %vm2505_vm7 = vcmp.eq.s32.totalorder %v3844_v1, 7  ;;  %v3038_v1 = vld [vmem:[#allocation9 + $0x20] sm:$0xff]  }
 0x14d   :  { %v440_v32 = vmax.f32 %v424_v23, 0.0  ;;  %2549 = vperm.xlu1 %2962, %v2518_v52   ;;  %v3133_v23 = vld [vmem:[%s5140_s7 + $0x48] sm:$0xff]  ;;  %2425 = vperm.xlu0 %2961, %v2388_v14   ;;  %v3892_v52 = vld [vmem:[#allocation9 + $0x98] sm:$0xff]   ;;  %v2521_v63 = vsel %vm2505_vm7, 1, %v3265_v0  ;;  %vm1778_vm3 = vcmp.eq.s32.totalorder %v3789_v19, 1 }
 0x14e   :  { %v3810_v41 = vpack.c.bf16 %v442_v28, %v441_v8  ;;  %v2389_v8 = vsel %vm2373_vm2, 1, %v3265_v0  ;;  %vm2504_vm4 = vcmp.eq.s32.totalorder %v3133_v23, 7  ;;  %v3134_v28 = vld [vmem:[%s5140_s7 + $0x40] sm:$0xff]  ;;  %v3883_v38 = vpop.permute.xlu0 %1742  ;;  %vm1645_vm2 = vcmp.eq.s32.totalorder %v3679_v3, 1 }
 0x14f   :  { %v3815_v43 = vpack.c.bf16 %v440_v32, %v439_v20  ;;  %v2929_v44 = vpop.f32.mrb[8].mxu0  ;;  %2778 = vmatpush3.bf16.msra.mxu1 %v3030_v30  ;;  %2842 = vmatpush3.bf16.msra.mxu0 %v3798_v31  ;;  %v417_v20 = vld [vmem:[%s5135_s2 + $0x70] sm:$0xff]  ;;  %vm2503_vm5 = vcmp.eq.s32.totalorder %v3134_v28, 7  ;;  %v3875_v30 = vpop.permute.xlu1 %1745 }
 0x150   :  { %v429_v46 = vadd.f32 %v2929_v44, %v413_v34  ;;  %v321_v47 = vpop.f32.mrb[9].mxu0  ;;  %2779 = vmatprep.subr.bf16.mxu1 %v3031_v55  ;;  %2843 = vmatprep.subr.bf16.mxu0 %v3829_v57 }
 0x151   :  { %716 = vmatmul.mubr.bf16.gmra.mrb[4].mxu1 %v3764_v56  ;;  %829 = vmatmul.mubr.bf16.gmra.mrb[20].mxu0 %v3764_v56  ;;  %v427_v58 = vadd.f32 %v411_v42, %v321_v47  ;;  %v2930_v60 = vpop.f32.mrb[10].mxu0  ;;  %v3847_v56 = vld [vmem:[#allocation9 + $0x90] sm:$0xff]   ;;  %v2519_v47 = vsel %vm2503_vm5, 1, %v3265_v0 }
 0x152   :  { %725 = vmatprep.mubr.bf16.mxu1 %v3265_v0  ;;  %838 = vmatprep.mubr.bf16.mxu0 %v3265_v0  ;;  %v445_v5 = vmax.f32 %v429_v46, 0.0  ;;  %v430_v27 = vadd.f32 %v2930_v60, %v414_v45  ;;  %v324_v33 = vpop.f32.mrb[11].mxu0  ;;  %v416_v45 = vld [vmem:[%s5135_s2 + $0x68] sm:$0xff]  ;;  %v2520_v46 = vsel %vm2504_vm4, 1, %v3265_v0  ;;  %v3898_v60 = vld [vmem:[#allocation9 + $0xe0] sm:$0xff]   ;;  %v3909_v14 = vpop.permute.xlu0 %1748 }
 0x153   :  { %v443_v40 = vmax.f32 %v427_v58, 0.0  ;;  %v428_v9 = vadd.f32 %v412_v49, %v324_v33  ;;  %2780 = vmatpush3.bf16.msra.mxu1 %v3032_v4  ;;  %2844 = vmatpush3.bf16.msra.mxu0 %v3847_v56  ;;  %v3034_v49 = vld [vmem:[#allocation9 + $0x18] sm:$0xff]   ;;  %v3037_v58 = vld [vmem:[#allocation9 + $0x60] sm:$0xff]  }
 0x154   :  { %v446_v11 = vmax.f32 %v430_v27, 0.0  ;;  %2781 = vmatprep.subr.bf16.mxu1 %v3033_v37  ;;  %2845 = vmatprep.subr.bf16.mxu0 %v3851_v39 }
 0x155   :  { %v444_v15 = vmax.f32 %v428_v9, 0.0  ;;  %2428 = vperm.xlu1 %2962, %v2389_v8   ;;  %2552 = vperm.xlu0 %2961, %v2519_v47   ;;  %v3905_v9 = vld [vmem:[#allocation9 + $0xa0] sm:$0xff]   ;;  %v3907_v8 = vpop.permute.xlu1 %1751  ;;  %v3047_v47 = vld [vmem:[#allocation9 + $0x70] sm:$0xff]  }
 0x156   :  { %v3870_v25 = vpack.c.bf16 %v446_v11, %v445_v5  ;;  %5246 = vst [vmem:[#allocation25_spill] sm:$0xff] %v3907_v8 }
 0x157   :  { %v3878_v32 = vpack.c.bf16 %v444_v15, %v443_v40  ;;  %v2933_v34 = vpop.f32.mrb[12].mxu0  ;;  %v2522_v40 = vsel %vm2506_vm6, 1, %v3265_v0  ;;  %2782 = vmatpush3.bf16.msra.mxu1 %v3034_v49  ;;  %2846 = vmatpush3.bf16.msra.mxu0 %v3892_v52  ;;  %v3135_v15 = vld [vmem:[%s5140_s7 + $0x68] sm:$0xff] }
 0x158   :  { %v433_v42 = vadd.f32 %v2933_v34, %v417_v20  ;;  %v337_v44 = vpop.f32.mrb[13].mxu0  ;;  %vm2375_vm8 = vcmp.eq.s32.totalorder %v3135_v15, 6  ;;  %v3136_v20 = vld [vmem:[%s5140_s7 + $0x60] sm:$0xff]  ;;  %2783 = vmatprep.subr.bf16.mxu1 %v3037_v58  ;;  %2847 = vmatprep.subr.bf16.mxu0 %v3898_v60  ;;  %vm2508_vm12 = vcmp.eq.s32.totalorder %v3135_v15, 7  ;;  %v3971_v15 = vld [vmem:[#allocation9 + $0xf8] sm:$0xff]  }
 0x159   :  { %726 = vmatmul.mubr.bf16.gmra.mrb[8].mxu1 %v3815_v43  ;;  %839 = vmatmul.mubr.bf16.gmra.mrb[24].mxu0 %v3815_v43  ;;  %v431_v54 = vadd.f32 %v415_v29, %v337_v44  ;;  %v2934_v55 = vpop.f32.mrb[14].mxu0  ;;  %vm2374_vm9 = vcmp.eq.s32.totalorder %v3136_v20, 6  ;;  %v2391_v29 = vsel %vm2375_vm8, 1, %v3265_v0  ;;  %v3137_v44 = vld [vmem:[%s5140_s7 + $0x78] sm:$0xff]  ;;  %v3933_v49 = vpop.permute.xlu1 %1757  ;;  %vm2507_vm13 = vcmp.eq.s32.totalorder %v3136_v20, 7 }
 0x15a   :  { %735 = vmatprep.mubr.bf16.mxu1 %v3265_v0  ;;  %848 = vmatprep.mubr.bf16.mxu0 %v3265_v0  ;;  %v449_v4 = vmax.f32 %v433_v42, 0.0  ;;  %v434_v5 = vadd.f32 %v2934_v55, %v418_v36  ;;  %v340_v27 = vpop.f32.mrb[15].mxu0  ;;  %v2390_v34 = vsel %vm2374_vm9, 1, %v3265_v0  ;;  %v3041_v36 = vld [vmem:[#allocation9 + $0x68] sm:$0xff]   ;;  %vm2377_vm10 = vcmp.eq.s32.totalorder %v3137_v44, 6  ;;  %5247 = vst [vmem:[#allocation26_spill] sm:$0xff] %v3933_v49 }
 0x15b   :  { %v447_v33 = vmax.f32 %v431_v54, 0.0  ;;  %v432_v37 = vadd.f32 %v416_v45, %v340_v27  ;;  %2555 = vperm.xlu1 %2962, %v2520_v46   ;;  %2558 = vperm.xlu0 %2961, %v2521_v63   ;;  %v3921_v42 = vld [vmem:[#allocation9 + $0xe8] sm:$0xff]   ;;  %v3138_v45 = vld [vmem:[%s5140_s7 + $0x70] sm:$0xff]  ;;  %v3935_v54 = vpop.permute.xlu0 %1754  ;;  %v2524_v58 = vsel %vm2508_vm12, 1, %v3265_v0  ;;  %vm2510_vm14 = vcmp.eq.s32.totalorder %v3137_v44, 7  ;;  %v3054_v20 = vld [vmem:[#allocation9 + $0x38] sm:$0xff]  }
 0x15c   :  { %v450_v43 = vmax.f32 %v434_v5, 0.0  ;;  %2784 = vmatpush3.bf16.msra.mxu1 %v3038_v1  ;;  %2848 = vmatpush3.bf16.msra.mxu0 %v3905_v9  ;;  %vm2376_vm11 = vcmp.eq.s32.totalorder %v3138_v45, 6  ;;  %v3042_v46 = vld [vmem:[#allocation9 + $0x28] sm:$0xff]   ;;  %5248 = vst [vmem:[#allocation27_spill] sm:$0xff] %v3935_v54  ;;  %v3048_v5 = vld [vmem:[#allocation9 + $0x30] sm:$0xff]   ;;  %vm2509_vm15 = vcmp.eq.s32.totalorder %v3138_v45, 7 }
 0x15d   :  { %v448_v11 = vmax.f32 %v432_v37, 0.0  ;;  %v2392_v55 = vsel %vm2376_vm11, 1, %v3265_v0  ;;  %2785 = vmatprep.subr.bf16.mxu1 %v3041_v36  ;;  %2849 = vmatprep.subr.bf16.mxu0 %v3921_v42  ;;  %v3944_v27 = vpop.permute.xlu1 %1763  ;;  %v2526_v37 = vsel %vm2510_vm14, 1, %v3265_v0  ;;  %v3962_v63 = vld [vmem:[#allocation9 + $0xa8] sm:$0xff]   ;;  %v3965_v1 = vld [vmem:[#allocation9 + $0xf0] sm:$0xff]   ;;  %vm1779_vm11 = vcmp.eq.s32.totalorder %v3833_v61, 1 }
 0x15e   :  { %v458_v23 = vpack.c.bf16 %v450_v43, %v449_v4  ;;  %v2523_v4 = vsel %vm2507_vm13, 1, %v3265_v0  ;;  %5249 = vst [vmem:[#allocation28_spill] sm:$0xff] %v3944_v27  ;;  %v2525_v43 = vsel %vm2509_vm15, 1, %v3265_v0  ;;  %v491_v36 = vld [vmem:[%s5137_s4] sm:$0xf]  ;;  %vm1647_vm8 = vcmp.eq.s32.totalorder %v3677_v2, 1 }
 0x15f   :  { %v457_v28 = vpack.c.bf16 %v448_v11, %v447_v33  ;;  %2561 = vperm.xlu1 %2962, %v2522_v40   ;;  %2431 = vperm.xlu0 %2961, %v2390_v34   ;;  %v3946_v33 = vpop.permute.xlu0 %1760  ;;  %v3967_v11 = vld [vmem:[#allocation9 + $0xb0] sm:$0xff]  }
 0x160   :  { %2786 = vmatpush3.bf16.msra.mxu1 %v3042_v46  ;;  %5250 = vst [vmem:[#allocation29_spill] sm:$0xff] %v3946_v33  ;;  %2850 = vmatpush3.bf16.msra.mxu0 %v3962_v63 }
 0x161   :  { %736 = vmatmul.mubr.bf16.gmra.mrb[12].mxu1 %v3810_v41  ;;  %849 = vmatmul.mubr.bf16.gmra.mrb[28].mxu0 %v3810_v41  ;;  %v2393_v41 = vsel %vm2377_vm10, 1, %v3265_v0  ;;  %v3952_v40 = vpop.permute.xlu1 %1769  ;;  %vm1646_vm10 = vcmp.eq.s32.totalorder %v3665_v59, 1 }
 0x162   :  { %745 = vmatprep.mubr.bf16.mxu1 %v3265_v0  ;;  %858 = vmatprep.mubr.bf16.mxu0 %v3265_v0  ;;  %5251 = vst [vmem:[#allocation30_spill] sm:$0xff] %v3952_v40 }
 0x163   :  { %2434 = vperm.xlu1 %2962, %v2391_v29   ;;  %2787 = vmatprep.subr.bf16.mxu1 %v3047_v47 }
 0x164   :  { %2437 = vperm.xlu0 %2961, %v2392_v55   ;;  %2788 = vmatpush3.bf16.msra.mxu1 %v3048_v5 }
 0x165   :  { %2851 = vmatprep.subr.bf16.mxu0 %v3965_v1 }
 0x166   :  { %2852 = vmatpush3.bf16.msra.mxu0 %v3967_v11 }
 0x167   :  { %2440 = vperm.xlu1 %2962, %v2393_v41   ;;  %2853 = vmatprep.subr.bf16.mxu0 %v3971_v15 }
 0x168   :  { %2564 = vperm.xlu0 %2961, %v2523_v4  }
 0x169   :  { %746 = vmatmul.mubr.bf16.gmra.mrb[16].mxu1 %v3878_v32  ;;  %859 = vmatmul.mubr.bf16.gmra.mrb[32].mxu0 %v3878_v32  ;;  %v3954_v32 = vpop.permute.xlu0 %1766 }
 0x16a   :  { %755 = vmatprep.mubr.bf16.mxu1 %v3265_v0  ;;  %868 = vmatprep.mubr.bf16.mxu0 %v3265_v0  ;;  %5252 = vst [vmem:[#allocation31_spill] sm:$0xff] %v3954_v32 }
 0x16b   :  { %2567 = vperm.xlu1 %2962, %v2524_v58   ;;  %v3989_v58 = vpop.permute.xlu1 %1775 }
 0x16c   :  { %2570 = vperm.xlu0 %2961, %v2525_v43   ;;  %5253 = vst [vmem:[#allocation32_spill] sm:$0xff] %v3989_v58 }
 0x16f   :  { %2573 = vperm.xlu1 %2962, %v2526_v37   ;;  %v4001_v26 = vpop.permute.xlu1 %1866 }
 0x170   :  { %vm1911_vm4 = vcmp.eq.s32.totalorder %v4001_v26, 1 }
 0x171   :  { %756 = vmatmul.mubr.bf16.gmra.mrb[20].mxu1 %v3870_v25  ;;  %869 = vmatmul.mubr.bf16.gmra.mrb[36].mxu0 %v3870_v25  ;;  %v3053_v25 = vld [vmem:[#allocation9 + $0x78] sm:$0xff]  }
 0x172   :  { %765 = vmatprep.mubr.bf16.mxu1 %v3265_v0  ;;  %878 = vmatprep.mubr.bf16.mxu0 %v3265_v0 }
 0x173   :  { %2789 = vmatprep.subr.bf16.mxu1 %v3053_v25 }
 0x174   :  { %2790 = vmatpush3.bf16.msra.mxu1 %v3054_v20 }
 0x175   :  { %2935 = vmatprep.subr.bf16.mxu1 %v3644_v50  ;;  %v3991_v50 = vpop.permute.xlu0 %1772 }
 0x176   :  { %5254 = vst [vmem:[#allocation33_spill] sm:$0xff] %v3991_v50 }
 0x179   :  { %766 = vmatmul.mubr.bf16.gmra.mrb[24].mxu1 %v457_v28  ;;  %879 = vmatmul.mubr.bf16.gmra.mrb[40].mxu0 %v457_v28  ;;  %v3973_v28 = vld [vmem:[#allocation9 + $0xb8] sm:$0xff]   ;;  %v4003_v27 = vpop.permute.xlu0 %1863 }
 0x17a   :  { %775 = vmatprep.mubr.bf16.mxu1 %v3265_v0  ;;  %888 = vmatprep.mubr.bf16.mxu0 %v3265_v0  ;;  %v493_v0 = vlaneseq  ;;  %vm1910_vm5 = vcmp.eq.s32.totalorder %v4003_v27, 1 }
 0x17b   :  { %2854 = vmatpush3.bf16.msra.mxu0 %v3973_v28 }
 0x181   :  { %776 = vmatmul.mubr.bf16.gmra.mrb[28].mxu1 %v458_v23  ;;  %889 = vmatmul.mubr.bf16.gmra.mrb[44].mxu0 %v458_v23  ;;  %v494_v23 = vshrl.u32 %v493_v0, 7 }
 0x183   :  { %v495_v29 = vsub.s32 0, %v494_v23  ;;  %v503_v34 = vsub.s32 2, %v494_v23  ;;  %v499_v44 = vsub.s32 1, %v494_v23  ;;  %v507_v45 = vsub.s32 3, %v494_v23 }
 0x185   :  { %v3981_v46 = vrot.slane %v491_v36, %v495_v29  ;;  %v3983_v47 = vrot.slane %v491_v36, %v503_v34  ;;  %v3985_v41 = vrot.slane %v491_v36, %v499_v44  ;;  %v3987_v55 = vrot.slane %v491_v36, %v507_v45 }
 0x21c   :  { %v707_v4 = vpop.f32.mrb[0].mxu1  ;;  %v820_v5 = vpop.f32.mrb[16].mxu0 }
 0x21d   :  { %v708_v37 = vadd.f32 %v707_v4, %v3981_v46  ;;  %v821_v43 = vadd.f32 %v820_v5, %v3983_v47  ;;  %v709_v25 = vpop.f32.mrb[1].mxu1  ;;  %v822_v20 = vpop.f32.mrb[17].mxu0 }
 0x21e   :  { %v710_v0 = vadd.f32 %v709_v25, %v3985_v41  ;;  %v823_v23 = vadd.f32 %v822_v20, %v3987_v55  ;;  %v711_v29 = vpop.f32.mrb[2].mxu1  ;;  %v824_v34 = vpop.f32.mrb[18].mxu0 }
 0x21f   :  { %v712_v36 = vadd.f32 %v711_v29, %v3981_v46  ;;  %v825_v44 = vadd.f32 %v824_v34, %v3983_v47  ;;  %v713_v45 = vpop.f32.mrb[3].mxu1  ;;  %v826_v58 = vpop.f32.mrb[19].mxu0  ;;  %v899_v50 = vmax.f32 %v708_v37, 0.0  ;;  %v901_v5 = vmax.f32 %v821_v43, 0.0 }
 0x220   :  { %v714_v48 = vadd.f32 %v713_v45, %v3985_v41  ;;  %v827_v4 = vadd.f32 %v826_v58, %v3987_v55  ;;  %v900_v40 = vmax.f32 %v710_v0, 0.0  ;;  %v902_v25 = vmax.f32 %v823_v23, 0.0 }
 0x221   :  { %v903_v53 = vmax.f32 %v712_v36, 0.0  ;;  %v905_v32 = vmax.f32 %v825_v44, 0.0 }
 0x222   :  { %v904_v22 = vmax.f32 %v714_v48, 0.0  ;;  %v906_v20 = vmax.f32 %v827_v4, 0.0 }
 0x223   :  { %v963_v29 = vpack.c.bf16 %v903_v53, %v899_v50  ;;  %v965_v34 = vpack.c.bf16 %v905_v32, %v901_v5 }
 0x224   :  { %v964_v18 = vpack.c.bf16 %v904_v22, %v900_v40  ;;  %v966_v33 = vpack.c.bf16 %v906_v20, %v902_v25  ;;  %v717_v21 = vpop.f32.mrb[4].mxu1  ;;  %v830_v45 = vpop.f32.mrb[20].mxu0 }
 0x225   :  { %v718_v58 = vadd.f32 %v717_v21, %v3981_v46  ;;  %v831_v37 = vadd.f32 %v830_v45, %v3983_v47  ;;  %v719_v43 = vpop.f32.mrb[5].mxu1  ;;  %v832_v36 = vpop.f32.mrb[21].mxu0 }
 0x226   :  { %v720_v0 = vadd.f32 %v719_v43, %v3985_v41  ;;  %v833_v48 = vadd.f32 %v832_v36, %v3987_v55  ;;  %v721_v23 = vpop.f32.mrb[6].mxu1  ;;  %v834_v44 = vpop.f32.mrb[22].mxu0  ;;  %1290 = vmatprep.mubr.bf16.mxu1 %v964_v18  ;;  %1387 = vmatprep.mubr.bf16.mxu0 %v966_v33 }
 0x227   :  { %v722_v53 = vadd.f32 %v721_v23, %v3981_v46  ;;  %v835_v22 = vadd.f32 %v834_v44, %v3983_v47  ;;  %v723_v40 = vpop.f32.mrb[7].mxu1  ;;  %v836_v32 = vpop.f32.mrb[23].mxu0  ;;  %1291 = vmatmul.mubr.bf16.vlgmr.msra.gmra.mrb[32].mxu1 %v963_v29  ;;  %1388 = vmatmul.mubr.bf16.vlgmr.msra.gmra.mrb[48].mxu0 %v965_v34  ;;  %v907_v4 = vmax.f32 %v718_v58, 0.0  ;;  %v909_v5 = vmax.f32 %v831_v37, 0.0 }
 0x228   :  { %v724_v21 = vadd.f32 %v723_v40, %v3985_v41  ;;  %v837_v50 = vadd.f32 %v836_v32, %v3987_v55  ;;  %2943 = vmatpush3.bf16.msra.mxu1 %v3777_v35  ;;  %v908_v18 = vmax.f32 %v720_v0, 0.0  ;;  %v910_v33 = vmax.f32 %v833_v48, 0.0  ;;  %v4015_v36 = vpop.permute.xlu1 %1872  ;;  %v4017_v29 = vpop.permute.xlu0 %1869 }
 0x229   :  { %v911_v25 = vmax.f32 %v722_v53, 0.0  ;;  %v913_v20 = vmax.f32 %v835_v22, 0.0  ;;  %2936 = vmatprep.subr.bf16.mxu1 %v3785_v10  ;;  %vm1913_vm12 = vcmp.eq.s32.totalorder %v4015_v36, 1 }
 0x22a   :  { %v912_v45 = vmax.f32 %v724_v21, 0.0  ;;  %v914_v43 = vmax.f32 %v837_v50, 0.0 }
 0x22b   :  { %v967_v34 = vpack.c.bf16 %v911_v25, %v907_v4  ;;  %v969_v23 = vpack.c.bf16 %v913_v20, %v909_v5 }
 0x22c   :  { %v968_v44 = vpack.c.bf16 %v912_v45, %v908_v18  ;;  %v970_v40 = vpack.c.bf16 %v914_v43, %v910_v33  ;;  %v727_v32 = vpop.f32.mrb[8].mxu1  ;;  %v840_v35 = vpop.f32.mrb[24].mxu0  ;;  %2944 = vmatpush3.bf16.msra.mxu1 %v3798_v31 }
 0x22d   :  { %v728_v58 = vadd.f32 %v727_v32, %v3981_v46  ;;  %v841_v10 = vadd.f32 %v840_v35, %v3983_v47  ;;  %v729_v37 = vpop.f32.mrb[9].mxu1  ;;  %v842_v0 = vpop.f32.mrb[25].mxu0  ;;  %2937 = vmatprep.subr.bf16.mxu1 %v3829_v57 }
 0x22e   :  { %v730_v48 = vadd.f32 %v729_v37, %v3985_v41  ;;  %v843_v53 = vadd.f32 %v842_v0, %v3987_v55  ;;  %v731_v22 = vpop.f32.mrb[10].mxu1  ;;  %v844_v21 = vpop.f32.mrb[26].mxu0  ;;  %1298 = vmatprep.mubr.bf16.mxu1 %v968_v44  ;;  %1395 = vmatprep.mubr.bf16.mxu0 %v970_v40 }
 0x22f   :  { %v732_v50 = vadd.f32 %v731_v22, %v3981_v46  ;;  %v845_v31 = vadd.f32 %v844_v21, %v3983_v47  ;;  %v733_v4 = vpop.f32.mrb[11].mxu1  ;;  %v846_v5 = vpop.f32.mrb[27].mxu0  ;;  %1299 = vmatmul.mubr.bf16.gmra.mrb[36].mxu1 %v967_v34  ;;  %1396 = vmatmul.mubr.bf16.gmra.mrb[52].mxu0 %v969_v23  ;;  %v915_v20 = vmax.f32 %v728_v58, 0.0  ;;  %v917_v18 = vmax.f32 %v841_v10, 0.0 }
 0x230   :  { %v734_v25 = vadd.f32 %v733_v4, %v3985_v41  ;;  %v847_v57 = vadd.f32 %v846_v5, %v3987_v55  ;;  %2945 = vmatpush3.bf16.msra.mxu1 %v3847_v56  ;;  %v916_v43 = vmax.f32 %v730_v48, 0.0  ;;  %v918_v44 = vmax.f32 %v843_v53, 0.0  ;;  %v4031_v35 = vpop.permute.xlu1 %1878  ;;  %v4033_v34 = vpop.permute.xlu0 %1875 }
 0x231   :  { %v919_v33 = vmax.f32 %v732_v50, 0.0  ;;  %v921_v45 = vmax.f32 %v845_v31, 0.0  ;;  %2938 = vmatprep.subr.bf16.mxu1 %v3851_v39 }
 0x232   :  { %v920_v40 = vmax.f32 %v734_v25, 0.0  ;;  %v922_v32 = vmax.f32 %v847_v57, 0.0 }
 0x233   :  { %v971_v23 = vpack.c.bf16 %v919_v33, %v915_v20  ;;  %v973_v37 = vpack.c.bf16 %v921_v45, %v917_v18 }
 0x234   :  { %v972_v0 = vpack.c.bf16 %v920_v40, %v916_v43  ;;  %v974_v22 = vpack.c.bf16 %v922_v32, %v918_v44  ;;  %v737_v21 = vpop.f32.mrb[12].mxu1  ;;  %v850_v56 = vpop.f32.mrb[28].mxu0  ;;  %2946 = vmatpush3.bf16.msra.mxu1 %v3892_v52 }
 0x235   :  { %v738_v58 = vadd.f32 %v737_v21, %v3981_v46  ;;  %v851_v39 = vadd.f32 %v850_v56, %v3983_v47  ;;  %v739_v10 = vpop.f32.mrb[13].mxu1  ;;  %v852_v48 = vpop.f32.mrb[29].mxu0  ;;  %2939 = vmatprep.subr.bf16.mxu1 %v3898_v60 }
 0x236   :  { %v740_v53 = vadd.f32 %v739_v10, %v3985_v41  ;;  %v853_v50 = vadd.f32 %v852_v48, %v3987_v55  ;;  %v741_v31 = vpop.f32.mrb[14].mxu1  ;;  %v854_v4 = vpop.f32.mrb[30].mxu0  ;;  %1306 = vmatprep.mubr.bf16.mxu1 %v972_v0  ;;  %1403 = vmatprep.mubr.bf16.mxu0 %v974_v22 }
 0x237   :  { %v742_v5 = vadd.f32 %v741_v31, %v3981_v46  ;;  %v855_v52 = vadd.f32 %v854_v4, %v3983_v47  ;;  %v743_v25 = vpop.f32.mrb[15].mxu1  ;;  %v856_v57 = vpop.f32.mrb[31].mxu0  ;;  %1307 = vmatmul.mubr.bf16.gmra.mrb[40].mxu1 %v971_v23  ;;  %1404 = vmatmul.mubr.bf16.gmra.mrb[56].mxu0 %v973_v37  ;;  %v923_v18 = vmax.f32 %v738_v58, 0.0  ;;  %v925_v33 = vmax.f32 %v851_v39, 0.0 }
 0x238   :  { %v744_v20 = vadd.f32 %v743_v25, %v3985_v41  ;;  %v857_v60 = vadd.f32 %v856_v57, %v3987_v55  ;;  %2947 = vmatpush3.bf16.msra.mxu1 %v3905_v9  ;;  %v924_v44 = vmax.f32 %v740_v53, 0.0  ;;  %v926_v40 = vmax.f32 %v853_v50, 0.0  ;;  %v4047_v22 = vpop.permute.xlu1 %1884  ;;  %v4049_v23 = vpop.permute.xlu0 %1881 }
 0x239   :  { %v927_v45 = vmax.f32 %v742_v5, 0.0  ;;  %v929_v43 = vmax.f32 %v855_v52, 0.0  ;;  %2940 = vmatprep.subr.bf16.mxu1 %v3921_v42  ;;  %5255 = vst [vmem:[#allocation34_spill] sm:$0xff] %v4047_v22  ;;  %5256 = vst [vmem:[#allocation35_spill] sm:$0xff] %v4049_v23 }
 0x23a   :  { %v928_v32 = vmax.f32 %v744_v20, 0.0  ;;  %v930_v0 = vmax.f32 %v857_v60, 0.0 }
 0x23b   :  { %v975_v37 = vpack.c.bf16 %v927_v45, %v923_v18  ;;  %v977_v21 = vpack.c.bf16 %v929_v43, %v925_v33 }
 0x23c   :  { %v976_v56 = vpack.c.bf16 %v928_v32, %v924_v44  ;;  %v978_v10 = vpack.c.bf16 %v930_v0, %v926_v40  ;;  %v747_v48 = vpop.f32.mrb[16].mxu1  ;;  %v860_v9 = vpop.f32.mrb[32].mxu0  ;;  %2948 = vmatpush3.bf16.msra.mxu1 %v3962_v63 }
 0x23d   :  { %v748_v58 = vadd.f32 %v747_v48, %v3981_v46  ;;  %v861_v42 = vadd.f32 %v860_v9, %v3983_v47  ;;  %v749_v39 = vpop.f32.mrb[17].mxu1  ;;  %v862_v53 = vpop.f32.mrb[33].mxu0  ;;  %2941 = vmatprep.subr.bf16.mxu1 %v3965_v1 }
 0x23e   :  { %v750_v50 = vadd.f32 %v749_v39, %v3985_v41  ;;  %v863_v31 = vadd.f32 %v862_v53, %v3987_v55  ;;  %v751_v4 = vpop.f32.mrb[18].mxu1  ;;  %v864_v5 = vpop.f32.mrb[34].mxu0  ;;  %1314 = vmatprep.mubr.bf16.mxu1 %v976_v56  ;;  %1411 = vmatprep.mubr.bf16.mxu0 %v978_v10 }
 0x23f   :  { %v752_v52 = vadd.f32 %v751_v4, %v3981_v46  ;;  %v865_v63 = vadd.f32 %v864_v5, %v3983_v47  ;;  %v753_v25 = vpop.f32.mrb[19].mxu1  ;;  %v866_v57 = vpop.f32.mrb[35].mxu0  ;;  %1315 = vmatmul.mubr.bf16.gmra.mrb[44].mxu1 %v975_v37  ;;  %1412 = vmatmul.mubr.bf16.gmra.mrb[60].mxu0 %v977_v21  ;;  %v931_v60 = vmax.f32 %v748_v58, 0.0  ;;  %v933_v18 = vmax.f32 %v861_v42, 0.0 }
 0x240   :  { %v754_v20 = vadd.f32 %v753_v25, %v3985_v41  ;;  %v867_v1 = vadd.f32 %v866_v57, %v3987_v55  ;;  %2949 = vmatpush3.bf16.msra.mxu1 %v3967_v11  ;;  %v932_v43 = vmax.f32 %v750_v50, 0.0  ;;  %v934_v44 = vmax.f32 %v863_v31, 0.0  ;;  %v4063_v0 = vpop.permute.xlu1 %1890  ;;  %v4065_v37 = vpop.permute.xlu0 %1887 }
 0x241   :  { %v935_v33 = vmax.f32 %v752_v52, 0.0  ;;  %v937_v45 = vmax.f32 %v865_v63, 0.0  ;;  %2942 = vmatprep.subr.bf16.mxu1 %v3971_v15  ;;  %5257 = vst [vmem:[#allocation36_spill] sm:$0xff] %v4063_v0  ;;  %5258 = vst [vmem:[#allocation37_spill] sm:$0xff] %v4065_v37 }
 0x242   :  { %v936_v40 = vmax.f32 %v754_v20, 0.0  ;;  %v938_v32 = vmax.f32 %v867_v1, 0.0 }
 0x243   :  { %v979_v21 = vpack.c.bf16 %v935_v33, %v931_v60  ;;  %v981_v56 = vpack.c.bf16 %v937_v45, %v933_v18 }
 0x244   :  { %v980_v10 = vpack.c.bf16 %v936_v40, %v932_v43  ;;  %v982_v48 = vpack.c.bf16 %v938_v32, %v934_v44  ;;  %v757_v9 = vpop.f32.mrb[20].mxu1  ;;  %v870_v11 = vpop.f32.mrb[36].mxu0  ;;  %2950 = vmatpush3.bf16.msra.mxu1 %v3973_v28 }
 0x245   :  { %v758_v58 = vadd.f32 %v757_v9, %v3981_v46  ;;  %v871_v15 = vadd.f32 %v870_v11, %v3983_v47  ;;  %v759_v42 = vpop.f32.mrb[21].mxu1  ;;  %v872_v39 = vpop.f32.mrb[37].mxu0 }
 0x246   :  { %v760_v53 = vadd.f32 %v759_v42, %v3985_v41  ;;  %v873_v50 = vadd.f32 %v872_v39, %v3987_v55  ;;  %v761_v31 = vpop.f32.mrb[22].mxu1  ;;  %v874_v4 = vpop.f32.mrb[38].mxu0  ;;  %1322 = vmatprep.mubr.bf16.mxu1 %v980_v10  ;;  %1419 = vmatprep.mubr.bf16.mxu0 %v982_v48 }
 0x247   :  { %v762_v5 = vadd.f32 %v761_v31, %v3981_v46  ;;  %v875_v52 = vadd.f32 %v874_v4, %v3983_v47  ;;  %v763_v63 = vpop.f32.mrb[23].mxu1  ;;  %v876_v28 = vpop.f32.mrb[39].mxu0  ;;  %1323 = vmatmul.mubr.bf16.gmra.mrb[48].mxu1 %v979_v21  ;;  %1420 = vmatmul.mubr.bf16.gmra.mrb[64].mxu0 %v981_v56  ;;  %v939_v20 = vmax.f32 %v758_v58, 0.0  ;;  %v941_v1 = vmax.f32 %v871_v15, 0.0 }
 0x248   :  { %v764_v25 = vadd.f32 %v763_v63, %v3985_v41  ;;  %v877_v57 = vadd.f32 %v876_v28, %v3987_v55  ;;  %v940_v33 = vmax.f32 %v760_v53, 0.0  ;;  %v942_v45 = vmax.f32 %v873_v50, 0.0  ;;  %v4076_v40 = vpop.permute.xlu1 %1896  ;;  %v4078_v32 = vpop.permute.xlu0 %1893 }
 0x249   :  { %v943_v60 = vmax.f32 %v762_v5, 0.0  ;;  %v945_v18 = vmax.f32 %v875_v52, 0.0  ;;  %5259 = vst [vmem:[#allocation38_spill] sm:$0xff] %v4076_v40  ;;  %5260 = vst [vmem:[#allocation39_spill] sm:$0xff] %v4078_v32 }
 0x24a   :  { %v944_v43 = vmax.f32 %v764_v25, 0.0  ;;  %v946_v44 = vmax.f32 %v877_v57, 0.0 }
 0x24b   :  { %v983_v10 = vpack.c.bf16 %v943_v60, %v939_v20  ;;  %v985_v48 = vpack.c.bf16 %v945_v18, %v941_v1 }
 0x24c   :  { %v984_v21 = vpack.c.bf16 %v944_v43, %v940_v33  ;;  %v986_v56 = vpack.c.bf16 %v946_v44, %v942_v45  ;;  %v767_v9 = vpop.f32.mrb[24].mxu1  ;;  %v880_v11 = vpop.f32.mrb[40].mxu0 }
 0x24d   :  { %v768_v42 = vadd.f32 %v767_v9, %v3981_v46  ;;  %v881_v58 = vadd.f32 %v880_v11, %v3983_v47  ;;  %v769_v15 = vpop.f32.mrb[25].mxu1  ;;  %v882_v39 = vpop.f32.mrb[41].mxu0 }
 0x24e   :  { %v770_v53 = vadd.f32 %v769_v15, %v3985_v41  ;;  %v883_v50 = vadd.f32 %v882_v39, %v3987_v55  ;;  %v771_v31 = vpop.f32.mrb[26].mxu1  ;;  %v884_v4 = vpop.f32.mrb[42].mxu0  ;;  %1330 = vmatprep.mubr.bf16.mxu1 %v984_v21  ;;  %1427 = vmatprep.mubr.bf16.mxu0 %v986_v56 }
 0x24f   :  { %v772_v5 = vadd.f32 %v771_v31, %v3981_v46  ;;  %v885_v52 = vadd.f32 %v884_v4, %v3983_v47  ;;  %v773_v63 = vpop.f32.mrb[27].mxu1  ;;  %v886_v28 = vpop.f32.mrb[43].mxu0  ;;  %1331 = vmatmul.mubr.bf16.gmra.mrb[52].mxu1 %v983_v10  ;;  %1428 = vmatmul.mubr.bf16.gmra.mrb[68].mxu0 %v985_v48  ;;  %v947_v20 = vmax.f32 %v768_v42, 0.0  ;;  %v949_v1 = vmax.f32 %v881_v58, 0.0 }
 0x250   :  { %v774_v25 = vadd.f32 %v773_v63, %v3985_v41  ;;  %v887_v57 = vadd.f32 %v886_v28, %v3987_v55  ;;  %v948_v33 = vmax.f32 %v770_v53, 0.0  ;;  %v950_v45 = vmax.f32 %v883_v50, 0.0  ;;  %v4088_v21 = vpop.permute.xlu1 %1902  ;;  %v4090_v56 = vpop.permute.xlu0 %1899 }
 0x251   :  { %v951_v60 = vmax.f32 %v772_v5, 0.0  ;;  %v953_v18 = vmax.f32 %v885_v52, 0.0  ;;  %5261 = vst [vmem:[#allocation40_spill] sm:$0xff] %v4088_v21  ;;  %5262 = vst [vmem:[#allocation41_spill] sm:$0xff] %v4090_v56 }
 0x252   :  { %v952_v43 = vmax.f32 %v774_v25, 0.0  ;;  %v954_v44 = vmax.f32 %v887_v57, 0.0 }
 0x253   :  { %v987_v9 = vpack.c.bf16 %v951_v60, %v947_v20  ;;  %v989_v11 = vpack.c.bf16 %v953_v18, %v949_v1 }
 0x254   :  { %v988_v10 = vpack.c.bf16 %v952_v43, %v948_v33  ;;  %v990_v48 = vpack.c.bf16 %v954_v44, %v950_v45  ;;  %v777_v15 = vpop.f32.mrb[28].mxu1  ;;  %v890_v39 = vpop.f32.mrb[44].mxu0 }
 0x255   :  { %v778_v31 = vadd.f32 %v777_v15, %v3981_v46  ;;  %v891_v42 = vadd.f32 %v890_v39, %v3983_v47  ;;  %v779_v58 = vpop.f32.mrb[29].mxu1  ;;  %v892_v4 = vpop.f32.mrb[45].mxu0 }
 0x256   :  { %v780_v53 = vadd.f32 %v779_v58, %v3985_v41  ;;  %v893_v50 = vadd.f32 %v892_v4, %v3987_v55  ;;  %v781_v5 = vpop.f32.mrb[30].mxu1  ;;  %v894_v52 = vpop.f32.mrb[46].mxu0  ;;  %1338 = vmatprep.mubr.bf16.mxu1 %v988_v10 }
 0x257   :  { %v782_v63 = vadd.f32 %v781_v5, %v3981_v46  ;;  %v895_v28 = vadd.f32 %v894_v52, %v3983_v47  ;;  %v783_v25 = vpop.f32.mrb[31].mxu1  ;;  %v896_v57 = vpop.f32.mrb[47].mxu0  ;;  %1339 = vmatmul.mubr.bf16.gmra.mrb[56].mxu1 %v987_v9  ;;  %v955_v60 = vmax.f32 %v778_v31, 0.0  ;;  %v957_v18 = vmax.f32 %v891_v42, 0.0 }
 0x258   :  { %v784_v20 = vadd.f32 %v783_v25, %v3985_v41  ;;  %v897_v1 = vadd.f32 %v896_v57, %v3987_v55  ;;  %v956_v43 = vmax.f32 %v780_v53, 0.0  ;;  %v958_v44 = vmax.f32 %v893_v50, 0.0  ;;  %v4100_v47 = vpop.permute.xlu1 %1908  ;;  %v4102_v5 = vpop.permute.xlu0 %1905 }
 0x259   :  { %v959_v33 = vmax.f32 %v782_v63, 0.0  ;;  %v961_v45 = vmax.f32 %v895_v28, 0.0  ;;  %5263 = vst [vmem:[#allocation42_spill] sm:$0xff] %v4100_v47  ;;  %5264 = vst [vmem:[#allocation43_spill] sm:$0xff] %v4102_v5 }
 0x25a   :  { %v960_v15 = vmax.f32 %v784_v20, 0.0  ;;  %v962_v39 = vmax.f32 %v897_v1, 0.0 }
 0x25b   :  { %v991_v10 = vpack.c.bf16 %v959_v33, %v955_v60  ;;  %v993_v58 = vpack.c.bf16 %v961_v45, %v957_v18 }
 0x25c   :  { %v992_v46 = vpack.c.bf16 %v960_v15, %v956_v43  ;;  %v994_v4 = vpack.c.bf16 %v962_v39, %v958_v44  ;;  %v4104_v41 = vpop.permute.xlu1 %1999  ;;  %v4106_v55 = vpop.permute.xlu0 %1996 }
 0x25d   :  { %vm2044_vm6 = vcmp.eq.s32.totalorder %v4104_v41, 1  ;;  %vm2043_vm7 = vcmp.eq.s32.totalorder %v4106_v55, 1 }
 0x25e   :  { %1346 = vmatprep.mubr.bf16.mxu1 %v992_v46 }
 0x25f   :  { %1347 = vmatmul.mubr.bf16.gmra.mrb[60].mxu1 %v991_v10 }
 0x260   :  { %1435 = vmatprep.mubr.bf16.mxu1 %v990_v48  ;;  %v4108_v9 = vpop.permute.xlu1 %2005  ;;  %v4110_v31 = vpop.permute.xlu0 %2002 }
 0x264   :  { %v4112_v42 = vpop.permute.xlu1 %2011  ;;  %v4114_v53 = vpop.permute.xlu0 %2008 }
 0x267   :  { %1436 = vmatmul.mubr.bf16.vlgmr.msra.gmra.mrb[64].mxu1 %v989_v11 }
 0x268   :  { %1443 = vmatprep.mubr.bf16.mxu1 %v994_v4  ;;  %v4116_v50 = vpop.permute.xlu1 %2017  ;;  %v4118_v52 = vpop.permute.xlu0 %2014 }
 0x269   :  { %5265 = vst [vmem:[#allocation44_spill] sm:$0xff] %v4116_v50  ;;  %5266 = vst [vmem:[#allocation45_spill] sm:$0xff] %v4118_v52 }
 0x26c   :  { %v4120_v48 = vpop.permute.xlu1 %2023  ;;  %v4122_v63 = vpop.permute.xlu0 %2020 }
 0x26d   :  { %5267 = vst [vmem:[#allocation46_spill] sm:$0xff] %v4120_v48  ;;  %5268 = vst [vmem:[#allocation47_spill] sm:$0xff] %v4122_v63 }
 0x26f   :  { %1444 = vmatmul.mubr.bf16.gmra.mrb[68].mxu1 %v993_v58 }
 0x270   :  { %v4124_v28 = vpop.permute.xlu1 %2029  ;;  %v4126_v11 = vpop.permute.xlu0 %2026 }
 0x271   :  { %5269 = vst [vmem:[#allocation48_spill] sm:$0xff] %v4124_v28  ;;  %5270 = vst [vmem:[#allocation49_spill] sm:$0xff] %v4126_v11 }
 0x274   :  { %v4128_v25 = vpop.permute.xlu1 %2035  ;;  %v4130_v57 = vpop.permute.xlu0 %2032 }
 0x275   :  { %5271 = vst [vmem:[#allocation50_spill] sm:$0xff] %v4128_v25  ;;  %5272 = vst [vmem:[#allocation51_spill] sm:$0xff] %v4130_v57 }
 0x278   :  { %v4132_v20 = vpop.permute.xlu1 %2041  ;;  %v4134_v1 = vpop.permute.xlu0 %2038 }
 0x279   :  { %5273 = vst [vmem:[#allocation52_spill] sm:$0xff] %v4132_v20  ;;  %5274 = vst [vmem:[#allocation53_spill] sm:$0xff] %v4134_v1 }
 0x27c   :  { %v4136_v60 = vpop.permute.xlu1 %2132  ;;  %v4138_v18 = vpop.permute.xlu0 %2129 }
 0x27d   :  { %vm2176_vm9 = vcmp.eq.s32.totalorder %v4138_v18, 1 }
 0x280   :  { %v4140_v33 = vpop.permute.xlu1 %2138  ;;  %v4142_v45 = vpop.permute.xlu0 %2135 }
 0x284   :  { %v4144_v43 = vpop.permute.xlu1 %2144  ;;  %v4146_v44 = vpop.permute.xlu0 %2141 }
 0x288   :  { %v4148_v15 = vpop.permute.xlu1 %2150  ;;  %v4150_v39 = vpop.permute.xlu0 %2147 }
 0x289   :  { %5275 = vst [vmem:[#allocation54_spill] sm:$0xff] %v4148_v15  ;;  %5276 = vst [vmem:[#allocation55_spill] sm:$0xff] %v4150_v39 }
 0x28c   :  { %v4152_v10 = vpop.permute.xlu1 %2156  ;;  %v4154_v58 = vpop.permute.xlu0 %2153 }
 0x28d   :  { %5277 = vst [vmem:[#allocation56_spill] sm:$0xff] %v4152_v10  ;;  %5278 = vst [vmem:[#allocation57_spill] sm:$0xff] %v4154_v58 }
 0x290   :  { %v4156_v46 = vpop.permute.xlu1 %2162  ;;  %v4158_v4 = vpop.permute.xlu0 %2159 }
 0x291   :  { %5279 = vst [vmem:[#allocation58_spill] sm:$0xff] %v4156_v46  ;;  %5280 = vst [vmem:[#allocation59_spill] sm:$0xff] %v4158_v4 }
 0x294   :  { %v4160_v20 = vpop.permute.xlu1 %2168  ;;  %v4162_v47 = vpop.permute.xlu0 %2165 }
 0x295   :  { %5281 = vst [vmem:[#allocation60_spill] sm:$0xff] %v4160_v20  ;;  %5282 = vst [vmem:[#allocation61_spill] sm:$0xff] %v4162_v47 }
 0x298   :  { %v4164_v1 = vpop.permute.xlu1 %2174  ;;  %v4166_v5 = vpop.permute.xlu0 %2171 }
 0x299   :  { %5283 = vst [vmem:[#allocation62_spill] sm:$0xff] %v4164_v1  ;;  %5284 = vst [vmem:[#allocation63_spill] sm:$0xff] %v4166_v5 }
 0x29c   :  { %v4168_v57 = vpop.permute.xlu1 %2265  ;;  %v4170_v25 = vpop.permute.xlu0 %2262 }
 0x2a0   :  { %v4172_v56 = vpop.permute.xlu1 %2271  ;;  %v4174_v21 = vpop.permute.xlu0 %2268 }
 0x2a4   :  { %v4176_v28 = vpop.permute.xlu1 %2277  ;;  %v4178_v46 = vpop.permute.xlu0 %2274 }
 0x2a5   :  { %5285 = vst [vmem:[#allocation64_spill] sm:$0xff] %v4176_v28 }
 0x2a8   :  { %v4180_v4 = vpop.permute.xlu1 %2283  ;;  %v4182_v20 = vpop.permute.xlu0 %2280 }
 0x2a9   :  { %5286 = vst [vmem:[#allocation65_spill] sm:$0xff] %v4180_v4  ;;  %5287 = vst [vmem:[#allocation66_spill] sm:$0xff] %v4182_v20 }
 0x2ac   :  { %v4184_v47 = vpop.permute.xlu1 %2289  ;;  %v4186_v1 = vpop.permute.xlu0 %2286 }
 0x2ad   :  { %5288 = vst [vmem:[#allocation67_spill] sm:$0xff] %v4184_v47  ;;  %5289 = vst [vmem:[#allocation68_spill] sm:$0xff] %v4186_v1 }
 0x2b0   :  { %v4188_v5 = vpop.permute.xlu1 %2295  ;;  %v4190_v40 = vpop.permute.xlu0 %2292 }
 0x2b1   :  { %5290 = vst [vmem:[#allocation69_spill] sm:$0xff] %v4188_v5  ;;  %5291 = vst [vmem:[#allocation70_spill] sm:$0xff] %v4190_v40 }
 0x2b4   :  { %v4192_v11 = vpop.permute.xlu1 %2301  ;;  %v4194_v32 = vpop.permute.xlu0 %2298 }
 0x2b5   :  { %5292 = vst [vmem:[#allocation71_spill] sm:$0xff] %v4192_v11  ;;  %5293 = vst [vmem:[#allocation72_spill] sm:$0xff] %v4194_v32  ;;  %v4211_v11 = vld [vmem:[%s5139_s6] ss:$0 sm:$0xff]  ;;  %s3266_s6 = smov [#allocation11]  }
 0x2b6   :  { %s2649_s29 = sshll.u32 %s3266_s6, 4  ;;  %s2650_s29 = int_to_ptr.vmem [resolvable:$true] %s2649_s29 }
 0x2b7   :  { %s3227_s1 = scalar_lea.vmem %s2650_s29, 128  ;;  %p3232_p5 = scmp.lt.s32.totalorder %s2650_s29, %s2650_s29 }
 0x2b8   :  { %v4196_v58 = vpop.permute.xlu1 %2307  ;;  %v4198_v10 = vpop.permute.xlu0 %2304  ;;  %p3228_p4 = scmp.ne.s32.totalorder %s2650_s29, %s3227_s1  ;;  %p3233_p6 = scmp.lt.s32.totalorder %s3227_s1, %s3227_s1 }
 0x2b9   :  { %5294 = vst [vmem:[#allocation73_spill] sm:$0xff] %v4196_v58  ;;  %5295 = vst [vmem:[#allocation74_spill] sm:$0xff] %v4198_v10 }
 0x2ba   :  { %p3234_p7 = por %p3233_p6, %p3232_p5 }
 0x2bc   :  { %v4200_v48 = vpop.permute.xlu1 %2398  ;;  %v4202_v0 = vpop.permute.xlu0 %2395  ;;  %p3235_p8 = pnand %p3234_p7, %p3228_p4 }
 0x2bd   :  { %vm2442_vm13 = vcmp.eq.s32.totalorder %v4202_v0, 1 }
 0x2c0   :  { %v4204_v49 = vpop.permute.xlu1 %2404  ;;  %v4206_v47 = vpop.permute.xlu0 %2401 }
 0x2c4   :  { %v4215_v39 = vpop.permute.xlu1 %2410  ;;  %v4217_v50 = vpop.permute.xlu0 %2407 }
 0x2c5   :  { %5296 = vst [vmem:[#allocation75_spill] sm:$0xff] %v4215_v39  ;;  %5297 = vst [vmem:[#allocation76_spill] sm:$0xff] %v4217_v50 }
 0x2fa   :  { %v2791_v1 = vpop.f32.mrb[32].mxu1  ;;  %v2855_v5 = vpop.f32.mrb[48].mxu0 }
 0x2fb   :  { %v2792_v32 = vpop.f32.mrb[33].mxu1  ;;  %v2856_v40 = vpop.f32.mrb[49].mxu0 }
 0x2fc   :  { %v2793_v58 = vadd.f32 %v2792_v32, %v2791_v1  ;;  %v2857_v16 = vadd.f32 %v2856_v40, %v2855_v5  ;;  %v2794_v10 = vpop.f32.mrb[34].mxu1  ;;  %v2858_v63 = vpop.f32.mrb[50].mxu0 }
 0x2fd   :  { %v2795_v37 = vpop.f32.mrb[35].mxu1  ;;  %v2859_v54 = vpop.f32.mrb[51].mxu0 }
 0x2fe   :  { %v1293_v17 = vadd.f32 %v2793_v58, %v4211_v11  ;;  %v2796_v4 = vadd.f32 %v2795_v37, %v2794_v10  ;;  %v2860_v20 = vadd.f32 %v2859_v54, %v2858_v63 }
 0x300   :  { %v1390_v28 = vadd.f32 %v2857_v16, %v1293_v17  ;;  %v1296_v15 = vadd.f32 %v2796_v4, %v4211_v11 }
 0x302   :  { %v2743_v22 = vmul.f32 -1.442695, %v1390_v28  ;;  %v1393_v8 = vadd.f32 %v2860_v20, %v1296_v15  ;;  %v2797_v12 = vpop.f32.mrb[36].mxu1  ;;  %v2861_v32 = vpop.f32.mrb[52].mxu0 }
 0x303   :  { %v2798_v40 = vpop.f32.mrb[37].mxu1  ;;  %v2862_v5 = vpop.f32.mrb[53].mxu0 }
 0x304   :  { %3059 = vpow2.f32 %v2743_v22  ;;  %v2744_v1 = vmul.f32 -1.442695, %v1393_v8  ;;  %v2799_v52 = vadd.f32 %v2798_v40, %v2797_v12  ;;  %v2863_v23 = vadd.f32 %v2862_v5, %v2861_v32  ;;  %v2800_v58 = vpop.f32.mrb[38].mxu1  ;;  %v2864_v37 = vpop.f32.mrb[54].mxu0 }
 0x305   :  { %v2801_v54 = vpop.f32.mrb[39].mxu1  ;;  %v2865_v16 = vpop.f32.mrb[55].mxu0 }
 0x306   :  { %3061 = vpow2.f32 %v2744_v1  ;;  %v1301_v17 = vadd.f32 %v2799_v52, %v4211_v11  ;;  %v2802_v63 = vadd.f32 %v2801_v54, %v2800_v58  ;;  %v2866_v10 = vadd.f32 %v2865_v16, %v2864_v37  ;;  %v4221_v20 = vpop.permute.xlu1 %2416  ;;  %v4223_v15 = vpop.permute.xlu0 %2413 }
 0x307   :  { %5298 = vst [vmem:[#allocation77_spill] sm:$0xff] %v4221_v20  ;;  %5299 = vst [vmem:[#allocation78_spill] sm:$0xff] %v4223_v15 }
 0x308   :  { %v1398_v4 = vadd.f32 %v2863_v23, %v1301_v17  ;;  %v1304_v28 = vadd.f32 %v2802_v63, %v4211_v11 }
 0x30a   :  { %v2745_v22 = vmul.f32 -1.442695, %v1398_v4  ;;  %v1401_v8 = vadd.f32 %v2866_v10, %v1304_v28  ;;  %v2803_v12 = vpop.f32.mrb[40].mxu1  ;;  %v2867_v32 = vpop.f32.mrb[56].mxu0 }
 0x30b   :  { %v2804_v40 = vpop.f32.mrb[41].mxu1  ;;  %v2868_v5 = vpop.f32.mrb[57].mxu0 }
 0x30c   :  { %3063 = vpow2.f32 %v2745_v22  ;;  %v2746_v39 = vmul.f32 -1.442695, %v1401_v8  ;;  %v2805_v1 = vadd.f32 %v2804_v40, %v2803_v12  ;;  %v2869_v50 = vadd.f32 %v2868_v5, %v2867_v32  ;;  %v2806_v52 = vpop.f32.mrb[42].mxu1  ;;  %v2870_v58 = vpop.f32.mrb[58].mxu0 }
 0x30d   :  { %v2807_v37 = vpop.f32.mrb[43].mxu1  ;;  %v2871_v23 = vpop.f32.mrb[59].mxu0 }
 0x30e   :  { %v3060_v54 = vpop.eup %3059  ;;  %3065 = vpow2.f32 %v2746_v39  ;;  %v1309_v16 = vadd.f32 %v2805_v1, %v4211_v11  ;;  %v2808_v17 = vadd.f32 %v2807_v37, %v2806_v52  ;;  %v2872_v63 = vadd.f32 %v2871_v23, %v2870_v58  ;;  %v4227_v20 = vpop.permute.xlu1 %2422 }
 0x30f   :  { %v1500_v4 = vadd.f32 1.0, %v3060_v54  ;;  %5300 = vst [vmem:[#allocation79_spill] sm:$0xff] %v4227_v20  ;;  %v4229_v22 = vpop.permute.xlu0 %2419 }
 0x310   :  { %v3062_v10 = vpop.eup %3061  ;;  %v1406_v28 = vadd.f32 %v2869_v50, %v1309_v16  ;;  %v1312_v15 = vadd.f32 %v2808_v17, %v4211_v11  ;;  %5301 = vst [vmem:[#allocation80_spill] sm:$0xff] %v4229_v22 }
 0x311   :  { %3067 = vrcp.f32 %v1500_v4  ;;  %v1501_v8 = vadd.f32 1.0, %v3062_v10 }
 0x312   :  { %v2747_v12 = vmul.f32 -1.442695, %v1406_v28  ;;  %v1409_v32 = vadd.f32 %v2872_v63, %v1312_v15  ;;  %v2809_v40 = vpop.f32.mrb[44].mxu1  ;;  %v2873_v5 = vpop.f32.mrb[60].mxu0 }
 0x313   :  { %3069 = vrcp.f32 %v1501_v8  ;;  %v2810_v39 = vpop.f32.mrb[45].mxu1  ;;  %v2874_v1 = vpop.f32.mrb[61].mxu0 }
 0x314   :  { %3071 = vpow2.f32 %v2747_v12  ;;  %v2748_v52 = vmul.f32 -1.442695, %v1409_v32  ;;  %v2811_v58 = vadd.f32 %v2810_v39, %v2809_v40  ;;  %v2875_v37 = vadd.f32 %v2874_v1, %v2873_v5  ;;  %v2812_v50 = vpop.f32.mrb[46].mxu1  ;;  %v2876_v23 = vpop.f32.mrb[62].mxu0 }
 0x315   :  { %v2813_v54 = vpop.f32.mrb[47].mxu1  ;;  %v2877_v16 = vpop.f32.mrb[63].mxu0 }
 0x316   :  { %v3064_v17 = vpop.eup %3063  ;;  %3073 = vpow2.f32 %v2748_v52  ;;  %v1317_v15 = vadd.f32 %v2811_v58, %v4211_v11  ;;  %v2814_v63 = vadd.f32 %v2813_v54, %v2812_v50  ;;  %v2878_v4 = vadd.f32 %v2877_v16, %v2876_v23  ;;  %v4244_v32 = vpop.permute.xlu1 %2531 }
 0x317   :  { %v1502_v10 = vadd.f32 1.0, %v3064_v17  ;;  %v4246_v40 = vpop.permute.xlu0 %2528  ;;  %vm2576_vm14 = vcmp.eq.s32.totalorder %v4244_v32, 1 }
 0x318   :  { %v3066_v28 = vpop.eup %3065  ;;  %v1414_v8 = vadd.f32 %v2875_v37, %v1317_v15  ;;  %v1320_v12 = vadd.f32 %v2814_v63, %v4211_v11  ;;  %vm2575_vm15 = vcmp.eq.s32.totalorder %v4246_v40, 1 }
 0x319   :  { %3075 = vrcp.f32 %v1502_v10  ;;  %v1503_v5 = vadd.f32 1.0, %v3066_v28 }
 0x31a   :  { %v2749_v39 = vmul.f32 -1.442695, %v1414_v8  ;;  %v1417_v1 = vadd.f32 %v2878_v4, %v1320_v12  ;;  %v2815_v52 = vpop.f32.mrb[48].mxu1  ;;  %v2879_v58 = vpop.f32.mrb[64].mxu0 }
 0x31b   :  { %v4250_v37 = vpop.eup %3067  ;;  %3077 = vrcp.f32 %v1503_v5  ;;  %v2816_v50 = vpop.f32.mrb[49].mxu1 }
 0x31c   :  { %v2880_v23 = vpop.f32.mrb[65].mxu0  ;;  %3079 = vpow2.f32 %v2749_v39  ;;  %v2750_v54 = vmul.f32 -1.442695, %v1417_v1  ;;  %v2817_v16 = vadd.f32 %v2816_v50, %v2815_v52  ;;  %v2818_v15 = vpop.f32.mrb[50].mxu1  ;;  %v4262_v8 = vsel %vm1644_vm0, %v4250_v37, -inf }
 0x31d   :  { %v2881_v17 = vadd.f32 %v2880_v23, %v2879_v58  ;;  %v2882_v63 = vpop.f32.mrb[66].mxu0  ;;  %v3070_v4 = vpop.eup %3069  ;;  %v4267_v12 = vsel %vm1777_vm1, %v4250_v37, -inf  ;;  %v4272_v5 = vsel %vm1910_vm5, %v4250_v37, -inf  ;;  %v4277_v39 = vsel %vm2043_vm7, %v4250_v37, -inf }
 0x31e   :  { %v2819_v10 = vpop.f32.mrb[51].mxu1  ;;  %v2883_v28 = vpop.f32.mrb[67].mxu0  ;;  %vm1780_vm0 = vcmp.eq.s32.totalorder %v3823_v51, 1  ;;  %3081 = vpow2.f32 %v2750_v54  ;;  %v1325_v62 = vadd.f32 %v2817_v16, %v4211_v11  ;;  %vm2178_vm5 = vcmp.eq.s32.totalorder %v4142_v45, 1 }
 0x31f   :  { %v3072_v1 = vpop.eup %3071  ;;  %v2820_v24 = vadd.f32 %v2819_v10, %v2818_v15  ;;  %v2884_v52 = vadd.f32 %v2883_v28, %v2882_v63  ;;  %v4287_v55 = vsel %vm1645_vm2, %v3070_v4, -inf  ;;  %v4291_v58 = vsel %vm1778_vm3, %v3070_v4, -inf  ;;  %v4311_v26 = vpop.permute.xlu1 %2537 }
 0x320   :  { %v1504_v27 = vadd.f32 1.0, %v3072_v1  ;;  %v4295_v50 = vsel %vm1911_vm4, %v3070_v4, -inf  ;;  %v3074_v23 = vpop.eup %3073  ;;  %vm2179_vm7 = vcmp.eq.s32.totalorder %v4140_v33, 1  ;;  %v1422_v54 = vadd.f32 %v2881_v17, %v1325_v62  ;;  %v4313_v15 = vpop.permute.xlu0 %2534 }
 0x321   :  { %v1328_v16 = vadd.f32 %v2820_v24, %v4211_v11  ;;  %v4302_v3 = vsel %vm2044_vm6, %v3070_v4, -inf  ;;  %v4307_v19 = vsel %vm2176_vm9, %v4250_v37, -inf  ;;  %v1505_v17 = vadd.f32 1.0, %v3074_v23 }
 0x322   :  { %3083 = vrcp.f32 %v1504_v27  ;;  %vm5302_vm4 = vcmp.eq.s32.totalorder %v4136_v60, 1  ;;  %vm5304_vm6 = vcmp.eq.s32.totalorder %v4170_v25, 1  ;;  %vm2445_vm9 = vcmp.eq.s32.totalorder %v4204_v49, 1  ;;  %v2821_v28 = vpop.f32.mrb[52].mxu1  ;;  %v2885_v1 = vpop.f32.mrb[68].mxu0 }
 0x323   :  { %v4317_v41 = vsel %vm5302_vm4, %v3070_v4, -inf  ;;  %v4322_v18 = vsel %vm5304_vm6, %v4250_v37, -inf  ;;  %vm2578_vm2 = vcmp.eq.s32.totalorder %v4311_v26, 1  ;;  %vm2577_vm3 = vcmp.eq.s32.totalorder %v4313_v15, 1  ;;  %v3076_v62 = vpop.eup %3075  ;;  %v2822_v24 = vpop.f32.mrb[53].mxu1  ;;  %v5335_v15 = vld [vmem:[#allocation16_spill] sm:$0xff] }
 0x324   :  { %5303 = vst [vmem:[#allocation81_spill] sm:$0xff] %v4317_v41  ;;  %5305 = vst [vmem:[#allocation82_spill] sm:$0xff] %v4322_v18  ;;  %v2751_v63 = vmul.f32 -1.442695, %v1422_v54  ;;  %v1425_v10 = vadd.f32 %v2884_v52, %v1328_v16  ;;  %vm5306_vm1 = vcmp.eq.s32.totalorder %v4168_v57, 1  ;;  %v4334_v25 = vsel %vm2442_vm13, %v4250_v37, -inf  ;;  %v4441_v26 = vpop.permute.xlu1 %2543 }
 0x325   :  { %v4329_v60 = vsel %vm5306_vm1, %v3070_v4, -inf  ;;  %5308 = vst [vmem:[#allocation84_spill] sm:$0xff] %v4334_v25  ;;  %3085 = vrcp.f32 %v1505_v17  ;;  %v2886_v27 = vpop.f32.mrb[69].mxu0  ;;  %vm5309_vm6 = vcmp.eq.s32.totalorder %v4200_v48, 1  ;;  %v4344_v57 = vsel %vm2575_vm15, %v4250_v37, -inf  ;;  %v2824_v16 = vpop.f32.mrb[54].mxu1 }
 0x326   :  { %5307 = vst [vmem:[#allocation83_spill] sm:$0xff] %v4329_v60  ;;  %v4339_v52 = vsel %vm5309_vm6, %v3070_v4, -inf  ;;  %5311 = vst [vmem:[#allocation86_spill] sm:$0xff] %v4344_v57  ;;  %v4348_v0 = vsel %vm2576_vm14, %v3070_v4, -inf  ;;  %vm1781_vm13 = vcmp.eq.s32.totalorder %v3883_v38, 1  ;;  %vm1914_vm1 = vcmp.eq.s32.totalorder %v4033_v34, 1 }
 0x327   :  { %5310 = vst [vmem:[#allocation85_spill] sm:$0xff] %v4339_v52  ;;  %5312 = vst [vmem:[#allocation87_spill] sm:$0xff] %v4348_v0  ;;  %vm2047_vm4 = vcmp.eq.s32.totalorder %v4114_v53, 1  ;;  %3087 = vpow2.f32 %v2751_v63  ;;  %v2752_v23 = vmul.f32 -1.442695, %v1425_v10  ;;  %v2823_v48 = vadd.f32 %v2822_v24, %v2821_v28  ;;  %v2888_v17 = vpop.f32.mrb[70].mxu0  ;;  %v3078_v52 = vpop.eup %3077 }
 0x328   :  { %v2887_v54 = vadd.f32 %v2886_v27, %v2885_v1  ;;  %v2825_v40 = vpop.f32.mrb[55].mxu1  ;;  %v2889_v37 = vpop.f32.mrb[71].mxu0  ;;  %v4356_v32 = vsel %vm1646_vm10, %v3076_v62, -inf  ;;  %v4360_v4 = vsel %vm1779_vm11, %v3076_v62, -inf  ;;  %vm5313_vm14 = vcmp.eq.s32.totalorder %v4017_v29, 1  ;;  %5337 = vst [vmem:[#allocation16_spill] sm:$0xff] %v4441_v26 }
 0x329   :  { %v4364_v63 = vsel %vm5313_vm14, %v3076_v62, -inf  ;;  %vm5315_vm6 = vcmp.eq.s32.totalorder %v4110_v31, 1  ;;  %v3080_v28 = vpop.eup %3079  ;;  %vm1782_vm15 = vcmp.eq.s32.totalorder %v3875_v30, 1  ;;  %3089 = vpow2.f32 %v2752_v23  ;;  %v5343_v0 = vld [vmem:[#allocation54_spill] sm:$0xff]  ;;  %v5353_v26 = vld [vmem:[#allocation27_spill] sm:$0xff]  ;;  %v5354_v30 = vld [vmem:[#allocation37_spill] sm:$0xff]  ;;  %v4524_v22 = vpop.permute.xlu1 %2549 }
 0x32a   :  { %5314 = vst [vmem:[#allocation88_spill] sm:$0xff] %v4364_v63  ;;  %v4368_v10 = vsel %vm5315_vm6, %v3076_v62, -inf  ;;  %v1333_v59 = vadd.f32 %v2823_v48, %v4211_v11  ;;  %v2826_v1 = vadd.f32 %v2825_v40, %v2824_v16  ;;  %v2890_v24 = vadd.f32 %v2889_v37, %v2888_v17  ;;  %v3082_v23 = vpop.eup %3081  ;;  %v2827_v40 = vpop.f32.mrb[56].mxu1  ;;  %v5365_v41 = vld [vmem:[#allocation46_spill] sm:$0xff] }
 0x32b   :  { %vm1915_vm10 = vcmp.eq.s32.totalorder %v4031_v35, 1  ;;  %v1506_v61 = vadd.f32 1.0, %v3080_v28  ;;  %v4375_v29 = vsel %vm1647_vm8, %v3078_v52, -inf  ;;  %v4379_v31 = vsel %vm1780_vm0, %v3078_v52, -inf }
 0x32c   :  { %5316 = vst [vmem:[#allocation89_spill] sm:$0xff] %v4379_v31  ;;  %v4383_v27 = vsel %vm1913_vm12, %v3078_v52, -inf  ;;  %vm2048_vm11 = vcmp.eq.s32.totalorder %v4112_v42, 1  ;;  %v1430_v48 = vadd.f32 %v2887_v54, %v1333_v59  ;;  %v1336_v16 = vadd.f32 %v2826_v1, %v4211_v11  ;;  %v4414_v33 = vpop.eup %3083  ;;  %v2828_v59 = vpop.f32.mrb[57].mxu1 }
 0x32d   :  { %vm5317_vm14 = vcmp.eq.s32.totalorder %v4108_v9, 1  ;;  %v4393_v2 = vsel %vm2178_vm5, %v3076_v62, -inf  ;;  %vm2180_vm0 = vcmp.eq.s32.totalorder %v4146_v44, 1  ;;  %3091 = vrcp.f32 %v1506_v61  ;;  %5327 = vst [vmem:[#allocation96_spill] sm:$0xff] %v4414_v33 }
 0x32e   :  { %v4389_v17 = vsel %vm5317_vm14, %v3078_v52, -inf  ;;  %5319 = vst [vmem:[#allocation91_spill] sm:$0xff] %v4393_v2  ;;  %v1507_v51 = vadd.f32 1.0, %v3082_v23  ;;  %v4399_v36 = vsel %vm2179_vm7, %v3078_v52, -inf  ;;  %vm5321_vm12 = vcmp.eq.s32.totalorder %v4174_v21, 1  ;;  %v5328_v21 = vld [vmem:[#allocation35_spill] sm:$0xff] }
 0x32f   :  { %5318 = vst [vmem:[#allocation90_spill] sm:$0xff] %v4389_v17  ;;  %5320 = vst [vmem:[#allocation92_spill] sm:$0xff] %v4399_v36  ;;  %v4403_v54 = vsel %vm5321_vm12, %v3076_v62, -inf  ;;  %vm2313_vm6 = vcmp.eq.s32.totalorder %v4178_v46, 1  ;;  %v2753_v9 = vmul.f32 -1.442695, %v1430_v48  ;;  %v1433_v45 = vadd.f32 %v2890_v24, %v1336_v16  ;;  %v4437_v16 = vpop.eup %3085 }
 0x330   :  { %5322 = vst [vmem:[#allocation93_spill] sm:$0xff] %v4403_v54  ;;  %vm5323_vm5 = vcmp.eq.s32.totalorder %v4172_v56, 1  ;;  %vm5325_vm14 = vcmp.eq.s32.totalorder %v4206_v47, 1  ;;  %vm1650_vm7 = vcmp.eq.s32.totalorder %v3699_v13, 1  ;;  %vm1783_vm12 = vcmp.eq.s32.totalorder %v3909_v14, 1  ;;  %v5332_v24 = vld [vmem:[#allocation45_spill] sm:$0xff] }
 0x331   :  { %v4408_v37 = vsel %vm5323_vm5, %v3078_v52, -inf  ;;  %v4412_v28 = vsel %vm5325_vm14, %v3076_v62, -inf  ;;  %vm1916_vm8 = vcmp.eq.s32.totalorder %v5328_v21, 1  ;;  %3093 = vrcp.f32 %v1507_v51  ;;  %v2830_v48 = vpop.f32.mrb[58].mxu1  ;;  %5334 = vst [vmem:[#allocation45_spill] sm:$0xff] %v4437_v16 }
 0x332   :  { %5324 = vst [vmem:[#allocation94_spill] sm:$0xff] %v4408_v37  ;;  %5326 = vst [vmem:[#allocation95_spill] sm:$0xff] %v4412_v28  ;;  %v4421_v1 = vsel %vm2445_vm9, %v3078_v52, -inf  ;;  %v4425_v56 = vsel %vm2577_vm3, %v3076_v62, -inf  ;;  %v4429_v47 = vsel %vm2578_vm2, %v3078_v52, -inf  ;;  %vm2049_vm5 = vcmp.eq.s32.totalorder %v5332_v24, 1 }
 0x333   :  { %5329 = vst [vmem:[#allocation35_spill] sm:$0xff] %v4421_v1  ;;  %5330 = vst [vmem:[#allocation97_spill] sm:$0xff] %v4425_v56  ;;  %3095 = vpow2.f32 %v2753_v9  ;;  %v2754_v61 = vmul.f32 -1.442695, %v1433_v45  ;;  %v2829_v23 = vadd.f32 %v2828_v59, %v2827_v40  ;;  %vm5333_vm14 = vcmp.eq.s32.totalorder %v3689_v7, 1  ;;  %v5336_v62 = vld [vmem:[#allocation25_spill] sm:$0xff]  ;;  %v3088_v40 = vpop.eup %3087 }
 0x334   :  { %5331 = vst [vmem:[#allocation98_spill] sm:$0xff] %v4429_v47  ;;  %v4435_v49 = vsel %vm5333_vm14, %v4414_v33, -inf  ;;  %vm1651_vm3 = vcmp.eq.s32.totalorder %v5335_v15, 1  ;;  %vm1784_vm9 = vcmp.eq.s32.totalorder %v5336_v62, 1  ;;  %v2831_v52 = vpop.f32.mrb[59].mxu1  ;;  %v4448_v9 = vsel %vm1781_vm13, %v4414_v33, -inf  ;;  %v4461_v47 = vpop.permute.xlu0 %2540 }
 0x335   :  { %v4453_v7 = vsel %vm1914_vm1, %v4414_v33, -inf  ;;  %v4458_v45 = vsel %vm2047_vm4, %v4414_v33, -inf  ;;  %v5338_v59 = vld [vmem:[#allocation34_spill] sm:$0xff]  ;;  %5339 = vst [vmem:[#allocation25_spill] sm:$0xff] %v4461_v47  ;;  %3097 = vpow2.f32 %v2754_v61  ;;  %v4464_v38 = vadd.f32 %v2829_v23, %v4211_v11  ;;  %v5341_v56 = vld [vmem:[#allocation44_spill] sm:$0xff]  ;;  %v3090_v23 = vpop.eup %3089  ;;  %v2833_v25 = vpop.f32.mrb[60].mxu1 }
 0x336   :  { %vm1917_vm2 = vcmp.eq.s32.totalorder %v5338_v59, 1  ;;  %v2832_v51 = vadd.f32 %v2831_v52, %v2830_v48  ;;  %vm5340_vm13 = vcmp.eq.s32.totalorder %v3685_v6, 1  ;;  %vm2050_vm1 = vcmp.eq.s32.totalorder %v5341_v56, 1  ;;  %v5342_v48 = vld [vmem:[#allocation55_spill] sm:$0xff]  ;;  %v5344_v61 = vld [vmem:[#allocation64_spill] sm:$0xff]  ;;  %v5345_v1 = vld [vmem:[#allocation66_spill] sm:$0xff] }
 0x337   :  { %v4469_v34 = vsel %vm5340_vm13, %v4437_v16, -inf  ;;  %v1508_v53 = vadd.f32 1.0, %v3088_v40  ;;  %v4477_v57 = vsel %vm1782_vm15, %v4437_v16, -inf  ;;  %vm2182_vm4 = vcmp.eq.s32.totalorder %v5342_v48, 1  ;;  %v5347_v52 = vld [vmem:[#allocation65_spill] sm:$0xff]  ;;  %v5352_v28 = vld [vmem:[#allocation18_spill] sm:$0xff] }
 0x338   :  { %v4483_v6 = vadd.f32 %v2832_v51, %v4211_v11  ;;  %v4490_v40 = vsel %vm1915_vm10, %v4437_v16, -inf  ;;  %vm2183_vm15 = vcmp.eq.s32.totalorder %v5343_v0, 1  ;;  %v1509_v51 = vadd.f32 1.0, %v3090_v23  ;;  %v4519_v23 = vpop.eup %3091  ;;  %5355 = vst [vmem:[#allocation64_spill] sm:$0xff] %v4524_v22  ;;  %v2834_v47 = vpop.f32.mrb[61].mxu1  ;;  %v5357_v37 = vld [vmem:[#allocation47_spill] sm:$0xff] }
 0x339   :  { %3099 = vrcp.f32 %v1508_v53  ;;  %v4502_v35 = vsel %vm2048_vm11, %v4437_v16, -inf  ;;  %v4512_v53 = vsel %vm2180_vm0, %v4414_v33, -inf  ;;  %vm5349_vm13 = vcmp.eq.s32.totalorder %v4144_v43, 1  ;;  %5351 = vst [vmem:[#allocation54_spill] sm:$0xff] %v4519_v23  ;;  %v4536_v54 = vpop.permute.xlu0 %2546  ;;  %v5370_v62 = vld [vmem:[#allocation68_spill] sm:$0xff]  ;;  %v5378_v0 = vld [vmem:[#allocation29_spill] sm:$0xff] }
 0x33a   :  { %5346 = vst [vmem:[#allocation34_spill] sm:$0xff] %v4502_v35  ;;  %5348 = vst [vmem:[#allocation44_spill] sm:$0xff] %v4512_v53  ;;  %v4517_v42 = vsel %vm5349_vm13, %v4437_v16, -inf  ;;  %vm1652_vm11 = vcmp.eq.s32.totalorder %v5352_v28, 1  ;;  %vm1785_vm10 = vcmp.eq.s32.totalorder %v5353_v26, 1  ;;  %vm1918_vm14 = vcmp.eq.s32.totalorder %v5354_v30, 1 }
 0x33b   :  { %5350 = vst [vmem:[#allocation55_spill] sm:$0xff] %v4517_v42  ;;  %3101 = vrcp.f32 %v1509_v51  ;;  %v4533_v20 = vsel %vm2313_vm6, %v4414_v33, -inf  ;;  %vm2051_vm0 = vcmp.eq.s32.totalorder %v5357_v37, 1  ;;  %5358 = vst [vmem:[#allocation65_spill] sm:$0xff] %v4536_v54  ;;  %v2835_v60 = vadd.f32 %v2834_v47, %v2833_v25  ;;  %v2836_v35 = vpop.f32.mrb[62].mxu1  ;;  %v4553_v44 = vpop.eup %3093  ;;  %v5361_v33 = vld [vmem:[#allocation17_spill] sm:$0xff] }
 0x33c   :  { %5356 = vst [vmem:[#allocation66_spill] sm:$0xff] %v4533_v20  ;;  %v4541_v51 = vsel %vm1650_vm7, %v4519_v23, -inf  ;;  %v4546_v43 = vsel %vm1783_vm12, %v4519_v23, -inf  ;;  %v4551_v46 = vsel %vm1916_vm8, %v4519_v23, -inf  ;;  %5360 = vst [vmem:[#allocation27_spill] sm:$0xff] %v4553_v44  ;;  %vm1653_vm6 = vcmp.eq.s32.totalorder %v5361_v33, 1 }
 0x33d   :  { %5359 = vst [vmem:[#allocation18_spill] sm:$0xff] %v4551_v46  ;;  %v5362_v25 = vld [vmem:[#allocation26_spill] sm:$0xff]  ;;  %v2837_v47 = vpop.f32.mrb[63].mxu1  ;;  %v4566_v21 = vsel %vm2049_vm5, %v4519_v23, -inf  ;;  %v3096_v54 = vpop.eup %3095  ;;  %v5364_v42 = vld [vmem:[#allocation36_spill] sm:$0xff]  ;;  %vm2052_vm7 = vcmp.eq.s32.totalorder %v5365_v41, 1  ;;  %v4571_v53 = vadd.f32 %v2835_v60, %v4211_v11  ;;  %v5385_v26 = vmax.f32 %v4267_v12, %v4448_v9 }
 0x33e   :  { %vm1786_vm13 = vcmp.eq.s32.totalorder %v5362_v25, 1  ;;  %5363 = vst [vmem:[#allocation37_spill] sm:$0xff] %v4566_v21  ;;  %vm1919_vm8 = vcmp.eq.s32.totalorder %v5364_v42, 1  ;;  %v2838_v13 = vadd.f32 %v2837_v47, %v2836_v35  ;;  %v4576_v14 = vsel %vm1651_vm3, %v4553_v44, -inf  ;;  %v5368_v35 = vld [vmem:[#allocation56_spill] sm:$0xff]  ;;  %v5369_v47 = vld [vmem:[#allocation57_spill] sm:$0xff]  ;;  %v4617_v56 = vpop.permute.xlu0 %2425 }
 0x33f   :  { %5366 = vst [vmem:[#allocation47_spill] sm:$0xff] %v4576_v14  ;;  %v4581_v24 = vsel %vm1784_vm9, %v4553_v44, -inf  ;;  %v1510_v22 = vadd.f32 1.0, %v3096_v54  ;;  %v4590_v60 = vsel %vm1917_vm2, %v4553_v44, -inf  ;;  %v3098_v15 = vpop.eup %3097  ;;  %vm2185_vm12 = vcmp.eq.s32.totalorder %v5368_v35, 1  ;;  %v2891_v46 = vpop.f32.mrb[64].mxu1 }
 0x340   :  { %5367 = vst [vmem:[#allocation17_spill] sm:$0xff] %v4581_v24  ;;  %vm2184_vm5 = vcmp.eq.s32.totalorder %v5369_v47, 1  ;;  %vm2317_vm3 = vcmp.eq.s32.totalorder %v5370_v62, 1  ;;  %v4596_v54 = vadd.f32 %v2838_v13, %v4211_v11  ;;  %v4603_v63 = vsel %vm2050_vm1, %v4553_v44, -inf  ;;  %v4607_v24 = vpop.permute.xlu1 %2428  ;;  %v5373_v13 = vld [vmem:[#allocation67_spill] sm:$0xff]  ;;  %v2892_v17 = vpop.f32.mrb[65].mxu1 }
 0x341   :  { %5371 = vst [vmem:[#allocation26_spill] sm:$0xff] %v4603_v63  ;;  %3103 = vrcp.f32 %v1510_v22  ;;  %v1511_v31 = vadd.f32 1.0, %v3098_v15  ;;  %v4614_v11 = vsel %vm2182_vm4, %v4519_v23, -inf  ;;  %v4622_v59 = vsel %vm2183_vm15, %v4553_v44, -inf  ;;  %v5377_v63 = vld [vmem:[#allocation20_spill] sm:$0xff]  ;;  %v2894_v2 = vpop.f32.mrb[66].mxu1 }
 0x342   :  { %5372 = vst [vmem:[#allocation36_spill] sm:$0xff] %v4614_v11  ;;  %5374 = vst [vmem:[#allocation46_spill] sm:$0xff] %v4622_v59  ;;  %vm5375_vm2 = vcmp.eq.s32.totalorder %v5344_v61, 1  ;;  %vm5376_vm1 = vcmp.eq.s32.totalorder %v5345_v1, 1  ;;  %vm1654_vm4 = vcmp.eq.s32.totalorder %v5377_v63, 1  ;;  %vm1787_vm15 = vcmp.eq.s32.totalorder %v5378_v0, 1 }
 0x343   :  { %v4629_v15 = vsel %vm5375_vm2, %v4437_v16, -inf  ;;  %v4634_v48 = vsel %vm5376_vm1, %v4519_v23, -inf  ;;  %v4636_v14 = vpop.eup %3099  ;;  %3105 = vrcp.f32 %v1511_v31  ;;  %vm5379_vm2 = vcmp.eq.s32.totalorder %v5347_v52, 1  ;;  %v5380_v23 = vld [vmem:[#allocation39_spill] sm:$0xff]  ;;  %v5381_v16 = vld [vmem:[#allocation49_spill] sm:$0xff]  ;;  %v5383_v20 = vld [vmem:[#allocation28_spill] sm:$0xff] }
 0x344   :  { %v4645_v61 = vsel %vm5379_vm2, %v4553_v44, -inf  ;;  %vm1920_vm1 = vcmp.eq.s32.totalorder %v5380_v23, 1  ;;  %v2893_v11 = vadd.f32 %v2892_v17, %v2891_v46  ;;  %v1668_v31 = vsel %vm1652_vm11, %v4636_v14, -inf  ;;  %v5382_v1 = vld [vmem:[#allocation19_spill] sm:$0xff]  ;;  %v2895_v17 = vpop.f32.mrb[67].mxu1  ;;  %v5387_v21 = vld [vmem:[#allocation38_spill] sm:$0xff] }
 0x345   :  { %v1801_v22 = vsel %vm1785_vm10, %v4636_v14, -inf  ;;  %v1934_v52 = vsel %vm1918_vm14, %v4636_v14, -inf  ;;  %v4660_v44 = vpop.eup %3101  ;;  %vm1655_vm2 = vcmp.eq.s32.totalorder %v5382_v1, 1  ;;  %vm1788_vm9 = vcmp.eq.s32.totalorder %v5383_v20, 1  ;;  %v5391_v25 = vld [vmem:[#allocation58_spill] sm:$0xff]  ;;  %v5402_v35 = vld [vmem:[#allocation55_spill] sm:$0xff] }
 0x346   :  { %v5384_v46 = vmax.f32 %v4262_v8, %v4435_v49  ;;  %v4672_v18 = vmax.f32 %v5385_v26, %v1801_v22  ;;  %v5386_v30 = vmax.f32 %v4272_v5, %v4453_v7  ;;  %v2067_v36 = vsel %vm2051_vm0, %v4636_v14, -inf  ;;  %v5388_v5 = vld [vmem:[#allocation48_spill] sm:$0xff] }
 0x347   :  { %vm1921_vm14 = vcmp.eq.s32.totalorder %v5387_v21, 1  ;;  %v1438_v8 = vadd.f32 %v2893_v11, %v4464_v38  ;;  %v2896_v49 = vadd.f32 %v2895_v17, %v2894_v2  ;;  %v1669_v12 = vsel %vm1653_vm6, %v4660_v44, -inf  ;;  %v5392_v11 = vld [vmem:[#allocation59_spill] sm:$0xff]  ;;  %v5395_v17 = vld [vmem:[#allocation34_spill] sm:$0xff]  ;;  %v5426_v20 = vld [vmem:[#allocation88_spill] sm:$0xff] }
 0x348   :  { %v4667_v28 = vmax.f32 %v5384_v46, %v1668_v31  ;;  %v4677_v59 = vmax.f32 %v5386_v30, %v1934_v52  ;;  %v1802_v9 = vsel %vm1786_vm13, %v4660_v44, -inf  ;;  %vm2054_vm10 = vcmp.eq.s32.totalorder %v5388_v5, 1  ;;  %v5437_v5 = vld [vmem:[#allocation91_spill] sm:$0xff] }
 0x349   :  { %v5389_v7 = vmax.f32 %v4287_v55, %v4469_v34  ;;  %v5390_v22 = vmax.f32 %v4291_v58, %v4477_v57  ;;  %v1935_v2 = vsel %vm1919_vm8, %v4660_v44, -inf  ;;  %v2068_v33 = vsel %vm2052_vm7, %v4660_v44, -inf  ;;  %v4709_v55 = vpop.permute.xlu1 %2555  ;;  %v4711_v34 = vpop.permute.xlu0 %2552 }
 0x34a   :  { %vm2187_vm11 = vcmp.eq.s32.totalorder %v5391_v25, 1  ;;  %vm2186_vm0 = vcmp.eq.s32.totalorder %v5392_v11, 1  ;;  %v2755_v31 = vmul.f32 -1.442695, %v1438_v8  ;;  %v1441_v58 = vadd.f32 %v2896_v49, %v4483_v6  ;;  %v5401_v49 = vld [vmem:[#allocation81_spill] sm:$0xff]  ;;  %v5441_v11 = vld [vmem:[#allocation46_spill] sm:$0xff] }
 0x34b   :  { %v4694_v37 = vmax.f32 %v5389_v7, %v1669_v12  ;;  %v4699_v38 = vmax.f32 %v5390_v22, %v1802_v9  ;;  %v5393_v57 = vmax.f32 %v4295_v50, %v4490_v40  ;;  %v5394_v41 = vmax.f32 %v4277_v39, %v4458_v45  ;;  %v5397_v39 = vld [vmem:[#allocation69_spill] sm:$0xff]  ;;  %v2897_v45 = vpop.f32.mrb[68].mxu1  ;;  %v5399_v40 = vld [vmem:[#allocation44_spill] sm:$0xff]  ;;  %v4752_v62 = vpop.eup %3103 }
 0x34c   :  { %v5396_v46 = vmax.f32 %v4302_v3, %v5395_v17  ;;  %v2200_v30 = vsel %vm2184_vm5, %v4636_v14, -inf  ;;  %v2201_v50 = vsel %vm2185_vm12, %v4660_v44, -inf  ;;  %v4738_v6 = vsel %vm2317_vm3, %v4636_v14, -inf  ;;  %v5404_v7 = vld [vmem:[#allocation76_spill] sm:$0xff]  ;;  %v2898_v22 = vpop.f32.mrb[69].mxu1  ;;  %v5409_v17 = vld [vmem:[#allocation75_spill] sm:$0xff] }
 0x34d   :  { %v4717_v42 = vmax.f32 %v5393_v57, %v1935_v2  ;;  %v4722_v52 = vmax.f32 %v5394_v41, %v2067_v36  ;;  %vm2320_vm6 = vcmp.eq.s32.totalorder %v5397_v39, 1  ;;  %v5398_v36 = vld [vmem:[#allocation70_spill] sm:$0xff]  ;;  %3107 = vpow2.f32 %v2755_v31  ;;  %v5446_v39 = vld [vmem:[#allocation96_spill] sm:$0xff] }
 0x34e   :  { %v4727_v26 = vmax.f32 %v5396_v46, %v2068_v33  ;;  %vm2319_vm13 = vcmp.eq.s32.totalorder %v5398_v36, 1  ;;  %v2756_v3 = vmul.f32 -1.442695, %v1441_v58  ;;  %v5400_v47 = vmax.f32 %v4307_v19, %v5399_v40  ;;  %v5406_v33 = vld [vmem:[#allocation83_spill] sm:$0xff]  ;;  %v5407_v19 = vld [vmem:[#allocation93_spill] sm:$0xff]  ;;  %v5408_v57 = vld [vmem:[#allocation94_spill] sm:$0xff] }
 0x34f   :  { %v5403_v12 = vmax.f32 %v5401_v49, %v5402_v35  ;;  %vm2446_vm8 = vcmp.eq.s32.totalorder %v5404_v7, 1  ;;  %vm5405_vm7 = vcmp.eq.s32.totalorder %v5373_v13, 1  ;;  %v2342_v31 = vmax.f32 %v5406_v33, %v4629_v15  ;;  %v5410_v46 = vld [vmem:[#allocation77_spill] sm:$0xff]  ;;  %v2900_v40 = vpop.f32.mrb[70].mxu1  ;;  %v4797_v33 = vpop.permute.xlu0 %2558 }
 0x350   :  { %v4745_v8 = vmax.f32 %v5400_v47, %v2200_v30  ;;  %v2334_v2 = vsel %vm5405_vm7, %v4660_v44, -inf  ;;  %v2343_v58 = vmax.f32 %v5407_v19, %v4634_v48  ;;  %v2344_v41 = vmax.f32 %v5408_v57, %v4645_v61  ;;  %v5411_v30 = vld [vmem:[#allocation78_spill] sm:$0xff]  ;;  %v4773_v48 = vpop.eup %3105  ;;  %v5412_v61 = vld [vmem:[#allocation79_spill] sm:$0xff]  ;;  %v5413_v47 = vld [vmem:[#allocation80_spill] sm:$0xff] }
 0x351   :  { %v4750_v9 = vmax.f32 %v5403_v12, %v2201_v50  ;;  %3109 = vpow2.f32 %v2756_v3  ;;  %v2899_v50 = vadd.f32 %v2898_v22, %v2897_v45  ;;  %v1670_v13 = vsel %vm1654_vm4, %v4752_v62, -inf  ;;  %v2901_v3 = vpop.f32.mrb[71].mxu1  ;;  %v4795_v22 = vpop.permute.xlu1 %2561  ;;  %v5420_v19 = vld [vmem:[#allocation25_spill] sm:$0xff] }
 0x352   :  { %v1803_v15 = vsel %vm1787_vm15, %v4752_v62, -inf  ;;  %vm2451_vm7 = vcmp.eq.s32.totalorder %v5412_v61, 1  ;;  %vm2450_vm12 = vcmp.eq.s32.totalorder %v5413_v47, 1  ;;  %vm2453_vm5 = vcmp.eq.s32.totalorder %v4607_v24, 1  ;;  %v5455_v47 = vld [vmem:[#allocation95_spill] sm:$0xff]  ;;  %v5457_v24 = vld [vmem:[#allocation22_spill] sm:$0xff] }
 0x353   :  { %vm2452_vm3 = vcmp.eq.s32.totalorder %v4617_v56, 1  ;;  %v5414_v45 = vmax.f32 %v4356_v32, %v4541_v51  ;;  %v5416_v0 = vmax.f32 %v4360_v4, %v4546_v43  ;;  %v1936_v35 = vsel %vm1920_vm1, %v4752_v62, -inf  ;;  %v5419_v43 = vld [vmem:[#allocation16_spill] sm:$0xff] }
 0x354   :  { %vm5418_vm4 = vcmp.eq.s32.totalorder %v5381_v16, 1  ;;  %v1446_v32 = vadd.f32 %v2899_v50, %v4571_v53  ;;  %v2902_v51 = vadd.f32 %v2901_v3, %v2900_v40  ;;  %v1671_v4 = vsel %vm1655_vm2, %v4773_v48, -inf  ;;  %v5421_v16 = vld [vmem:[#allocation47_spill] sm:$0xff]  ;;  %v5424_v53 = vld [vmem:[#allocation17_spill] sm:$0xff]  ;;  %v5427_v3 = vld [vmem:[#allocation18_spill] sm:$0xff] }
 0x355   :  { %v4782_v63 = vmax.f32 %v5414_v45, %v1670_v13  ;;  %v4787_v49 = vmax.f32 %v5416_v0, %v1803_v15  ;;  %v2069_v12 = vsel %vm5418_vm4, %v4752_v62, -inf  ;;  %v1804_v23 = vsel %vm1788_vm9, %v4773_v48, -inf  ;;  %v5423_v15 = vld [vmem:[#allocation89_spill] sm:$0xff] }
 0x356   :  { %vm2580_vm15 = vcmp.eq.s32.totalorder %v5419_v43, 1  ;;  %vm2579_vm1 = vcmp.eq.s32.totalorder %v5420_v19, 1  ;;  %v5422_v57 = vmax.f32 %v4375_v29, %v5421_v16  ;;  %v5425_v50 = vmax.f32 %v5423_v15, %v5424_v53 }
 0x357   :  { %5415 = vst [vmem:[#allocation56_spill] sm:$0xff] %v4782_v63  ;;  %5417 = vst [vmem:[#allocation57_spill] sm:$0xff] %v4787_v49  ;;  %v1937_v1 = vsel %vm1921_vm14, %v4773_v48, -inf  ;;  %v5428_v45 = vmax.f32 %v5426_v20, %v5427_v3  ;;  %v5429_v49 = vld [vmem:[#allocation65_spill] sm:$0xff]  ;;  %v2757_v63 = vmul.f32 -1.442695, %v1446_v32  ;;  %v1449_v29 = vadd.f32 %v2902_v51, %v4596_v54 }
 0x358   :  { %v4811_v13 = vmax.f32 %v5422_v57, %v1671_v4  ;;  %v4816_v40 = vmax.f32 %v5425_v50, %v1804_v23  ;;  %vm2581_vm9 = vcmp.eq.s32.totalorder %v5429_v49, 1  ;;  %v5430_v4 = vmax.f32 %v4383_v27, %v4590_v60  ;;  %v5431_v23 = vld [vmem:[#allocation64_spill] sm:$0xff]  ;;  %v5434_v32 = vld [vmem:[#allocation90_spill] sm:$0xff] }
 0x359   :  { %v4824_v0 = vmax.f32 %v5428_v45, %v1936_v35  ;;  %v2070_v21 = vsel %vm2054_vm10, %v4773_v48, -inf  ;;  %vm2582_vm2 = vcmp.eq.s32.totalorder %v5431_v23, 1  ;;  %v5432_v35 = vld [vmem:[#allocation37_spill] sm:$0xff]  ;;  %v5435_v54 = vld [vmem:[#allocation26_spill] sm:$0xff]  ;;  %v2202_v27 = vsel %vm2186_vm0, %v4752_v62, -inf  ;;  %v5440_v20 = vld [vmem:[#allocation92_spill] sm:$0xff] }
 0x35a   :  { %v4831_v16 = vmax.f32 %v5430_v4, %v1937_v1  ;;  %v5433_v57 = vmax.f32 %v4368_v10, %v5432_v35  ;;  %v5436_v51 = vmax.f32 %v5434_v32, %v5435_v54  ;;  %v2203_v60 = vsel %vm2187_vm11, %v4773_v48, -inf  ;;  %v3108_v32 = vpop.eup %3107  ;;  %v4881_v54 = vpop.permute.xlu1 %2434  ;;  %v5460_v49 = vld [vmem:[#allocation30_spill] sm:$0xff] }
 0x35b   :  { %vm2584_vm10 = vcmp.eq.s32.totalorder %v4709_v55, 1  ;;  %vm2586_vm4 = vcmp.eq.s32.totalorder %v4795_v22, 1  ;;  %vm2585_vm14 = vcmp.eq.s32.totalorder %v4797_v33, 1  ;;  %3111 = vpow2.f32 %v2757_v63  ;;  %v5443_v63 = vld [vmem:[#allocation82_spill] sm:$0xff] }
 0x35c   :  { %v4841_v15 = vmax.f32 %v5433_v57, %v2069_v12  ;;  %v4846_v53 = vmax.f32 %v5436_v51, %v2070_v21  ;;  %v2758_v10 = vmul.f32 -1.442695, %v1449_v29  ;;  %v5438_v12 = vld [vmem:[#allocation36_spill] sm:$0xff]  ;;  %v5442_v3 = vmax.f32 %v5440_v20, %v5441_v11  ;;  %v5444_v29 = vld [vmem:[#allocation66_spill] sm:$0xff]  ;;  %v4883_v51 = vpop.permute.xlu0 %2431 }
 0x35d   :  { %v5439_v50 = vmax.f32 %v5437_v5, %v5438_v12  ;;  %v2335_v25 = vsel %vm2319_vm13, %v4752_v62, -inf  ;;  %v2336_v4 = vsel %vm2320_vm6, %v4773_v48, -inf  ;;  %v5445_v21 = vmax.f32 %v5443_v63, %v5444_v29  ;;  %v5447_v12 = vld [vmem:[#allocation45_spill] sm:$0xff]  ;;  %v5453_v20 = vld [vmem:[#allocation84_spill] sm:$0xff]  ;;  %v5456_v63 = vld [vmem:[#allocation35_spill] sm:$0xff] }
 0x35e   :  { %v4865_v45 = vmax.f32 %v5442_v3, %v2203_v60  ;;  %v4879_v57 = vmax.f32 %v2342_v31, %v2334_v2  ;;  %3113 = vpow2.f32 %v2758_v10  ;;  %v4885_v36 = vmax.f32 %v2343_v58, %v2335_v25  ;;  %v5449_v2 = vld [vmem:[#allocation54_spill] sm:$0xff]  ;;  %v3110_v10 = vpop.eup %3109  ;;  %v5454_v3 = vld [vmem:[#allocation85_spill] sm:$0xff] }
 0x35f   :  { %v4860_v1 = vmax.f32 %v5439_v50, %v2202_v27  ;;  %v4877_v35 = vmax.f32 %v5445_v21, %v4738_v6  ;;  %v4887_v27 = vmax.f32 %v2344_v41, %v2336_v4  ;;  %v2462_v60 = vsel %vm2446_vm8, %v5446_v39, -inf  ;;  %v5451_v50 = vld [vmem:[#allocation27_spill] sm:$0xff] }
 0x360   :  { %v1512_v5 = vadd.f32 1.0, %v3108_v32  ;;  %vm5448_vm11 = vcmp.eq.s32.totalorder %v5409_v17, 1  ;;  %vm5450_vm0 = vcmp.eq.s32.totalorder %v5411_v30, 1  ;;  %vm5452_vm6 = vcmp.eq.s32.totalorder %v5410_v46, 1 }
 0x361   :  { %v2463_v6 = vsel %vm5448_vm11, %v5447_v12, -inf  ;;  %v2464_v31 = vsel %vm5450_vm0, %v5449_v2, -inf  ;;  %v2465_v58 = vsel %vm5452_vm6, %v5451_v50, -inf  ;;  %v2466_v41 = vsel %vm2450_vm12, %v4636_v14, -inf }
 0x362   :  { %v2467_v7 = vsel %vm2451_vm7, %v4660_v44, -inf  ;;  %v2468_v17 = vsel %vm2452_vm3, %v4752_v62, -inf  ;;  %v2469_v30 = vsel %vm2453_vm5, %v4773_v48, -inf  ;;  %3115 = vrcp.f32 %v1512_v5  ;;  %v4931_v5 = vpop.permute.xlu1 %2440 }
 0x363   :  { %v1513_v46 = vadd.f32 1.0, %v3110_v10  ;;  %v2474_v11 = vmax.f32 %v5453_v20, %v2462_v60  ;;  %v2475_v25 = vmax.f32 %v5454_v3, %v2463_v6  ;;  %v2476_v4 = vmax.f32 %v5455_v47, %v2464_v31  ;;  %v4933_v6 = vpop.permute.xlu0 %2437  ;;  %v5459_v31 = vld [vmem:[#allocation21_spill] sm:$0xff]  ;;  %v5472_v47 = vld [vmem:[#allocation51_spill] sm:$0xff] }
 0x364   :  { %v2477_v29 = vmax.f32 %v5456_v63, %v2465_v58  ;;  %v2595_v61 = vsel %vm2579_vm1, %v5446_v39, -inf  ;;  %v2596_v56 = vsel %vm2580_vm15, %v5447_v12, -inf  ;;  %vm1656_vm13 = vcmp.eq.s32.totalorder %v5457_v24, 1  ;;  %v5467_v20 = vld [vmem:[#allocation41_spill] sm:$0xff] }
 0x365   :  { %3117 = vrcp.f32 %v1513_v46  ;;  %v4924_v21 = vmax.f32 %v2474_v11, %v2466_v41  ;;  %v4926_v32 = vmax.f32 %v2475_v25, %v2467_v7  ;;  %v2597_v60 = vsel %vm2581_vm9, %v5449_v2, -inf  ;;  %v5463_v41 = vld [vmem:[#allocation87_spill] sm:$0xff]  ;;  %v5465_v46 = vld [vmem:[#allocation98_spill] sm:$0xff] }
 0x366   :  { %v4935_v19 = vmax.f32 %v2476_v4, %v2468_v17  ;;  %v4937_v39 = vmax.f32 %v2477_v29, %v2469_v30  ;;  %v2598_v43 = vsel %vm2582_vm2, %v5451_v50, -inf  ;;  %vm5458_vm8 = vcmp.eq.s32.totalorder %v4711_v34, 1  ;;  %v5461_v50 = vld [vmem:[#allocation86_spill] sm:$0xff]  ;;  %v3112_v34 = vpop.eup %3111  ;;  %v5464_v17 = vld [vmem:[#allocation97_spill] sm:$0xff]  ;;  %v5473_v4 = vld [vmem:[#allocation60_spill] sm:$0xff] }
 0x367   :  { %v2599_v12 = vsel %vm5458_vm8, %v4636_v14, -inf  ;;  %vm1657_vm12 = vcmp.eq.s32.totalorder %v5459_v31, 1  ;;  %vm1790_vm5 = vcmp.eq.s32.totalorder %v5460_v49, 1  ;;  %v2600_v2 = vsel %vm2584_vm10, %v4660_v44, -inf  ;;  %v5462_v14 = vld [vmem:[#allocation31_spill] sm:$0xff]  ;;  %v5466_v44 = vld [vmem:[#allocation40_spill] sm:$0xff] }
 0x368   :  { %v2601_v58 = vsel %vm2585_vm14, %v4752_v62, -inf  ;;  %v2602_v23 = vsel %vm2586_vm4, %v4773_v48, -inf  ;;  %v2607_v10 = vmax.f32 %v5461_v50, %v2595_v61  ;;  %vm1789_vm3 = vcmp.eq.s32.totalorder %v5462_v14, 1  ;;  %v3114_v22 = vpop.eup %3113  ;;  %v5468_v48 = vld [vmem:[#allocation50_spill] sm:$0xff]  ;;  %v5474_v29 = vld [vmem:[#allocation61_spill] sm:$0xff]  ;;  %v5475_v61 = vld [vmem:[#allocation71_spill] sm:$0xff] }
 0x369   :  { %v2608_v7 = vmax.f32 %v5463_v41, %v2596_v56  ;;  %v2609_v30 = vmax.f32 %v5464_v17, %v2597_v60  ;;  %v2610_v55 = vmax.f32 %v5465_v46, %v2598_v43  ;;  %vm1922_vm15 = vcmp.eq.s32.totalorder %v5467_v20, 1  ;;  %v5476_v56 = vld [vmem:[#allocation72_spill] sm:$0xff]  ;;  %v2568_v60 = vpop.permute.xlu1 %2567  ;;  %v2565_v43 = vpop.permute.xlu0 %2564  ;;  %v5480_v50 = vld [vmem:[#allocation53_spill] sm:$0xff] }
 0x36a   :  { %v1514_v62 = vadd.f32 1.0, %v3112_v34  ;;  %v4963_v33 = vmax.f32 %v2607_v10, %v2599_v12  ;;  %vm2055_vm9 = vcmp.eq.s32.totalorder %v5472_v47, 1  ;;  %v1515_v63 = vadd.f32 1.0, %v3114_v22  ;;  %v5482_v46 = vld [vmem:[#allocation32_spill] sm:$0xff] }
 0x36b   :  { %v4966_v11 = vmax.f32 %v2608_v7, %v2600_v2  ;;  %v4968_v3 = vmax.f32 %v2609_v30, %v2601_v58  ;;  %v4970_v25 = vmax.f32 %v2610_v55, %v2602_v23  ;;  %vm2322_vm10 = vcmp.eq.s32.totalorder %v5475_v61, 1  ;;  %v5477_v2 = vld [vmem:[#allocation24_spill] sm:$0xff]  ;;  %v5478_v58 = vld [vmem:[#allocation33_spill] sm:$0xff]  ;;  %v5479_v23 = vld [vmem:[#allocation43_spill] sm:$0xff] }
 0x36c   :  { %3119 = vrcp.f32 %v1514_v62  ;;  %vm2321_vm4 = vcmp.eq.s32.totalorder %v5476_v56, 1  ;;  %vm2455_vm11 = vcmp.eq.s32.totalorder %v4881_v54, 1  ;;  %v3116_v12 = vpop.eup %3115  ;;  %vm2454_vm1 = vcmp.eq.s32.totalorder %v4883_v51, 1  ;;  %v5481_v30 = vld [vmem:[#allocation23_spill] sm:$0xff]  ;;  %v5483_v55 = vld [vmem:[#allocation42_spill] sm:$0xff]  ;;  %v5484_v62 = vld [vmem:[#allocation52_spill] sm:$0xff] }
 0x36d   :  { %5469 = vst [vmem:[#allocation68_spill] sm:$0xff] %v4966_v11  ;;  %5470 = vst [vmem:[#allocation67_spill] sm:$0xff] %v4968_v3  ;;  %vm2588_vm14 = vcmp.eq.s32.totalorder %v2568_v60, 1  ;;  %vm2587_vm7 = vcmp.eq.s32.totalorder %v2565_v43, 1  ;;  %3121 = vrcp.f32 %v1515_v63  ;;  %v1672_v10 = vsel %vm1656_vm13, %v3116_v12, -inf  ;;  %v5487_v11 = vld [vmem:[#allocation62_spill] sm:$0xff] }
 0x36e   :  { %5471 = vst [vmem:[#allocation20_spill] sm:$0xff] %v4970_v25  ;;  %v1805_v34 = vsel %vm1789_vm3, %v3116_v12, -inf  ;;  %v1938_v41 = vsel %vm1922_vm15, %v3116_v12, -inf  ;;  %v2071_v7 = vsel %vm2055_vm9, %v3116_v12, -inf  ;;  %vm1659_vm2 = vcmp.eq.s32.totalorder %v5481_v30, 1  ;;  %v5497_v60 = vld [vmem:[#allocation56_spill] sm:$0xff] }
 0x36f   :  { %v3118_v17 = vpop.eup %3117  ;;  %vm1792_vm8 = vcmp.eq.s32.totalorder %v5482_v46, 1  ;;  %vm1925_vm6 = vcmp.eq.s32.totalorder %v5483_v55, 1  ;;  %v1684_v24 = vmax.f32 %v4667_v28, %v1672_v10  ;;  %v1817_v14 = vmax.f32 %v4672_v18, %v1805_v34  ;;  %v5488_v28 = vld [vmem:[#allocation63_spill] sm:$0xff]  ;;  %v5489_v18 = vld [vmem:[#allocation74_spill] sm:$0xff] }
 0x370   :  { %v1950_v22 = vmax.f32 %v4677_v59, %v1938_v41  ;;  %v2083_v20 = vmax.f32 %v4722_v52, %v2071_v7  ;;  %v1673_v47 = vsel %vm1657_vm12, %v3118_v17, -inf  ;;  %v1806_v63 = vsel %vm1790_vm5, %v3118_v17, -inf  ;;  %v5492_v41 = vld [vmem:[#allocation73_spill] sm:$0xff] }
 0x371   :  { %vm5485_vm13 = vcmp.eq.s32.totalorder %v5466_v44, 1  ;;  %vm5486_vm3 = vcmp.eq.s32.totalorder %v5468_v48, 1  ;;  %vm2191_vm15 = vcmp.eq.s32.totalorder %v5487_v11, 1  ;;  %vm2190_vm9 = vcmp.eq.s32.totalorder %v5488_v28, 1 }
 0x372   :  { %v1939_v25 = vsel %vm5485_vm13, %v3118_v17, -inf  ;;  %v2072_v3 = vsel %vm5486_vm3, %v3118_v17, -inf  ;;  %vm2323_vm0 = vcmp.eq.s32.totalorder %v5489_v18, 1  ;;  %v1685_v59 = vmax.f32 %v4694_v37, %v1673_v47  ;;  %v2571_v47 = vpop.permute.xlu0 %2570 }
 0x373   :  { %v1818_v52 = vmax.f32 %v4699_v38, %v1806_v63  ;;  %v1951_v31 = vmax.f32 %v4717_v42, %v1939_v25  ;;  %v2084_v49 = vmax.f32 %v4727_v26, %v2072_v3  ;;  %vm5490_vm12 = vcmp.eq.s32.totalorder %v5474_v29, 1 }
 0x374   :  { %v2204_v44 = vsel %vm5490_vm12, %v3116_v12, -inf  ;;  %vm5491_vm5 = vcmp.eq.s32.totalorder %v5473_v4, 1  ;;  %v2337_v10 = vsel %vm2321_vm4, %v3116_v12, -inf  ;;  %v2338_v34 = vsel %vm2322_vm10, %v3118_v17, -inf }
 0x375   :  { %v2205_v48 = vsel %vm5491_vm5, %v3118_v17, -inf  ;;  %vm2324_vm13 = vcmp.eq.s32.totalorder %v5492_v41, 1  ;;  %v1688_v37 = vmax.f32 %v1684_v24, %v1685_v59  ;;  %v1821_v38 = vmax.f32 %v1817_v14, %v1818_v52  ;;  %v2574_v52 = vpop.permute.xlu1 %2573 }
 0x376   :  { %v1954_v7 = vmax.f32 %v1950_v22, %v1951_v31  ;;  %v2087_v42 = vmax.f32 %v2083_v20, %v2084_v49  ;;  %v2216_v26 = vmax.f32 %v4745_v8, %v2204_v44  ;;  %v2217_v3 = vmax.f32 %v4750_v9, %v2205_v48  ;;  %v5027_v29 = vpop.eup %3119 }
 0x377   :  { %v2349_v25 = vmax.f32 %v4877_v35, %v2337_v10  ;;  %v2350_v4 = vmax.f32 %v4879_v57, %v2338_v34  ;;  %vm2456_vm4 = vcmp.eq.s32.totalorder %v4933_v6, 1  ;;  %v5032_v61 = vsel %vm2454_vm1, %v3116_v12, -inf  ;;  %v5056_v43 = vpop.eup %3121 }
 0x378   :  { %v5036_v56 = vsel %vm2455_vm11, %v3118_v17, -inf  ;;  %v5039_v8 = vsel %vm2587_vm7, %v3116_v12, -inf  ;;  %v5042_v9 = vsel %vm2588_vm14, %v3118_v17, -inf  ;;  %vm5493_vm10 = vcmp.eq.s32.totalorder %v5477_v2, 1  ;;  %v5498_v2 = vld [vmem:[#allocation57_spill] sm:$0xff] }
 0x379   :  { %v1674_v35 = vsel %vm5493_vm10, %v5027_v29, -inf  ;;  %vm5494_vm3 = vcmp.eq.s32.totalorder %v5478_v58, 1  ;;  %vm5495_vm1 = vcmp.eq.s32.totalorder %v5479_v23, 1  ;;  %vm5496_vm11 = vcmp.eq.s32.totalorder %v5480_v50, 1 }
 0x37a   :  { %v1807_v57 = vsel %vm5494_vm3, %v5027_v29, -inf  ;;  %v1940_v54 = vsel %vm5495_vm1, %v5027_v29, -inf  ;;  %v2073_v51 = vsel %vm5496_vm11, %v5027_v29, -inf  ;;  %vm2457_vm7 = vcmp.eq.s32.totalorder %v4931_v5, 1 }
 0x37b   :  { %v1686_v12 = vmax.f32 %v5497_v60, %v1674_v35  ;;  %v1819_v17 = vmax.f32 %v5498_v2, %v1807_v57  ;;  %v1952_v24 = vmax.f32 %v4824_v0, %v1940_v54  ;;  %v2085_v58 = vmax.f32 %v4841_v15, %v2073_v51 }
 0x37c   :  { %v1675_v23 = vsel %vm1659_vm2, %v5056_v43, -inf  ;;  %v1808_v50 = vsel %vm1792_vm8, %v5056_v43, -inf  ;;  %v1941_v14 = vsel %vm1925_vm6, %v5056_v43, -inf  ;;  %vm5499_vm14 = vcmp.eq.s32.totalorder %v5484_v62, 1 }
 0x37d   :  { %v2074_v22 = vsel %vm5499_vm14, %v5056_v43, -inf  ;;  %v1687_v0 = vmax.f32 %v4811_v13, %v1675_v23  ;;  %v1820_v15 = vmax.f32 %v4816_v40, %v1808_v50  ;;  %v1953_v20 = vmax.f32 %v4831_v16, %v1941_v14 }
 0x37e   :  { %v2086_v30 = vmax.f32 %v4846_v53, %v2074_v22  ;;  %v2206_v46 = vsel %vm2190_vm9, %v5027_v29, -inf  ;;  %v2207_v55 = vsel %vm2191_vm15, %v5056_v43, -inf  ;;  %v2220_v63 = vmax.f32 %v2216_v26, %v2217_v3 }
 0x37f   :  { %v2339_v13 = vsel %vm2323_vm0, %v5027_v29, -inf  ;;  %v1689_v62 = vmax.f32 %v1686_v12, %v1687_v0  ;;  %v1822_v40 = vmax.f32 %v1819_v17, %v1820_v15  ;;  %v1955_v59 = vmax.f32 %v1952_v24, %v1953_v20 }
 0x380   :  { %v2088_v16 = vmax.f32 %v2085_v58, %v2086_v30  ;;  %v2218_v53 = vmax.f32 %v4860_v1, %v2206_v46  ;;  %v2219_v31 = vmax.f32 %v4865_v45, %v2207_v55  ;;  %v2340_v28 = vsel %vm2324_vm13, %v5056_v43, -inf }
 0x381   :  { %v2351_v11 = vmax.f32 %v4885_v36, %v2339_v13  ;;  %vm2589_vm2 = vcmp.eq.s32.totalorder %v2571_v47, 1  ;;  %v1690_v49 = vmax.f32 %v1688_v37, %v1689_v62  ;;  %v1823_v44 = vmax.f32 %v1821_v38, %v1822_v40  ;;  %v5500_v47 = vld [vmem:[#allocation68_spill] sm:$0xff] }
 0x382   :  { %v1956_v18 = vmax.f32 %v1954_v7, %v1955_v59  ;;  %v2089_v48 = vmax.f32 %v2087_v42, %v2088_v16  ;;  %v2221_v10 = vmax.f32 %v2218_v53, %v2219_v31  ;;  %v2352_v34 = vmax.f32 %v4887_v27, %v2340_v28 }
 0x383   :  { %v2353_v26 = vmax.f32 %v2349_v25, %v2350_v4  ;;  %v2472_v1 = vsel %vm2456_vm4, %v5027_v29, -inf  ;;  %vm2590_vm0 = vcmp.eq.s32.totalorder %v2574_v52, 1  ;;  %v1691_v45 = vrot.slane %v1690_v49, 4 }
 0x384   :  { %v1824_v3 = vrot.slane %v1823_v44, 4  ;;  %v1957_v41 = vrot.slane %v1956_v18, 4  ;;  %v2090_v35 = vrot.slane %v2089_v48, 4  ;;  %v2222_v57 = vmax.f32 %v2220_v63, %v2221_v10 }
 0x385   :  { %v2354_v36 = vmax.f32 %v2351_v11, %v2352_v34  ;;  %v2473_v37 = vsel %vm2457_vm7, %v5056_v43, -inf  ;;  %v2482_v38 = vmax.f32 %v4924_v21, %v5032_v61  ;;  %vm2628_vm6 = vcmask 1040384   ;;  %v5501_v11 = vld [vmem:[#allocation67_spill] sm:$0xff] }
 0x386   :  { %v1692_v27 = vmax.f32 %v1690_v49, %v1691_v45  ;;  %v1825_v7 = vmax.f32 %v1823_v44, %v1824_v3  ;;  %v1958_v42 = vmax.f32 %v1956_v18, %v1957_v41  ;;  %v2091_v6 = vmax.f32 %v2089_v48, %v2090_v35  ;;  %v5502_v44 = vld [vmem:[#allocation20_spill] sm:$0xff] }
 0x387   :  { %vm2630_vm8 = vcmask 1041408   ;;  %v2223_v25 = vrot.slane %v2222_v57, 4  ;;  %v2355_v4 = vmax.f32 %v2353_v26, %v2354_v36  ;;  %v2483_v54 = vmax.f32 %v4926_v32, %v5036_v56 }
 0x388   :  { %v2484_v51 = vmax.f32 %v4935_v19, %v2472_v1  ;;  %vm2632_vm15 = vcmask 1042432   ;;  %v1693_v60 = vrot.slane %v1692_v27, 2  ;;  %v1826_v5 = vrot.slane %v1825_v7, 2 }
 0x389   :  { %v1959_v12 = vrot.slane %v1958_v42, 2  ;;  %v2092_v2 = vrot.slane %v2091_v6, 2  ;;  %vm2634_vm9 = vcmask 1043456   ;;  %v2224_v21 = vmax.f32 %v2222_v57, %v2223_v25 }
 0x38a   :  { %v2356_v61 = vrot.slane %v2355_v4, 4  ;;  %v2485_v17 = vmax.f32 %v4937_v39, %v2473_v37  ;;  %v2486_v24 = vmax.f32 %v2482_v38, %v2483_v54  ;;  %v1694_v58 = vmax.f32 %v1692_v27, %v1693_v60 }
 0x38b   :  { %v1827_v23 = vmax.f32 %v1825_v7, %v1826_v5  ;;  %v1960_v50 = vmax.f32 %v1958_v42, %v1959_v12  ;;  %v2093_v14 = vmax.f32 %v2091_v6, %v2092_v2  ;;  %v2225_v22 = vrot.slane %v2224_v21, 2 }
 0x38c   :  { %v2357_v0 = vmax.f32 %v2355_v4, %v2356_v61  ;;  %v2487_v32 = vmax.f32 %v2484_v51, %v2485_v17  ;;  %v2605_v19 = vsel %vm2589_vm2, %v5027_v29, -inf  ;;  %v1695_v56 = vrot.slane %v1694_v58, 1 }
 0x38d   :  { %v1828_v15 = vrot.slane %v1827_v23, 1  ;;  %v1961_v20 = vrot.slane %v1960_v50, 1  ;;  %v2094_v30 = vrot.slane %v2093_v14, 1  ;;  %v2226_v46 = vmax.f32 %v2224_v21, %v2225_v22 }
 0x38e   :  { %v2358_v55 = vrot.slane %v2357_v0, 2  ;;  %v2488_v63 = vmax.f32 %v2486_v24, %v2487_v32  ;;  %v2606_v39 = vsel %vm2590_vm0, %v5056_v43, -inf  ;;  %v1696_v13 = vmax.f32 %v1694_v58, %v1695_v56 }
 0x38f   :  { %v1829_v62 = vmax.f32 %v1827_v23, %v1828_v15  ;;  %v1962_v40 = vmax.f32 %v1960_v50, %v1961_v20  ;;  %v2095_v59 = vmax.f32 %v2093_v14, %v2094_v30  ;;  %v2227_v16 = vrot.slane %v2226_v46, 1 }
 0x390   :  { %v2359_v53 = vmax.f32 %v2357_v0, %v2358_v55  ;;  %v2489_v31 = vrot.slane %v2488_v63, 4  ;;  %v2615_v29 = vmax.f32 %v4963_v33, %v5039_v8  ;;  %v2616_v28 = vmax.f32 %v5500_v47, %v5042_v9 }
 0x391   :  { %v2617_v49 = vmax.f32 %v5501_v11, %v2605_v19  ;;  %v2618_v18 = vmax.f32 %v5502_v44, %v2606_v39  ;;  %v2629_v52 = vsel %vm2628_vm6, %v1696_v13, %v1829_v62  ;;  %v2228_v43 = vmax.f32 %v2226_v46, %v2227_v16 }
 0x392   :  { %v2360_v48 = vrot.slane %v2359_v53, 1  ;;  %v2490_v10 = vmax.f32 %v2488_v63, %v2489_v31  ;;  %v2631_v34 = vsel %vm2630_vm8, %v2629_v52, %v1962_v40  ;;  %v2619_v26 = vmax.f32 %v2615_v29, %v2616_v28 }
 0x393   :  { %v2620_v1 = vmax.f32 %v2617_v49, %v2618_v18  ;;  %v2633_v45 = vsel %vm2632_vm15, %v2631_v34, %v2095_v59  ;;  %vm2636_vm12 = vcmask 1044480   ;;  %vm2638_vm5 = vcmask 1045504  }
 0x394   :  { %v2361_v33 = vmax.f32 %v2359_v53, %v2360_v48  ;;  %v2491_v8 = vrot.slane %v2490_v10, 2  ;;  %v2635_v9 = vsel %vm2634_vm9, %v2633_v45, %v2228_v43  ;;  %vm2640_vm13 = vcmask 1046528  }
 0x395   :  { %v2621_v3 = vmax.f32 %v2619_v26, %v2620_v1 }
 0x396   :  { %v2492_v41 = vmax.f32 %v2490_v10, %v2491_v8  ;;  %v2637_v35 = vsel %vm2636_vm12, %v2635_v9, %v2361_v33 }
 0x397   :  { %v2622_v57 = vrot.slane %v2621_v3, 4 }
 0x398   :  { %v2493_v36 = vrot.slane %v2492_v41, 1 }
 0x399   :  { %v2623_v37 = vmax.f32 %v2621_v3, %v2622_v57 }
 0x39a   :  { %v2494_v38 = vmax.f32 %v2492_v41, %v2493_v36 }
 0x39b   :  { %v2624_v27 = vrot.slane %v2623_v37, 2 }
 0x39c   :  { %v2639_v7 = vsel %vm2638_vm5, %v2637_v35, %v2494_v38 }
 0x39d   :  { %v2625_v42 = vmax.f32 %v2623_v37, %v2624_v27 }
 0x39f   :  { %v2626_v6 = vrot.slane %v2625_v42, 1 }
 0x3a1   :  { %v2627_v25 = vmax.f32 %v2625_v42, %v2626_v6 }
 0x3a3   :  { %v2641_v4 = vsel %vm2640_vm13, %v2639_v7, %v2627_v25 }
 0x3a4   :  { %2642 = vst [vmem:[#allocation11] sm:$0xff] %v2641_v4 }
 0x3a5   :  { %3238 = shalt.err (!%p3235_p8)
}
 0x3a6   :  { %s3239_s11 = scalar_lea.hbm %s5141_s8, 128 }
 0x3a7   :  { %p3240_p9 = scmp.ne.s32.totalorder %s5141_s8, %s3239_s11  ;;  %p3243_p10 = scmp.lt.u32.totalorder %s3239_s11, %s5141_s8 }
 0x3a9   :  { %p3245_p11 = pnand %p3243_p10, %p3240_p9 }
 0x3ab   :  { %3248 = shalt.err (!%p3245_p11)
}
 0x3ac   :  { %2652 = dma.vmem_to_hbm [thread:$0]  %s2650_s29, 128, %s5141_s8, [#allocation5]  }
 0x3ad   :  { %3255 = dma.done.wait [#allocation5], 128  }
 0x3ae   :  { %3256 = vsyncadd [#allocation5], 4294967168 }
 0x3af   :  { %2656 = vsyncpa [#allocation4], 1 }
 0x3b0   :  { %2657 = vsyncpa [#allocation7], 1 }
 0x3b1   :  { %2658 = vsyncpa [#allocation10], 1 }
 0x3b2   :  { %2659 = vsyncpa [#allocation5], 1 }

</bundles_post_ra>
